<compile_context>
chip_gen: v7x
topology: tpu7x:2x2x1
jax: 0.10.0
libtpu: 0.0.40
codegen_flags: <defaults>
</compile_context>

<pallas_src>
import functools

import jax
import jax.numpy as jnp
from jax.experimental import pallas as pl
from jax.experimental.pallas import tpu as pltpu


# ----------------------------------------------------------------------------
# Fused matmul + shift + activation (+ residual add & relu) Pallas kernel
# ----------------------------------------------------------------------------
def _make_fused_matmul_kernel(act, has_res):
    def kernel(*refs):
        if has_res:
            a_ref, w_ref, sh_ref, r_ref, o_ref = refs
        else:
            a_ref, w_ref, sh_ref, o_ref = refs
            r_ref = None

        # bf16 x bf16 -> f32 accumulate on the MXU.
        out = jnp.dot(a_ref[...], w_ref[...], preferred_element_type=jnp.float32)
        out = out + sh_ref[...]                       # folded conv-bias + BN shift
        if act == "relu":
            out = jnp.maximum(out, 0.0)
        elif act == "leaky":
            out = jnp.where(out > 0, out, 0.1 * out)
        if has_res:
            out = jnp.maximum(out + r_ref[...].astype(jnp.float32), 0.0)
        o_ref[...] = out.astype(o_ref.dtype)

    return kernel


def _pick_tm(M):
    # Split large M so v7x's second TensorCore gets work; otherwise one block.
    if M > 256 and M % 256 == 0:
        return 256
    if M > 128 and M % 128 == 0:
        return 128
    return M


def fused_matmul(A, Wm, shift, *, act="none", residual=None,
                 out_dtype=jnp.bfloat16):
    """out = act(A @ Wm + shift)  (optionally  relu(out + residual))."""
    M, K = A.shape
    _, N = Wm.shape

    A = A.astype(jnp.bfloat16)
    Wm = Wm.astype(jnp.bfloat16)
    shift = shift.reshape(1, N).astype(jnp.float32)

    tm = _pick_tm(M)
    grid = (M // tm,)

    args = [A, Wm, shift]
    in_specs = [
        pl.BlockSpec((tm, K), lambda i: (i, 0)),   # full-K A tile
        pl.BlockSpec((K, N), lambda i: (0, 0)),    # whole (folded) weight
        pl.BlockSpec((1, N), lambda i: (0, 0)),    # per-channel shift
    ]
    has_res = residual is not None
    if has_res:
        args.append(residual.astype(jnp.bfloat16))
        in_specs.append(pl.BlockSpec((tm, N), lambda i: (i, 0)))

    return pl.pallas_call(
        _make_fused_matmul_kernel(act, has_res),
        out_shape=jax.ShapeDtypeStruct((M, N), out_dtype),
        grid_spec=pltpu.PrefetchScalarGridSpec(
            num_scalar_prefetch=0,
            grid=grid,
            in_specs=in_specs,
            out_specs=pl.BlockSpec((tm, N), lambda i: (i, 0)),
        ),
        compiler_params=pltpu.CompilerParams(
            dimension_semantics=("parallel",)),
    )(*args)


# ----------------------------------------------------------------------------
# Conv2d (im2col glue + Pallas fused matmul)
# ----------------------------------------------------------------------------
def _im2col(x, kh, kw, stride, padding, dilation=1):
    # TODO(synk): im2col remains plain-JAX glue; in-kernel tap windows would
    #             cut A-side HBM traffic further but needs strided DMA plumbing.
    N, H, W, C = x.shape
    xp = jnp.pad(x, ((0, 0), (padding, padding), (padding, padding), (0, 0)))
    Hout = (H + 2 * padding - dilation * (kh - 1) - 1) // stride + 1
    Wout = (W + 2 * padding - dilation * (kw - 1) - 1) // stride + 1
    cols = []
    for i in range(kh):
        for j in range(kw):
            ys, xs = i * dilation, j * dilation
            patch = xp[:, ys:ys + (Hout - 1) * stride + 1:stride,
                          xs:xs + (Wout - 1) * stride + 1:stride, :]
            cols.append(patch)
    return jnp.concatenate(cols, axis=-1), Hout, Wout


def _bn_params(c, eps=1e-5):
    # (gamma, beta, running_mean, running_var, eps) — module init (1,0,0,1)
    return (jnp.ones((c,), jnp.float32), jnp.zeros((c,), jnp.float32),
            jnp.zeros((c,), jnp.float32), jnp.ones((c,), jnp.float32), eps)


def _fold_bn_into_weight(Wm, bias, bn, cout):
    """Return (W*scale, shift) so that  A@W' + shift == BN(A@W + bias)."""
    if bias is None:
        bias = jnp.zeros((cout,), jnp.float32)
    if bn is None:
        return Wm, bias
    g, b, m, v, eps = bn
    s = g / jnp.sqrt(v + eps)
    return Wm * s[None, :], (bias - m) * s + b


def conv2d(x, w_oihw, bias, *, stride=1, padding=0, dilation=1,
           bn=None, act="none", residual=None, out_dtype=jnp.bfloat16):
    N, H, W, Cin = x.shape
    Cout, _, kh, kw = w_oihw.shape
    patches, Hout, Wout = _im2col(x, kh, kw, stride, padding, dilation)
    A = patches.reshape(N * Hout * Wout, kh * kw * Cin)
    Wm = jnp.transpose(w_oihw, (2, 3, 1, 0)).reshape(kh * kw * Cin, Cout)
    Wm, shift = _fold_bn_into_weight(Wm, bias, bn, Cout)
    res = None if residual is None else residual.reshape(N * Hout * Wout, Cout)
    out = fused_matmul(A, Wm, shift, act=act, residual=res, out_dtype=out_dtype)
    return out.reshape(N, Hout, Wout, Cout)


# ----------------------------------------------------------------------------
# Deformable conv v1 (batched bilinear gather in JAX, contraction in Pallas)
# ----------------------------------------------------------------------------
def _bilinear_sample_all(x, py, px):
    """x: (N,H,W,C); py/px: (N,H,W,K) sample positions. 4 gathers total."""
    N, H, W, C = x.shape
    y0 = jnp.floor(py)
    x0 = jnp.floor(px)
    wy1, wx1 = py - y0, px - x0
    wy0, wx0 = 1.0 - wy1, 1.0 - wx1
    flat = x.reshape(N, H * W, C)

    def gather(yi, xi):
        valid = ((yi >= 0) & (yi <= H - 1) & (xi >= 0) & (xi <= W - 1))
        yc = jnp.clip(yi, 0, H - 1).astype(jnp.int32)
        xc = jnp.clip(xi, 0, W - 1).astype(jnp.int32)
        idx = (yc * W + xc).reshape(N, -1, 1)                 # (N, H*W*K, 1)
        g = jnp.take_along_axis(flat, idx, axis=1)            # (N, H*W*K, C)
        g = g.reshape(N, *yi.shape[1:], C).astype(jnp.float32)
        return g * valid[..., None].astype(jnp.float32)

    out = (gather(y0, x0) * (wy0 * wx0)[..., None]
           + gather(y0, x0 + 1.0) * (wy0 * wx1)[..., None]
           + gather(y0 + 1.0, x0) * (wy1 * wx0)[..., None]
           + gather(y0 + 1.0, x0 + 1.0) * (wy1 * wx1)[..., None])
    return out.astype(jnp.bfloat16)                           # (N,H,W,K,C)


def deform_conv2d(x, offset, w_oihw, bias, *, dilation, bn):
    # TODO(synk): DeformConv2d source not provided; torchvision-v1 semantics
    #             with same-size centered sampling assumed (required by the
    #             torch.cat over the three dilated branches).
    N, H, W, Cin = x.shape
    Cout, _, kh, kw = w_oihw.shape
    K = kh * kw
    off = offset.astype(jnp.float32).reshape(N, H, W, K, 2)   # (dy, dx) per tap
    ky = (jnp.arange(kh, dtype=jnp.float32) - (kh - 1) / 2.0) * dilation
    kx = (jnp.arange(kw, dtype=jnp.float32) - (kw - 1) / 2.0) * dilation
    ky = jnp.repeat(ky, kw)                                   # tap k = i*kw + j
    kx = jnp.tile(kx, kh)
    py = (jnp.arange(H, dtype=jnp.float32)[None, :, None, None]
          + ky[None, None, None, :] + off[..., 0])            # (N,H,W,K)
    px = (jnp.arange(W, dtype=jnp.float32)[None, None, :, None]
          + kx[None, None, None, :] + off[..., 1])

    samples = _bilinear_sample_all(x, py, px)                 # (N,H,W,K,Cin)
    A = samples.reshape(N * H * W, K * Cin)
    Wm = jnp.transpose(w_oihw, (2, 3, 1, 0)).reshape(K * Cin, Cout)
    Wm, shift = _fold_bn_into_weight(Wm, bias, bn, Cout)
    out = fused_matmul(A, Wm, shift, act="none")
    return out.reshape(N, H, W, Cout)


# ----------------------------------------------------------------------------
# BottleneckBlock / SmallEncoder forward
# ----------------------------------------------------------------------------
def bottleneck_block(x, p, stride):
    y = conv2d(x, p["conv1_w"], p["conv1_b"], stride=1, padding=0,
               bn=p["norm1"], act="relu")
    y = conv2d(y, p["conv2_w"], p["conv2_b"], stride=stride, padding=1,
               bn=p["norm2"], act="relu")
    if stride == 1:
        xd = x
    else:
        xd = conv2d(x, p["down_w"], p["down_b"], stride=stride, padding=0,
                    bn=p["norm4"], act="none")
    # fused epilogue: relu( relu(norm3(conv3(y))) + downsample(x) )
    return conv2d(y, p["conv3_w"], p["conv3_b"], stride=1, padding=0,
                  bn=p["norm3"], act="relu", residual=xd)


def small_encoder_forward(params, x_nchw):
    x = jnp.transpose(x_nchw, (0, 2, 3, 1)).astype(jnp.bfloat16)   # -> NHWC

    # stem: conv1 (7x7 s2, bias) -> BN -> ReLU
    x = conv2d(x, params["conv1_w"], params["conv1_b"], stride=2, padding=3,
               bn=params["norm1"], act="relu")

    x = bottleneck_block(x, params["layer1"][0], 1)
    x = bottleneck_block(x, params["layer1"][1], 1)
    x = bottleneck_block(x, params["layer2"][0], 2)
    x = bottleneck_block(x, params["layer2"][1], 1)
    x = bottleneck_block(x, params["layer3"][0], 2)
    x = bottleneck_block(x, params["layer3"][1], 1)

    branches = []
    for idx, dil in ((1, 1), (2, 3), (3, 5)):
        # TODO(synk): `conv(...)` helper source not provided; assumed
        #             Conv2d(bias=False)+BN+LeakyReLU(0.1), with pad=dilation
        #             so all branches keep the same spatial size.
        off = conv2d(x, params[f"off{idx}_w"], None, stride=1, padding=dil,
                     dilation=dil, bn=params[f"off{idx}_bn"], act="leaky")
        xi = deform_conv2d(x, off, params[f"def{idx}_w"], params[f"def{idx}_b"],
                           dilation=dil, bn=params[f"bn{idx}"])
        branches.append(xi)

    x = jnp.concatenate(branches, axis=-1)                         # (N,H,W,384)
    x = conv2d(x, params["conv2_w"], params["conv2_b"], stride=1, padding=0,
               act="none", out_dtype=jnp.float32)
    # TODO(synk): SPCII definition not provided; passed through unchanged.
    return jnp.transpose(x, (0, 3, 1, 2))                          # -> NCHW


# ----------------------------------------------------------------------------
# Deterministic parameter construction (matches module init)
# ----------------------------------------------------------------------------
def _kaiming(key, cout, cin, kh, kw):
    std = (2.0 / (cout * kh * kw)) ** 0.5   # kaiming_normal_, mode='fan_out'
    return std * jax.random.normal(key, (cout, cin, kh, kw), jnp.float32)


def _conv_bias(key, cout, cin, kh, kw):
    bound = 1.0 / ((cin * kh * kw) ** 0.5)
    return jax.random.uniform(key, (cout,), jnp.float32, -bound, bound)


def _bottleneck_params(key, in_planes, planes, stride):
    q = planes // 4
    ks = jax.random.split(key, 8)
    p = {
        "conv1_w": _kaiming(ks[0], q, in_planes, 1, 1),
        "conv1_b": _conv_bias(ks[1], q, in_planes, 1, 1),
        "conv2_w": _kaiming(ks[2], q, q, 3, 3),
        "conv2_b": _conv_bias(ks[3], q, q, 3, 3),
        "conv3_w": _kaiming(ks[4], planes, q, 1, 1),
        "conv3_b": _conv_bias(ks[5], planes, q, 1, 1),
        "norm1": _bn_params(q),
        "norm2": _bn_params(q),
        "norm3": _bn_params(planes),
    }
    if stride != 1:
        p["down_w"] = _kaiming(ks[6], planes, in_planes, 1, 1)
        p["down_b"] = _conv_bias(ks[7], planes, in_planes, 1, 1)
        p["norm4"] = _bn_params(planes)
    return p


def init_params(key, output_dim=128):
    ks = iter(jax.random.split(key, 32))
    params = {
        "conv1_w": _kaiming(next(ks), 32, 3, 7, 7),
        "conv1_b": _conv_bias(next(ks), 32, 3, 7, 7),
        "norm1": _bn_params(32),
        "layer1": [_bottleneck_params(next(ks), 32, 32, 1),
                   _bottleneck_params(next(ks), 32, 32, 1)],
        "layer2": [_bottleneck_params(next(ks), 32, 64, 2),
                   _bottleneck_params(next(ks), 64, 64, 1)],
        "layer3": [_bottleneck_params(next(ks), 64, 96, 2),
                   _bottleneck_params(next(ks), 96, 96, 1)],
    }
    for idx in (1, 2, 3):
        params[f"off{idx}_w"] = _kaiming(next(ks), 18, 96, 3, 3)
        params[f"off{idx}_bn"] = _bn_params(18)
        params[f"def{idx}_w"] = _kaiming(next(ks), 128, 96, 3, 3)
        params[f"def{idx}_b"] = _conv_bias(next(ks), 128, 96, 3, 3)
        params[f"bn{idx}"] = _bn_params(128)
    params["conv2_w"] = _kaiming(next(ks), output_dim, 384, 1, 1)
    params["conv2_b"] = _conv_bias(next(ks), output_dim, 384, 1, 1)
    return params


# ----------------------------------------------------------------------------
if __name__ == "__main__":
    key = jax.random.PRNGKey(0)
    pkey, xkey = jax.random.split(key)

    params = init_params(pkey, output_dim=128)
    # PyTorch NCHW input: (batch=2, channels=3, H=32, W=32) -> out (2,128,4,4)
    x = jax.random.normal(xkey, (2, 3, 32, 32), jnp.float32)

    fwd = jax.jit(functools.partial(small_encoder_forward, params))
    out = jax.block_until_ready(fwd(x))

    assert out.shape == (2, 128, 4, 4), out.shape
    assert out.dtype == jnp.float32
    assert bool(jnp.all(jnp.isfinite(out)))
    print("KERNEL_OK")
</pallas_src>

<mosaic_0001>
module attributes {stable_mosaic.version = 11 : i64} {
  func.func @kernel(%arg0: i32, %arg1: memref<256x147xbf16, #tpu.memory_space<vmem>>, %arg2: memref<147x32xbf16, #tpu.memory_space<vmem>>, %arg3: memref<1x32xf32, #tpu.memory_space<vmem>>, %arg4: memref<256x32xbf16, #tpu.memory_space<vmem>>) attributes {dimension_semantics = [#tpu.dimension_semantics<parallel>], iteration_bounds = array<i64: 2>, scalar_prefetch = 0 : i64, scratch_operands = 0 : i64, tpu.core_type = #tpu.core_type<tc>, window_params = [{transform_indices = @transform_0, window_bounds = array<i64: 256, 147>}, {pipeline_mode = #tpu.pipeline_mode<synchronous>, transform_indices = @transform_1, window_bounds = array<i64: 147, 32>}, {pipeline_mode = #tpu.pipeline_mode<synchronous>, transform_indices = @transform_2, window_bounds = array<i64: 1, 32>}, {transform_indices = @transform_3, window_bounds = array<i64: 256, 32>}]} {
    %c0 = arith.constant 0 : index
    %c0_0 = arith.constant 0 : index
    %0 = vector.load %arg1[%c0, %c0_0] : memref<256x147xbf16, #tpu.memory_space<vmem>>, vector<256x147xbf16>
    %c0_1 = arith.constant 0 : index
    %c0_2 = arith.constant 0 : index
    %1 = vector.load %arg2[%c0_1, %c0_2] : memref<147x32xbf16, #tpu.memory_space<vmem>>, vector<147x32xbf16>
    %cst = arith.constant dense<0.000000e+00> : vector<256x32xf32>
    %2 = tpu.matmul %0, %1, %cst {dimension_numbers = #tpu.dot_dimension_numbers<[1], [0], [0], [1], [0, 0, 1, 1], [], []>} : vector<256x147xbf16>, vector<147x32xbf16>, vector<256x32xf32> -> vector<256x32xf32>
    %c0_3 = arith.constant 0 : index
    %c0_4 = arith.constant 0 : index
    %3 = vector.load %arg3[%c0_3, %c0_4] : memref<1x32xf32, #tpu.memory_space<vmem>>, vector<1x32xf32>
    %4 = vector.broadcast %3 : vector<1x32xf32> to vector<256x32xf32>
    %5 = arith.addf %2, %4 : vector<256x32xf32>
    %cst_5 = arith.constant 0.000000e+00 : f32
    %6 = vector.broadcast %cst_5 : f32 to vector<256x32xf32>
    %7 = arith.maximumf %5, %6 : vector<256x32xf32>
    %8 = arith.truncf %7 : vector<256x32xf32> to vector<256x32xbf16>
    %c0_6 = arith.constant 0 : index
    %c0_7 = arith.constant 0 : index
    %9 = vector.load %arg4[%c0_6, %c0_7] : memref<256x32xbf16, #tpu.memory_space<vmem>>, vector<256x32xbf16>
    tpu.vector_store %arg4[%c0_6, %c0_7], %8 {strides = array<i32>} : memref<256x32xbf16, #tpu.memory_space<vmem>>, vector<256x32xbf16>,
    return
  }
  func.func @transform_0(%arg0: i32) -> (i32, i32) {
    %c0_i32 = arith.constant 0 : i32
    %c0_i32_0 = arith.constant 0 : i32
    return %arg0, %c0_i32 : i32, i32
  }
  func.func @transform_1(%arg0: i32) -> (i32, i32) {
    %c0_i32 = arith.constant 0 : i32
    %c0_i32_0 = arith.constant 0 : i32
    %c0_i32_1 = arith.constant 0 : i32
    return %c0_i32, %c0_i32_0 : i32, i32
  }
  func.func @transform_2(%arg0: i32) -> (i32, i32) {
    %c0_i32 = arith.constant 0 : i32
    %c0_i32_0 = arith.constant 0 : i32
    %c0_i32_1 = arith.constant 0 : i32
    return %c0_i32, %c0_i32_0 : i32, i32
  }
  func.func @transform_3(%arg0: i32) -> (i32, i32) {
    %c0_i32 = arith.constant 0 : i32
    %c0_i32_0 = arith.constant 0 : i32
    return %arg0, %c0_i32 : i32, i32
  }
}

module attributes {stable_mosaic.version = 11 : i64} {
  func.func @kernel(%arg0: i32, %arg1: memref<256x32xbf16, #tpu.memory_space<vmem>>, %arg2: memref<32x8xbf16, #tpu.memory_space<vmem>>, %arg3: memref<1x8xf32, #tpu.memory_space<vmem>>, %arg4: memref<256x8xbf16, #tpu.memory_space<vmem>>) attributes {dimension_semantics = [#tpu.dimension_semantics<parallel>], iteration_bounds = array<i64: 2>, scalar_prefetch = 0 : i64, scratch_operands = 0 : i64, tpu.core_type = #tpu.core_type<tc>, window_params = [{transform_indices = @transform_0, window_bounds = array<i64: 256, 32>}, {pipeline_mode = #tpu.pipeline_mode<synchronous>, transform_indices = @transform_1, window_bounds = array<i64: 32, 8>}, {pipeline_mode = #tpu.pipeline_mode<synchronous>, transform_indices = @transform_2, window_bounds = array<i64: 1, 8>}, {transform_indices = @transform_3, window_bounds = array<i64: 256, 8>}]} {
    %c0 = arith.constant 0 : index
    %c0_0 = arith.constant 0 : index
    %0 = vector.load %arg1[%c0, %c0_0] : memref<256x32xbf16, #tpu.memory_space<vmem>>, vector<256x32xbf16>
    %c0_1 = arith.constant 0 : index
    %c0_2 = arith.constant 0 : index
    %1 = vector.load %arg2[%c0_1, %c0_2] : memref<32x8xbf16, #tpu.memory_space<vmem>>, vector<32x8xbf16>
    %cst = arith.constant dense<0.000000e+00> : vector<256x8xf32>
    %2 = tpu.matmul %0, %1, %cst {dimension_numbers = #tpu.dot_dimension_numbers<[1], [0], [0], [1], [0, 0, 1, 1], [], []>} : vector<256x32xbf16>, vector<32x8xbf16>, vector<256x8xf32> -> vector<256x8xf32>
    %c0_3 = arith.constant 0 : index
    %c0_4 = arith.constant 0 : index
    %3 = vector.load %arg3[%c0_3, %c0_4] : memref<1x8xf32, #tpu.memory_space<vmem>>, vector<1x8xf32>
    %4 = vector.broadcast %3 : vector<1x8xf32> to vector<256x8xf32>
    %5 = arith.addf %2, %4 : vector<256x8xf32>
    %cst_5 = arith.constant 0.000000e+00 : f32
    %6 = vector.broadcast %cst_5 : f32 to vector<256x8xf32>
    %7 = arith.maximumf %5, %6 : vector<256x8xf32>
    %8 = arith.truncf %7 : vector<256x8xf32> to vector<256x8xbf16>
    %c0_6 = arith.constant 0 : index
    %c0_7 = arith.constant 0 : index
    %9 = vector.load %arg4[%c0_6, %c0_7] : memref<256x8xbf16, #tpu.memory_space<vmem>>, vector<256x8xbf16>
    tpu.vector_store %arg4[%c0_6, %c0_7], %8 {strides = array<i32>} : memref<256x8xbf16, #tpu.memory_space<vmem>>, vector<256x8xbf16>,
    return
  }
  func.func @transform_0(%arg0: i32) -> (i32, i32) {
    %c0_i32 = arith.constant 0 : i32
    %c0_i32_0 = arith.constant 0 : i32
    return %arg0, %c0_i32 : i32, i32
  }
  func.func @transform_1(%arg0: i32) -> (i32, i32) {
    %c0_i32 = arith.constant 0 : i32
    %c0_i32_0 = arith.constant 0 : i32
    %c0_i32_1 = arith.constant 0 : i32
    return %c0_i32, %c0_i32_0 : i32, i32
  }
  func.func @transform_2(%arg0: i32) -> (i32, i32) {
    %c0_i32 = arith.constant 0 : i32
    %c0_i32_0 = arith.constant 0 : i32
    %c0_i32_1 = arith.constant 0 : i32
    return %c0_i32, %c0_i32_0 : i32, i32
  }
  func.func @transform_3(%arg0: i32) -> (i32, i32) {
    %c0_i32 = arith.constant 0 : i32
    %c0_i32_0 = arith.constant 0 : i32
    return %arg0, %c0_i32 : i32, i32
  }
}

module attributes {stable_mosaic.version = 11 : i64} {
  func.func @kernel(%arg0: i32, %arg1: memref<256x72xbf16, #tpu.memory_space<vmem>>, %arg2: memref<72x8xbf16, #tpu.memory_space<vmem>>, %arg3: memref<1x8xf32, #tpu.memory_space<vmem>>, %arg4: memref<256x8xbf16, #tpu.memory_space<vmem>>) attributes {dimension_semantics = [#tpu.dimension_semantics<parallel>], iteration_bounds = array<i64: 2>, scalar_prefetch = 0 : i64, scratch_operands = 0 : i64, tpu.core_type = #tpu.core_type<tc>, window_params = [{transform_indices = @transform_0, window_bounds = array<i64: 256, 72>}, {pipeline_mode = #tpu.pipeline_mode<synchronous>, transform_indices = @transform_1, window_bounds = array<i64: 72, 8>}, {pipeline_mode = #tpu.pipeline_mode<synchronous>, transform_indices = @transform_2, window_bounds = array<i64: 1, 8>}, {transform_indices = @transform_3, window_bounds = array<i64: 256, 8>}]} {
    %c0 = arith.constant 0 : index
    %c0_0 = arith.constant 0 : index
    %0 = vector.load %arg1[%c0, %c0_0] : memref<256x72xbf16, #tpu.memory_space<vmem>>, vector<256x72xbf16>
    %c0_1 = arith.constant 0 : index
    %c0_2 = arith.constant 0 : index
    %1 = vector.load %arg2[%c0_1, %c0_2] : memref<72x8xbf16, #tpu.memory_space<vmem>>, vector<72x8xbf16>
    %cst = arith.constant dense<0.000000e+00> : vector<256x8xf32>
    %2 = tpu.matmul %0, %1, %cst {dimension_numbers = #tpu.dot_dimension_numbers<[1], [0], [0], [1], [0, 0, 1, 1], [], []>} : vector<256x72xbf16>, vector<72x8xbf16>, vector<256x8xf32> -> vector<256x8xf32>
    %c0_3 = arith.constant 0 : index
    %c0_4 = arith.constant 0 : index
    %3 = vector.load %arg3[%c0_3, %c0_4] : memref<1x8xf32, #tpu.memory_space<vmem>>, vector<1x8xf32>
    %4 = vector.broadcast %3 : vector<1x8xf32> to vector<256x8xf32>
    %5 = arith.addf %2, %4 : vector<256x8xf32>
    %cst_5 = arith.constant 0.000000e+00 : f32
    %6 = vector.broadcast %cst_5 : f32 to vector<256x8xf32>
    %7 = arith.maximumf %5, %6 : vector<256x8xf32>
    %8 = arith.truncf %7 : vector<256x8xf32> to vector<256x8xbf16>
    %c0_6 = arith.constant 0 : index
    %c0_7 = arith.constant 0 : index
    %9 = vector.load %arg4[%c0_6, %c0_7] : memref<256x8xbf16, #tpu.memory_space<vmem>>, vector<256x8xbf16>
    tpu.vector_store %arg4[%c0_6, %c0_7], %8 {strides = array<i32>} : memref<256x8xbf16, #tpu.memory_space<vmem>>, vector<256x8xbf16>,
    return
  }
  func.func @transform_0(%arg0: i32) -> (i32, i32) {
    %c0_i32 = arith.constant 0 : i32
    %c0_i32_0 = arith.constant 0 : i32
    return %arg0, %c0_i32 : i32, i32
  }
  func.func @transform_1(%arg0: i32) -> (i32, i32) {
    %c0_i32 = arith.constant 0 : i32
    %c0_i32_0 = arith.constant 0 : i32
    %c0_i32_1 = arith.constant 0 : i32
    return %c0_i32, %c0_i32_0 : i32, i32
  }
  func.func @transform_2(%arg0: i32) -> (i32, i32) {
    %c0_i32 = arith.constant 0 : i32
    %c0_i32_0 = arith.constant 0 : i32
    %c0_i32_1 = arith.constant 0 : i32
    return %c0_i32, %c0_i32_0 : i32, i32
  }
  func.func @transform_3(%arg0: i32) -> (i32, i32) {
    %c0_i32 = arith.constant 0 : i32
    %c0_i32_0 = arith.constant 0 : i32
    return %arg0, %c0_i32 : i32, i32
  }
}

module attributes {stable_mosaic.version = 11 : i64} {
  func.func @kernel(%arg0: i32, %arg1: memref<256x32xbf16, #tpu.memory_space<vmem>>, %arg2: memref<32x16xbf16, #tpu.memory_space<vmem>>, %arg3: memref<1x16xf32, #tpu.memory_space<vmem>>, %arg4: memref<256x16xbf16, #tpu.memory_space<vmem>>) attributes {dimension_semantics = [#tpu.dimension_semantics<parallel>], iteration_bounds = array<i64: 2>, scalar_prefetch = 0 : i64, scratch_operands = 0 : i64, tpu.core_type = #tpu.core_type<tc>, window_params = [{transform_indices = @transform_0, window_bounds = array<i64: 256, 32>}, {pipeline_mode = #tpu.pipeline_mode<synchronous>, transform_indices = @transform_1, window_bounds = array<i64: 32, 16>}, {pipeline_mode = #tpu.pipeline_mode<synchronous>, transform_indices = @transform_2, window_bounds = array<i64: 1, 16>}, {transform_indices = @transform_3, window_bounds = array<i64: 256, 16>}]} {
    %c0 = arith.constant 0 : index
    %c0_0 = arith.constant 0 : index
    %0 = vector.load %arg1[%c0, %c0_0] : memref<256x32xbf16, #tpu.memory_space<vmem>>, vector<256x32xbf16>
    %c0_1 = arith.constant 0 : index
    %c0_2 = arith.constant 0 : index
    %1 = vector.load %arg2[%c0_1, %c0_2] : memref<32x16xbf16, #tpu.memory_space<vmem>>, vector<32x16xbf16>
    %cst = arith.constant dense<0.000000e+00> : vector<256x16xf32>
    %2 = tpu.matmul %0, %1, %cst {dimension_numbers = #tpu.dot_dimension_numbers<[1], [0], [0], [1], [0, 0, 1, 1], [], []>} : vector<256x32xbf16>, vector<32x16xbf16>, vector<256x16xf32> -> vector<256x16xf32>
    %c0_3 = arith.constant 0 : index
    %c0_4 = arith.constant 0 : index
    %3 = vector.load %arg3[%c0_3, %c0_4] : memref<1x16xf32, #tpu.memory_space<vmem>>, vector<1x16xf32>
    %4 = vector.broadcast %3 : vector<1x16xf32> to vector<256x16xf32>
    %5 = arith.addf %2, %4 : vector<256x16xf32>
    %cst_5 = arith.constant 0.000000e+00 : f32
    %6 = vector.broadcast %cst_5 : f32 to vector<256x16xf32>
    %7 = arith.maximumf %5, %6 : vector<256x16xf32>
    %8 = arith.truncf %7 : vector<256x16xf32> to vector<256x16xbf16>
    %c0_6 = arith.constant 0 : index
    %c0_7 = arith.constant 0 : index
    %9 = vector.load %arg4[%c0_6, %c0_7] : memref<256x16xbf16, #tpu.memory_space<vmem>>, vector<256x16xbf16>
    tpu.vector_store %arg4[%c0_6, %c0_7], %8 {strides = array<i32>} : memref<256x16xbf16, #tpu.memory_space<vmem>>, vector<256x16xbf16>,
    return
  }
  func.func @transform_0(%arg0: i32) -> (i32, i32) {
    %c0_i32 = arith.constant 0 : i32
    %c0_i32_0 = arith.constant 0 : i32
    return %arg0, %c0_i32 : i32, i32
  }
  func.func @transform_1(%arg0: i32) -> (i32, i32) {
    %c0_i32 = arith.constant 0 : i32
    %c0_i32_0 = arith.constant 0 : i32
    %c0_i32_1 = arith.constant 0 : i32
    return %c0_i32, %c0_i32_0 : i32, i32
  }
  func.func @transform_2(%arg0: i32) -> (i32, i32) {
    %c0_i32 = arith.constant 0 : i32
    %c0_i32_0 = arith.constant 0 : i32
    %c0_i32_1 = arith.constant 0 : i32
    return %c0_i32, %c0_i32_0 : i32, i32
  }
  func.func @transform_3(%arg0: i32) -> (i32, i32) {
    %c0_i32 = arith.constant 0 : i32
    %c0_i32_0 = arith.constant 0 : i32
    return %arg0, %c0_i32 : i32, i32
  }
}

module attributes {stable_mosaic.version = 11 : i64} {
  func.func @kernel(%arg0: i32, %arg1: memref<256x8xbf16, #tpu.memory_space<vmem>>, %arg2: memref<8x32xbf16, #tpu.memory_space<vmem>>, %arg3: memref<1x32xf32, #tpu.memory_space<vmem>>, %arg4: memref<256x32xbf16, #tpu.memory_space<vmem>>, %arg5: memref<256x32xbf16, #tpu.memory_space<vmem>>) attributes {dimension_semantics = [#tpu.dimension_semantics<parallel>], iteration_bounds = array<i64: 2>, scalar_prefetch = 0 : i64, scratch_operands = 0 : i64, tpu.core_type = #tpu.core_type<tc>, window_params = [{transform_indices = @transform_0, window_bounds = array<i64: 256, 8>}, {pipeline_mode = #tpu.pipeline_mode<synchronous>, transform_indices = @transform_1, window_bounds = array<i64: 8, 32>}, {pipeline_mode = #tpu.pipeline_mode<synchronous>, transform_indices = @transform_2, window_bounds = array<i64: 1, 32>}, {transform_indices = @transform_3, window_bounds = array<i64: 256, 32>}, {transform_indices = @transform_4, window_bounds = array<i64: 256, 32>}]} {
    %c0 = arith.constant 0 : index
    %c0_0 = arith.constant 0 : index
    %0 = vector.load %arg1[%c0, %c0_0] : memref<256x8xbf16, #tpu.memory_space<vmem>>, vector<256x8xbf16>
    %c0_1 = arith.constant 0 : index
    %c0_2 = arith.constant 0 : index
    %1 = vector.load %arg2[%c0_1, %c0_2] : memref<8x32xbf16, #tpu.memory_space<vmem>>, vector<8x32xbf16>
    %cst = arith.constant dense<0.000000e+00> : vector<256x32xf32>
    %2 = tpu.matmul %0, %1, %cst {dimension_numbers = #tpu.dot_dimension_numbers<[1], [0], [0], [1], [0, 0, 1, 1], [], []>} : vector<256x8xbf16>, vector<8x32xbf16>, vector<256x32xf32> -> vector<256x32xf32>
    %c0_3 = arith.constant 0 : index
    %c0_4 = arith.constant 0 : index
    %3 = vector.load %arg3[%c0_3, %c0_4] : memref<1x32xf32, #tpu.memory_space<vmem>>, vector<1x32xf32>
    %4 = vector.broadcast %3 : vector<1x32xf32> to vector<256x32xf32>
    %5 = arith.addf %2, %4 : vector<256x32xf32>
    %cst_5 = arith.constant 0.000000e+00 : f32
    %6 = vector.broadcast %cst_5 : f32 to vector<256x32xf32>
    %7 = arith.maximumf %5, %6 : vector<256x32xf32>
    %c0_6 = arith.constant 0 : index
    %c0_7 = arith.constant 0 : index
    %8 = vector.load %arg4[%c0_6, %c0_7] : memref<256x32xbf16, #tpu.memory_space<vmem>>, vector<256x32xbf16>
    %9 = arith.extf %8 : vector<256x32xbf16> to vector<256x32xf32>
    %10 = arith.addf %7, %9 : vector<256x32xf32>
    %cst_8 = arith.constant 0.000000e+00 : f32
    %11 = vector.broadcast %cst_8 : f32 to vector<256x32xf32>
    %12 = arith.maximumf %10, %11 : vector<256x32xf32>
    %13 = arith.truncf %12 : vector<256x32xf32> to vector<256x32xbf16>
    %c0_9 = arith.constant 0 : index
    %c0_10 = arith.constant 0 : index
    %14 = vector.load %arg5[%c0_9, %c0_10] : memref<256x32xbf16, #tpu.memory_space<vmem>>, vector<256x32xbf16>
    tpu.vector_store %arg5[%c0_9, %c0_10], %13 {strides = array<i32>} : memref<256x32xbf16, #tpu.memory_space<vmem>>, vector<256x32xbf16>,
    return
  }
  func.func @transform_0(%arg0: i32) -> (i32, i32) {
    %c0_i32 = arith.constant 0 : i32
    %c0_i32_0 = arith.constant 0 : i32
    return %arg0, %c0_i32 : i32, i32
  }
  func.func @transform_1(%arg0: i32) -> (i32, i32) {
    %c0_i32 = arith.constant 0 : i32
    %c0_i32_0 = arith.constant 0 : i32
    %c0_i32_1 = arith.constant 0 : i32
    return %c0_i32, %c0_i32_0 : i32, i32
  }
  func.func @transform_2(%arg0: i32) -> (i32, i32) {
    %c0_i32 = arith.constant 0 : i32
    %c0_i32_0 = arith.constant 0 : i32
    %c0_i32_1 = arith.constant 0 : i32
    return %c0_i32, %c0_i32_0 : i32, i32
  }
  func.func @transform_3(%arg0: i32) -> (i32, i32) {
    %c0_i32 = arith.constant 0 : i32
    %c0_i32_0 = arith.constant 0 : i32
    return %arg0, %c0_i32 : i32, i32
  }
  func.func @transform_4(%arg0: i32) -> (i32, i32) {
    %c0_i32 = arith.constant 0 : i32
    %c0_i32_0 = arith.constant 0 : i32
    return %arg0, %c0_i32 : i32, i32
  }
}

module attributes {stable_mosaic.version = 11 : i64} {
  func.func @kernel(%arg0: i32, %arg1: memref<128x144xbf16, #tpu.memory_space<vmem>>, %arg2: memref<144x16xbf16, #tpu.memory_space<vmem>>, %arg3: memref<1x16xf32, #tpu.memory_space<vmem>>, %arg4: memref<128x16xbf16, #tpu.memory_space<vmem>>) attributes {dimension_semantics = [#tpu.dimension_semantics<parallel>], iteration_bounds = array<i64: 1>, scalar_prefetch = 0 : i64, scratch_operands = 0 : i64, tpu.core_type = #tpu.core_type<tc>, window_params = [{transform_indices = @transform_0, window_bounds = array<i64: 128, 144>}, {pipeline_mode = #tpu.pipeline_mode<synchronous>, transform_indices = @transform_1, window_bounds = array<i64: 144, 16>}, {pipeline_mode = #tpu.pipeline_mode<synchronous>, transform_indices = @transform_2, window_bounds = array<i64: 1, 16>}, {transform_indices = @transform_3, window_bounds = array<i64: 128, 16>}]} {
    %c0 = arith.constant 0 : index
    %c0_0 = arith.constant 0 : index
    %0 = vector.load %arg1[%c0, %c0_0] : memref<128x144xbf16, #tpu.memory_space<vmem>>, vector<128x144xbf16>
    %c0_1 = arith.constant 0 : index
    %c0_2 = arith.constant 0 : index
    %1 = vector.load %arg2[%c0_1, %c0_2] : memref<144x16xbf16, #tpu.memory_space<vmem>>, vector<144x16xbf16>
    %cst = arith.constant dense<0.000000e+00> : vector<128x16xf32>
    %2 = tpu.matmul %0, %1, %cst {dimension_numbers = #tpu.dot_dimension_numbers<[1], [0], [0], [1], [0, 0, 1, 1], [], []>} : vector<128x144xbf16>, vector<144x16xbf16>, vector<128x16xf32> -> vector<128x16xf32>
    %c0_3 = arith.constant 0 : index
    %c0_4 = arith.constant 0 : index
    %3 = vector.load %arg3[%c0_3, %c0_4] : memref<1x16xf32, #tpu.memory_space<vmem>>, vector<1x16xf32>
    %4 = vector.broadcast %3 : vector<1x16xf32> to vector<128x16xf32>
    %5 = arith.addf %2, %4 : vector<128x16xf32>
    %cst_5 = arith.constant 0.000000e+00 : f32
    %6 = vector.broadcast %cst_5 : f32 to vector<128x16xf32>
    %7 = arith.maximumf %5, %6 : vector<128x16xf32>
    %8 = arith.truncf %7 : vector<128x16xf32> to vector<128x16xbf16>
    %c0_6 = arith.constant 0 : index
    %c0_7 = arith.constant 0 : index
    %9 = vector.load %arg4[%c0_6, %c0_7] : memref<128x16xbf16, #tpu.memory_space<vmem>>, vector<128x16xbf16>
    tpu.vector_store %arg4[%c0_6, %c0_7], %8 {strides = array<i32>} : memref<128x16xbf16, #tpu.memory_space<vmem>>, vector<128x16xbf16>,
    return
  }
  func.func @transform_0(%arg0: i32) -> (i32, i32) {
    %c0_i32 = arith.constant 0 : i32
    %c0_i32_0 = arith.constant 0 : i32
    return %arg0, %c0_i32 : i32, i32
  }
  func.func @transform_1(%arg0: i32) -> (i32, i32) {
    %c0_i32 = arith.constant 0 : i32
    %c0_i32_0 = arith.constant 0 : i32
    %c0_i32_1 = arith.constant 0 : i32
    return %c0_i32, %c0_i32_0 : i32, i32
  }
  func.func @transform_2(%arg0: i32) -> (i32, i32) {
    %c0_i32 = arith.constant 0 : i32
    %c0_i32_0 = arith.constant 0 : i32
    %c0_i32_1 = arith.constant 0 : i32
    return %c0_i32, %c0_i32_0 : i32, i32
  }
  func.func @transform_3(%arg0: i32) -> (i32, i32) {
    %c0_i32 = arith.constant 0 : i32
    %c0_i32_0 = arith.constant 0 : i32
    return %arg0, %c0_i32 : i32, i32
  }
}

module attributes {stable_mosaic.version = 11 : i64} {
  func.func @kernel(%arg0: i32, %arg1: memref<128x32xbf16, #tpu.memory_space<vmem>>, %arg2: memref<32x64xbf16, #tpu.memory_space<vmem>>, %arg3: memref<1x64xf32, #tpu.memory_space<vmem>>, %arg4: memref<128x64xbf16, #tpu.memory_space<vmem>>) attributes {dimension_semantics = [#tpu.dimension_semantics<parallel>], iteration_bounds = array<i64: 1>, scalar_prefetch = 0 : i64, scratch_operands = 0 : i64, tpu.core_type = #tpu.core_type<tc>, window_params = [{transform_indices = @transform_0, window_bounds = array<i64: 128, 32>}, {pipeline_mode = #tpu.pipeline_mode<synchronous>, transform_indices = @transform_1, window_bounds = array<i64: 32, 64>}, {pipeline_mode = #tpu.pipeline_mode<synchronous>, transform_indices = @transform_2, window_bounds = array<i64: 1, 64>}, {transform_indices = @transform_3, window_bounds = array<i64: 128, 64>}]} {
    %c0 = arith.constant 0 : index
    %c0_0 = arith.constant 0 : index
    %0 = vector.load %arg1[%c0, %c0_0] : memref<128x32xbf16, #tpu.memory_space<vmem>>, vector<128x32xbf16>
    %c0_1 = arith.constant 0 : index
    %c0_2 = arith.constant 0 : index
    %1 = vector.load %arg2[%c0_1, %c0_2] : memref<32x64xbf16, #tpu.memory_space<vmem>>, vector<32x64xbf16>
    %cst = arith.constant dense<0.000000e+00> : vector<128x64xf32>
    %2 = tpu.matmul %0, %1, %cst {dimension_numbers = #tpu.dot_dimension_numbers<[1], [0], [0], [1], [0, 0, 1, 1], [], []>} : vector<128x32xbf16>, vector<32x64xbf16>, vector<128x64xf32> -> vector<128x64xf32>
    %c0_3 = arith.constant 0 : index
    %c0_4 = arith.constant 0 : index
    %3 = vector.load %arg3[%c0_3, %c0_4] : memref<1x64xf32, #tpu.memory_space<vmem>>, vector<1x64xf32>
    %4 = vector.broadcast %3 : vector<1x64xf32> to vector<128x64xf32>
    %5 = arith.addf %2, %4 : vector<128x64xf32>
    %6 = arith.truncf %5 : vector<128x64xf32> to vector<128x64xbf16>
    %c0_5 = arith.constant 0 : index
    %c0_6 = arith.constant 0 : index
    %7 = vector.load %arg4[%c0_5, %c0_6] : memref<128x64xbf16, #tpu.memory_space<vmem>>, vector<128x64xbf16>
    tpu.vector_store %arg4[%c0_5, %c0_6], %6 {strides = array<i32>} : memref<128x64xbf16, #tpu.memory_space<vmem>>, vector<128x64xbf16>,
    return
  }
  func.func @transform_0(%arg0: i32) -> (i32, i32) {
    %c0_i32 = arith.constant 0 : i32
    %c0_i32_0 = arith.constant 0 : i32
    return %arg0, %c0_i32 : i32, i32
  }
  func.func @transform_1(%arg0: i32) -> (i32, i32) {
    %c0_i32 = arith.constant 0 : i32
    %c0_i32_0 = arith.constant 0 : i32
    %c0_i32_1 = arith.constant 0 : i32
    return %c0_i32, %c0_i32_0 : i32, i32
  }
  func.func @transform_2(%arg0: i32) -> (i32, i32) {
    %c0_i32 = arith.constant 0 : i32
    %c0_i32_0 = arith.constant 0 : i32
    %c0_i32_1 = arith.constant 0 : i32
    return %c0_i32, %c0_i32_0 : i32, i32
  }
  func.func @transform_3(%arg0: i32) -> (i32, i32) {
    %c0_i32 = arith.constant 0 : i32
    %c0_i32_0 = arith.constant 0 : i32
    return %arg0, %c0_i32 : i32, i32
  }
}

module attributes {stable_mosaic.version = 11 : i64} {
  func.func @kernel(%arg0: i32, %arg1: memref<128x16xbf16, #tpu.memory_space<vmem>>, %arg2: memref<16x64xbf16, #tpu.memory_space<vmem>>, %arg3: memref<1x64xf32, #tpu.memory_space<vmem>>, %arg4: memref<128x64xbf16, #tpu.memory_space<vmem>>, %arg5: memref<128x64xbf16, #tpu.memory_space<vmem>>) attributes {dimension_semantics = [#tpu.dimension_semantics<parallel>], iteration_bounds = array<i64: 1>, scalar_prefetch = 0 : i64, scratch_operands = 0 : i64, tpu.core_type = #tpu.core_type<tc>, window_params = [{transform_indices = @transform_0, window_bounds = array<i64: 128, 16>}, {pipeline_mode = #tpu.pipeline_mode<synchronous>, transform_indices = @transform_1, window_bounds = array<i64: 16, 64>}, {pipeline_mode = #tpu.pipeline_mode<synchronous>, transform_indices = @transform_2, window_bounds = array<i64: 1, 64>}, {transform_indices = @transform_3, window_bounds = array<i64: 128, 64>}, {transform_indices = @transform_4, window_bounds = array<i64: 128, 64>}]} {
    %c0 = arith.constant 0 : index
    %c0_0 = arith.constant 0 : index
    %0 = vector.load %arg1[%c0, %c0_0] : memref<128x16xbf16, #tpu.memory_space<vmem>>, vector<128x16xbf16>
    %c0_1 = arith.constant 0 : index
    %c0_2 = arith.constant 0 : index
    %1 = vector.load %arg2[%c0_1, %c0_2] : memref<16x64xbf16, #tpu.memory_space<vmem>>, vector<16x64xbf16>
    %cst = arith.constant dense<0.000000e+00> : vector<128x64xf32>
    %2 = tpu.matmul %0, %1, %cst {dimension_numbers = #tpu.dot_dimension_numbers<[1], [0], [0], [1], [0, 0, 1, 1], [], []>} : vector<128x16xbf16>, vector<16x64xbf16>, vector<128x64xf32> -> vector<128x64xf32>
    %c0_3 = arith.constant 0 : index
    %c0_4 = arith.constant 0 : index
    %3 = vector.load %arg3[%c0_3, %c0_4] : memref<1x64xf32, #tpu.memory_space<vmem>>, vector<1x64xf32>
    %4 = vector.broadcast %3 : vector<1x64xf32> to vector<128x64xf32>
    %5 = arith.addf %2, %4 : vector<128x64xf32>
    %cst_5 = arith.constant 0.000000e+00 : f32
    %6 = vector.broadcast %cst_5 : f32 to vector<128x64xf32>
    %7 = arith.maximumf %5, %6 : vector<128x64xf32>
    %c0_6 = arith.constant 0 : index
    %c0_7 = arith.constant 0 : index
    %8 = vector.load %arg4[%c0_6, %c0_7] : memref<128x64xbf16, #tpu.memory_space<vmem>>, vector<128x64xbf16>
    %9 = arith.extf %8 : vector<128x64xbf16> to vector<128x64xf32>
    %10 = arith.addf %7, %9 : vector<128x64xf32>
    %cst_8 = arith.constant 0.000000e+00 : f32
    %11 = vector.broadcast %cst_8 : f32 to vector<128x64xf32>
    %12 = arith.maximumf %10, %11 : vector<128x64xf32>
    %13 = arith.truncf %12 : vector<128x64xf32> to vector<128x64xbf16>
    %c0_9 = arith.constant 0 : index
    %c0_10 = arith.constant 0 : index
    %14 = vector.load %arg5[%c0_9, %c0_10] : memref<128x64xbf16, #tpu.memory_space<vmem>>, vector<128x64xbf16>
    tpu.vector_store %arg5[%c0_9, %c0_10], %13 {strides = array<i32>} : memref<128x64xbf16, #tpu.memory_space<vmem>>, vector<128x64xbf16>,
    return
  }
  func.func @transform_0(%arg0: i32) -> (i32, i32) {
    %c0_i32 = arith.constant 0 : i32
    %c0_i32_0 = arith.constant 0 : i32
    return %arg0, %c0_i32 : i32, i32
  }
  func.func @transform_1(%arg0: i32) -> (i32, i32) {
    %c0_i32 = arith.constant 0 : i32
    %c0_i32_0 = arith.constant 0 : i32
    %c0_i32_1 = arith.constant 0 : i32
    return %c0_i32, %c0_i32_0 : i32, i32
  }
  func.func @transform_2(%arg0: i32) -> (i32, i32) {
    %c0_i32 = arith.constant 0 : i32
    %c0_i32_0 = arith.constant 0 : i32
    %c0_i32_1 = arith.constant 0 : i32
    return %c0_i32, %c0_i32_0 : i32, i32
  }
  func.func @transform_3(%arg0: i32) -> (i32, i32) {
    %c0_i32 = arith.constant 0 : i32
    %c0_i32_0 = arith.constant 0 : i32
    return %arg0, %c0_i32 : i32, i32
  }
  func.func @transform_4(%arg0: i32) -> (i32, i32) {
    %c0_i32 = arith.constant 0 : i32
    %c0_i32_0 = arith.constant 0 : i32
    return %arg0, %c0_i32 : i32, i32
  }
}

module attributes {stable_mosaic.version = 11 : i64} {
  func.func @kernel(%arg0: i32, %arg1: memref<128x64xbf16, #tpu.memory_space<vmem>>, %arg2: memref<64x16xbf16, #tpu.memory_space<vmem>>, %arg3: memref<1x16xf32, #tpu.memory_space<vmem>>, %arg4: memref<128x16xbf16, #tpu.memory_space<vmem>>) attributes {dimension_semantics = [#tpu.dimension_semantics<parallel>], iteration_bounds = array<i64: 1>, scalar_prefetch = 0 : i64, scratch_operands = 0 : i64, tpu.core_type = #tpu.core_type<tc>, window_params = [{transform_indices = @transform_0, window_bounds = array<i64: 128, 64>}, {pipeline_mode = #tpu.pipeline_mode<synchronous>, transform_indices = @transform_1, window_bounds = array<i64: 64, 16>}, {pipeline_mode = #tpu.pipeline_mode<synchronous>, transform_indices = @transform_2, window_bounds = array<i64: 1, 16>}, {transform_indices = @transform_3, window_bounds = array<i64: 128, 16>}]} {
    %c0 = arith.constant 0 : index
    %c0_0 = arith.constant 0 : index
    %0 = vector.load %arg1[%c0, %c0_0] : memref<128x64xbf16, #tpu.memory_space<vmem>>, vector<128x64xbf16>
    %c0_1 = arith.constant 0 : index
    %c0_2 = arith.constant 0 : index
    %1 = vector.load %arg2[%c0_1, %c0_2] : memref<64x16xbf16, #tpu.memory_space<vmem>>, vector<64x16xbf16>
    %cst = arith.constant dense<0.000000e+00> : vector<128x16xf32>
    %2 = tpu.matmul %0, %1, %cst {dimension_numbers = #tpu.dot_dimension_numbers<[1], [0], [0], [1], [0, 0, 1, 1], [], []>} : vector<128x64xbf16>, vector<64x16xbf16>, vector<128x16xf32> -> vector<128x16xf32>
    %c0_3 = arith.constant 0 : index
    %c0_4 = arith.constant 0 : index
    %3 = vector.load %arg3[%c0_3, %c0_4] : memref<1x16xf32, #tpu.memory_space<vmem>>, vector<1x16xf32>
    %4 = vector.broadcast %3 : vector<1x16xf32> to vector<128x16xf32>
    %5 = arith.addf %2, %4 : vector<128x16xf32>
    %cst_5 = arith.constant 0.000000e+00 : f32
    %6 = vector.broadcast %cst_5 : f32 to vector<128x16xf32>
    %7 = arith.maximumf %5, %6 : vector<128x16xf32>
    %8 = arith.truncf %7 : vector<128x16xf32> to vector<128x16xbf16>
    %c0_6 = arith.constant 0 : index
    %c0_7 = arith.constant 0 : index
    %9 = vector.load %arg4[%c0_6, %c0_7] : memref<128x16xbf16, #tpu.memory_space<vmem>>, vector<128x16xbf16>
    tpu.vector_store %arg4[%c0_6, %c0_7], %8 {strides = array<i32>} : memref<128x16xbf16, #tpu.memory_space<vmem>>, vector<128x16xbf16>,
    return
  }
  func.func @transform_0(%arg0: i32) -> (i32, i32) {
    %c0_i32 = arith.constant 0 : i32
    %c0_i32_0 = arith.constant 0 : i32
    return %arg0, %c0_i32 : i32, i32
  }
  func.func @transform_1(%arg0: i32) -> (i32, i32) {
    %c0_i32 = arith.constant 0 : i32
    %c0_i32_0 = arith.constant 0 : i32
    %c0_i32_1 = arith.constant 0 : i32
    return %c0_i32, %c0_i32_0 : i32, i32
  }
  func.func @transform_2(%arg0: i32) -> (i32, i32) {
    %c0_i32 = arith.constant 0 : i32
    %c0_i32_0 = arith.constant 0 : i32
    %c0_i32_1 = arith.constant 0 : i32
    return %c0_i32, %c0_i32_0 : i32, i32
  }
  func.func @transform_3(%arg0: i32) -> (i32, i32) {
    %c0_i32 = arith.constant 0 : i32
    %c0_i32_0 = arith.constant 0 : i32
    return %arg0, %c0_i32 : i32, i32
  }
}

module attributes {stable_mosaic.version = 11 : i64} {
  func.func @kernel(%arg0: i32, %arg1: memref<128x64xbf16, #tpu.memory_space<vmem>>, %arg2: memref<64x24xbf16, #tpu.memory_space<vmem>>, %arg3: memref<1x24xf32, #tpu.memory_space<vmem>>, %arg4: memref<128x24xbf16, #tpu.memory_space<vmem>>) attributes {dimension_semantics = [#tpu.dimension_semantics<parallel>], iteration_bounds = array<i64: 1>, scalar_prefetch = 0 : i64, scratch_operands = 0 : i64, tpu.core_type = #tpu.core_type<tc>, window_params = [{transform_indices = @transform_0, window_bounds = array<i64: 128, 64>}, {pipeline_mode = #tpu.pipeline_mode<synchronous>, transform_indices = @transform_1, window_bounds = array<i64: 64, 24>}, {pipeline_mode = #tpu.pipeline_mode<synchronous>, transform_indices = @transform_2, window_bounds = array<i64: 1, 24>}, {transform_indices = @transform_3, window_bounds = array<i64: 128, 24>}]} {
    %c0 = arith.constant 0 : index
    %c0_0 = arith.constant 0 : index
    %0 = vector.load %arg1[%c0, %c0_0] : memref<128x64xbf16, #tpu.memory_space<vmem>>, vector<128x64xbf16>
    %c0_1 = arith.constant 0 : index
    %c0_2 = arith.constant 0 : index
    %1 = vector.load %arg2[%c0_1, %c0_2] : memref<64x24xbf16, #tpu.memory_space<vmem>>, vector<64x24xbf16>
    %cst = arith.constant dense<0.000000e+00> : vector<128x24xf32>
    %2 = tpu.matmul %0, %1, %cst {dimension_numbers = #tpu.dot_dimension_numbers<[1], [0], [0], [1], [0, 0, 1, 1], [], []>} : vector<128x64xbf16>, vector<64x24xbf16>, vector<128x24xf32> -> vector<128x24xf32>
    %c0_3 = arith.constant 0 : index
    %c0_4 = arith.constant 0 : index
    %3 = vector.load %arg3[%c0_3, %c0_4] : memref<1x24xf32, #tpu.memory_space<vmem>>, vector<1x24xf32>
    %4 = vector.broadcast %3 : vector<1x24xf32> to vector<128x24xf32>
    %5 = arith.addf %2, %4 : vector<128x24xf32>
    %cst_5 = arith.constant 0.000000e+00 : f32
    %6 = vector.broadcast %cst_5 : f32 to vector<128x24xf32>
    %7 = arith.maximumf %5, %6 : vector<128x24xf32>
    %8 = arith.truncf %7 : vector<128x24xf32> to vector<128x24xbf16>
    %c0_6 = arith.constant 0 : index
    %c0_7 = arith.constant 0 : index
    %9 = vector.load %arg4[%c0_6, %c0_7] : memref<128x24xbf16, #tpu.memory_space<vmem>>, vector<128x24xbf16>
    tpu.vector_store %arg4[%c0_6, %c0_7], %8 {strides = array<i32>} : memref<128x24xbf16, #tpu.memory_space<vmem>>, vector<128x24xbf16>,
    return
  }
  func.func @transform_0(%arg0: i32) -> (i32, i32) {
    %c0_i32 = arith.constant 0 : i32
    %c0_i32_0 = arith.constant 0 : i32
    return %arg0, %c0_i32 : i32, i32
  }
  func.func @transform_1(%arg0: i32) -> (i32, i32) {
    %c0_i32 = arith.constant 0 : i32
    %c0_i32_0 = arith.constant 0 : i32
    %c0_i32_1 = arith.constant 0 : i32
    return %c0_i32, %c0_i32_0 : i32, i32
  }
  func.func @transform_2(%arg0: i32) -> (i32, i32) {
    %c0_i32 = arith.constant 0 : i32
    %c0_i32_0 = arith.constant 0 : i32
    %c0_i32_1 = arith.constant 0 : i32
    return %c0_i32, %c0_i32_0 : i32, i32
  }
  func.func @transform_3(%arg0: i32) -> (i32, i32) {
    %c0_i32 = arith.constant 0 : i32
    %c0_i32_0 = arith.constant 0 : i32
    return %arg0, %c0_i32 : i32, i32
  }
}

module attributes {stable_mosaic.version = 11 : i64} {
  func.func @kernel(%arg0: i32, %arg1: memref<32x216xbf16, #tpu.memory_space<vmem>>, %arg2: memref<216x24xbf16, #tpu.memory_space<vmem>>, %arg3: memref<1x24xf32, #tpu.memory_space<vmem>>, %arg4: memref<32x24xbf16, #tpu.memory_space<vmem>>) attributes {dimension_semantics = [#tpu.dimension_semantics<parallel>], iteration_bounds = array<i64: 1>, scalar_prefetch = 0 : i64, scratch_operands = 0 : i64, tpu.core_type = #tpu.core_type<tc>, window_params = [{transform_indices = @transform_0, window_bounds = array<i64: 32, 216>}, {pipeline_mode = #tpu.pipeline_mode<synchronous>, transform_indices = @transform_1, window_bounds = array<i64: 216, 24>}, {pipeline_mode = #tpu.pipeline_mode<synchronous>, transform_indices = @transform_2, window_bounds = array<i64: 1, 24>}, {transform_indices = @transform_3, window_bounds = array<i64: 32, 24>}]} {
    %c0 = arith.constant 0 : index
    %c0_0 = arith.constant 0 : index
    %0 = vector.load %arg1[%c0, %c0_0] : memref<32x216xbf16, #tpu.memory_space<vmem>>, vector<32x216xbf16>
    %c0_1 = arith.constant 0 : index
    %c0_2 = arith.constant 0 : index
    %1 = vector.load %arg2[%c0_1, %c0_2] : memref<216x24xbf16, #tpu.memory_space<vmem>>, vector<216x24xbf16>
    %cst = arith.constant dense<0.000000e+00> : vector<32x24xf32>
    %2 = tpu.matmul %0, %1, %cst {dimension_numbers = #tpu.dot_dimension_numbers<[1], [0], [0], [1], [0, 0, 1, 1], [], []>} : vector<32x216xbf16>, vector<216x24xbf16>, vector<32x24xf32> -> vector<32x24xf32>
    %c0_3 = arith.constant 0 : index
    %c0_4 = arith.constant 0 : index
    %3 = vector.load %arg3[%c0_3, %c0_4] : memref<1x24xf32, #tpu.memory_space<vmem>>, vector<1x24xf32>
    %4 = vector.broadcast %3 : vector<1x24xf32> to vector<32x24xf32>
    %5 = arith.addf %2, %4 : vector<32x24xf32>
    %cst_5 = arith.constant 0.000000e+00 : f32
    %6 = vector.broadcast %cst_5 : f32 to vector<32x24xf32>
    %7 = arith.maximumf %5, %6 : vector<32x24xf32>
    %8 = arith.truncf %7 : vector<32x24xf32> to vector<32x24xbf16>
    %c0_6 = arith.constant 0 : index
    %c0_7 = arith.constant 0 : index
    %9 = vector.load %arg4[%c0_6, %c0_7] : memref<32x24xbf16, #tpu.memory_space<vmem>>, vector<32x24xbf16>
    tpu.vector_store %arg4[%c0_6, %c0_7], %8 {strides = array<i32>} : memref<32x24xbf16, #tpu.memory_space<vmem>>, vector<32x24xbf16>,
    return
  }
  func.func @transform_0(%arg0: i32) -> (i32, i32) {
    %c0_i32 = arith.constant 0 : i32
    %c0_i32_0 = arith.constant 0 : i32
    return %arg0, %c0_i32 : i32, i32
  }
  func.func @transform_1(%arg0: i32) -> (i32, i32) {
    %c0_i32 = arith.constant 0 : i32
    %c0_i32_0 = arith.constant 0 : i32
    %c0_i32_1 = arith.constant 0 : i32
    return %c0_i32, %c0_i32_0 : i32, i32
  }
  func.func @transform_2(%arg0: i32) -> (i32, i32) {
    %c0_i32 = arith.constant 0 : i32
    %c0_i32_0 = arith.constant 0 : i32
    %c0_i32_1 = arith.constant 0 : i32
    return %c0_i32, %c0_i32_0 : i32, i32
  }
  func.func @transform_3(%arg0: i32) -> (i32, i32) {
    %c0_i32 = arith.constant 0 : i32
    %c0_i32_0 = arith.constant 0 : i32
    return %arg0, %c0_i32 : i32, i32
  }
}

module attributes {stable_mosaic.version = 11 : i64} {
  func.func @kernel(%arg0: i32, %arg1: memref<32x64xbf16, #tpu.memory_space<vmem>>, %arg2: memref<64x96xbf16, #tpu.memory_space<vmem>>, %arg3: memref<1x96xf32, #tpu.memory_space<vmem>>, %arg4: memref<32x96xbf16, #tpu.memory_space<vmem>>) attributes {dimension_semantics = [#tpu.dimension_semantics<parallel>], iteration_bounds = array<i64: 1>, scalar_prefetch = 0 : i64, scratch_operands = 0 : i64, tpu.core_type = #tpu.core_type<tc>, window_params = [{transform_indices = @transform_0, window_bounds = array<i64: 32, 64>}, {pipeline_mode = #tpu.pipeline_mode<synchronous>, transform_indices = @transform_1, window_bounds = array<i64: 64, 96>}, {pipeline_mode = #tpu.pipeline_mode<synchronous>, transform_indices = @transform_2, window_bounds = array<i64: 1, 96>}, {transform_indices = @transform_3, window_bounds = array<i64: 32, 96>}]} {
    %c0 = arith.constant 0 : index
    %c0_0 = arith.constant 0 : index
    %0 = vector.load %arg1[%c0, %c0_0] : memref<32x64xbf16, #tpu.memory_space<vmem>>, vector<32x64xbf16>
    %c0_1 = arith.constant 0 : index
    %c0_2 = arith.constant 0 : index
    %1 = vector.load %arg2[%c0_1, %c0_2] : memref<64x96xbf16, #tpu.memory_space<vmem>>, vector<64x96xbf16>
    %cst = arith.constant dense<0.000000e+00> : vector<32x96xf32>
    %2 = tpu.matmul %0, %1, %cst {dimension_numbers = #tpu.dot_dimension_numbers<[1], [0], [0], [1], [0, 0, 1, 1], [], []>} : vector<32x64xbf16>, vector<64x96xbf16>, vector<32x96xf32> -> vector<32x96xf32>
    %c0_3 = arith.constant 0 : index
    %c0_4 = arith.constant 0 : index
    %3 = vector.load %arg3[%c0_3, %c0_4] : memref<1x96xf32, #tpu.memory_space<vmem>>, vector<1x96xf32>
    %4 = vector.broadcast %3 : vector<1x96xf32> to vector<32x96xf32>
    %5 = arith.addf %2, %4 : vector<32x96xf32>
    %6 = arith.truncf %5 : vector<32x96xf32> to vector<32x96xbf16>
    %c0_5 = arith.constant 0 : index
    %c0_6 = arith.constant 0 : index
    %7 = vector.load %arg4[%c0_5, %c0_6] : memref<32x96xbf16, #tpu.memory_space<vmem>>, vector<32x96xbf16>
    tpu.vector_store %arg4[%c0_5, %c0_6], %6 {strides = array<i32>} : memref<32x96xbf16, #tpu.memory_space<vmem>>, vector<32x96xbf16>,
    return
  }
  func.func @transform_0(%arg0: i32) -> (i32, i32) {
    %c0_i32 = arith.constant 0 : i32
    %c0_i32_0 = arith.constant 0 : i32
    return %arg0, %c0_i32 : i32, i32
  }
  func.func @transform_1(%arg0: i32) -> (i32, i32) {
    %c0_i32 = arith.constant 0 : i32
    %c0_i32_0 = arith.constant 0 : i32
    %c0_i32_1 = arith.constant 0 : i32
    return %c0_i32, %c0_i32_0 : i32, i32
  }
  func.func @transform_2(%arg0: i32) -> (i32, i32) {
    %c0_i32 = arith.constant 0 : i32
    %c0_i32_0 = arith.constant 0 : i32
    %c0_i32_1 = arith.constant 0 : i32
    return %c0_i32, %c0_i32_0 : i32, i32
  }
  func.func @transform_3(%arg0: i32) -> (i32, i32) {
    %c0_i32 = arith.constant 0 : i32
    %c0_i32_0 = arith.constant 0 : i32
    return %arg0, %c0_i32 : i32, i32
  }
}

module attributes {stable_mosaic.version = 11 : i64} {
  func.func @kernel(%arg0: i32, %arg1: memref<32x24xbf16, #tpu.memory_space<vmem>>, %arg2: memref<24x96xbf16, #tpu.memory_space<vmem>>, %arg3: memref<1x96xf32, #tpu.memory_space<vmem>>, %arg4: memref<32x96xbf16, #tpu.memory_space<vmem>>, %arg5: memref<32x96xbf16, #tpu.memory_space<vmem>>) attributes {dimension_semantics = [#tpu.dimension_semantics<parallel>], iteration_bounds = array<i64: 1>, scalar_prefetch = 0 : i64, scratch_operands = 0 : i64, tpu.core_type = #tpu.core_type<tc>, window_params = [{transform_indices = @transform_0, window_bounds = array<i64: 32, 24>}, {pipeline_mode = #tpu.pipeline_mode<synchronous>, transform_indices = @transform_1, window_bounds = array<i64: 24, 96>}, {pipeline_mode = #tpu.pipeline_mode<synchronous>, transform_indices = @transform_2, window_bounds = array<i64: 1, 96>}, {transform_indices = @transform_3, window_bounds = array<i64: 32, 96>}, {transform_indices = @transform_4, window_bounds = array<i64: 32, 96>}]} {
    %c0 = arith.constant 0 : index
    %c0_0 = arith.constant 0 : index
    %0 = vector.load %arg1[%c0, %c0_0] : memref<32x24xbf16, #tpu.memory_space<vmem>>, vector<32x24xbf16>
    %c0_1 = arith.constant 0 : index
    %c0_2 = arith.constant 0 : index
    %1 = vector.load %arg2[%c0_1, %c0_2] : memref<24x96xbf16, #tpu.memory_space<vmem>>, vector<24x96xbf16>
    %cst = arith.constant dense<0.000000e+00> : vector<32x96xf32>
    %2 = tpu.matmul %0, %1, %cst {dimension_numbers = #tpu.dot_dimension_numbers<[1], [0], [0], [1], [0, 0, 1, 1], [], []>} : vector<32x24xbf16>, vector<24x96xbf16>, vector<32x96xf32> -> vector<32x96xf32>
    %c0_3 = arith.constant 0 : index
    %c0_4 = arith.constant 0 : index
    %3 = vector.load %arg3[%c0_3, %c0_4] : memref<1x96xf32, #tpu.memory_space<vmem>>, vector<1x96xf32>
    %4 = vector.broadcast %3 : vector<1x96xf32> to vector<32x96xf32>
    %5 = arith.addf %2, %4 : vector<32x96xf32>
    %cst_5 = arith.constant 0.000000e+00 : f32
    %6 = vector.broadcast %cst_5 : f32 to vector<32x96xf32>
    %7 = arith.maximumf %5, %6 : vector<32x96xf32>
    %c0_6 = arith.constant 0 : index
    %c0_7 = arith.constant 0 : index
    %8 = vector.load %arg4[%c0_6, %c0_7] : memref<32x96xbf16, #tpu.memory_space<vmem>>, vector<32x96xbf16>
    %9 = arith.extf %8 : vector<32x96xbf16> to vector<32x96xf32>
    %10 = arith.addf %7, %9 : vector<32x96xf32>
    %cst_8 = arith.constant 0.000000e+00 : f32
    %11 = vector.broadcast %cst_8 : f32 to vector<32x96xf32>
    %12 = arith.maximumf %10, %11 : vector<32x96xf32>
    %13 = arith.truncf %12 : vector<32x96xf32> to vector<32x96xbf16>
    %c0_9 = arith.constant 0 : index
    %c0_10 = arith.constant 0 : index
    %14 = vector.load %arg5[%c0_9, %c0_10] : memref<32x96xbf16, #tpu.memory_space<vmem>>, vector<32x96xbf16>
    tpu.vector_store %arg5[%c0_9, %c0_10], %13 {strides = array<i32>} : memref<32x96xbf16, #tpu.memory_space<vmem>>, vector<32x96xbf16>,
    return
  }
  func.func @transform_0(%arg0: i32) -> (i32, i32) {
    %c0_i32 = arith.constant 0 : i32
    %c0_i32_0 = arith.constant 0 : i32
    return %arg0, %c0_i32 : i32, i32
  }
  func.func @transform_1(%arg0: i32) -> (i32, i32) {
    %c0_i32 = arith.constant 0 : i32
    %c0_i32_0 = arith.constant 0 : i32
    %c0_i32_1 = arith.constant 0 : i32
    return %c0_i32, %c0_i32_0 : i32, i32
  }
  func.func @transform_2(%arg0: i32) -> (i32, i32) {
    %c0_i32 = arith.constant 0 : i32
    %c0_i32_0 = arith.constant 0 : i32
    %c0_i32_1 = arith.constant 0 : i32
    return %c0_i32, %c0_i32_0 : i32, i32
  }
  func.func @transform_3(%arg0: i32) -> (i32, i32) {
    %c0_i32 = arith.constant 0 : i32
    %c0_i32_0 = arith.constant 0 : i32
    return %arg0, %c0_i32 : i32, i32
  }
  func.func @transform_4(%arg0: i32) -> (i32, i32) {
    %c0_i32 = arith.constant 0 : i32
    %c0_i32_0 = arith.constant 0 : i32
    return %arg0, %c0_i32 : i32, i32
  }
}

module attributes {stable_mosaic.version = 11 : i64} {
  func.func @kernel(%arg0: i32, %arg1: memref<32x96xbf16, #tpu.memory_space<vmem>>, %arg2: memref<96x24xbf16, #tpu.memory_space<vmem>>, %arg3: memref<1x24xf32, #tpu.memory_space<vmem>>, %arg4: memref<32x24xbf16, #tpu.memory_space<vmem>>) attributes {dimension_semantics = [#tpu.dimension_semantics<parallel>], iteration_bounds = array<i64: 1>, scalar_prefetch = 0 : i64, scratch_operands = 0 : i64, tpu.core_type = #tpu.core_type<tc>, window_params = [{transform_indices = @transform_0, window_bounds = array<i64: 32, 96>}, {pipeline_mode = #tpu.pipeline_mode<synchronous>, transform_indices = @transform_1, window_bounds = array<i64: 96, 24>}, {pipeline_mode = #tpu.pipeline_mode<synchronous>, transform_indices = @transform_2, window_bounds = array<i64: 1, 24>}, {transform_indices = @transform_3, window_bounds = array<i64: 32, 24>}]} {
    %c0 = arith.constant 0 : index
    %c0_0 = arith.constant 0 : index
    %0 = vector.load %arg1[%c0, %c0_0] : memref<32x96xbf16, #tpu.memory_space<vmem>>, vector<32x96xbf16>
    %c0_1 = arith.constant 0 : index
    %c0_2 = arith.constant 0 : index
    %1 = vector.load %arg2[%c0_1, %c0_2] : memref<96x24xbf16, #tpu.memory_space<vmem>>, vector<96x24xbf16>
    %cst = arith.constant dense<0.000000e+00> : vector<32x24xf32>
    %2 = tpu.matmul %0, %1, %cst {dimension_numbers = #tpu.dot_dimension_numbers<[1], [0], [0], [1], [0, 0, 1, 1], [], []>} : vector<32x96xbf16>, vector<96x24xbf16>, vector<32x24xf32> -> vector<32x24xf32>
    %c0_3 = arith.constant 0 : index
    %c0_4 = arith.constant 0 : index
    %3 = vector.load %arg3[%c0_3, %c0_4] : memref<1x24xf32, #tpu.memory_space<vmem>>, vector<1x24xf32>
    %4 = vector.broadcast %3 : vector<1x24xf32> to vector<32x24xf32>
    %5 = arith.addf %2, %4 : vector<32x24xf32>
    %cst_5 = arith.constant 0.000000e+00 : f32
    %6 = vector.broadcast %cst_5 : f32 to vector<32x24xf32>
    %7 = arith.maximumf %5, %6 : vector<32x24xf32>
    %8 = arith.truncf %7 : vector<32x24xf32> to vector<32x24xbf16>
    %c0_6 = arith.constant 0 : index
    %c0_7 = arith.constant 0 : index
    %9 = vector.load %arg4[%c0_6, %c0_7] : memref<32x24xbf16, #tpu.memory_space<vmem>>, vector<32x24xbf16>
    tpu.vector_store %arg4[%c0_6, %c0_7], %8 {strides = array<i32>} : memref<32x24xbf16, #tpu.memory_space<vmem>>, vector<32x24xbf16>,
    return
  }
  func.func @transform_0(%arg0: i32) -> (i32, i32) {
    %c0_i32 = arith.constant 0 : i32
    %c0_i32_0 = arith.constant 0 : i32
    return %arg0, %c0_i32 : i32, i32
  }
  func.func @transform_1(%arg0: i32) -> (i32, i32) {
    %c0_i32 = arith.constant 0 : i32
    %c0_i32_0 = arith.constant 0 : i32
    %c0_i32_1 = arith.constant 0 : i32
    return %c0_i32, %c0_i32_0 : i32, i32
  }
  func.func @transform_2(%arg0: i32) -> (i32, i32) {
    %c0_i32 = arith.constant 0 : i32
    %c0_i32_0 = arith.constant 0 : i32
    %c0_i32_1 = arith.constant 0 : i32
    return %c0_i32, %c0_i32_0 : i32, i32
  }
  func.func @transform_3(%arg0: i32) -> (i32, i32) {
    %c0_i32 = arith.constant 0 : i32
    %c0_i32_0 = arith.constant 0 : i32
    return %arg0, %c0_i32 : i32, i32
  }
}

module attributes {stable_mosaic.version = 11 : i64} {
  func.func @kernel(%arg0: i32, %arg1: memref<32x864xbf16, #tpu.memory_space<vmem>>, %arg2: memref<864x18xbf16, #tpu.memory_space<vmem>>, %arg3: memref<1x18xf32, #tpu.memory_space<vmem>>, %arg4: memref<32x18xbf16, #tpu.memory_space<vmem>>) attributes {dimension_semantics = [#tpu.dimension_semantics<parallel>], iteration_bounds = array<i64: 1>, scalar_prefetch = 0 : i64, scratch_operands = 0 : i64, tpu.core_type = #tpu.core_type<tc>, window_params = [{transform_indices = @transform_0, window_bounds = array<i64: 32, 864>}, {pipeline_mode = #tpu.pipeline_mode<synchronous>, transform_indices = @transform_1, window_bounds = array<i64: 864, 18>}, {pipeline_mode = #tpu.pipeline_mode<synchronous>, transform_indices = @transform_2, window_bounds = array<i64: 1, 18>}, {transform_indices = @transform_3, window_bounds = array<i64: 32, 18>}]} {
    %c0 = arith.constant 0 : index
    %c0_0 = arith.constant 0 : index
    %0 = vector.load %arg1[%c0, %c0_0] : memref<32x864xbf16, #tpu.memory_space<vmem>>, vector<32x864xbf16>
    %c0_1 = arith.constant 0 : index
    %c0_2 = arith.constant 0 : index
    %1 = vector.load %arg2[%c0_1, %c0_2] : memref<864x18xbf16, #tpu.memory_space<vmem>>, vector<864x18xbf16>
    %cst = arith.constant dense<0.000000e+00> : vector<32x18xf32>
    %2 = tpu.matmul %0, %1, %cst {dimension_numbers = #tpu.dot_dimension_numbers<[1], [0], [0], [1], [0, 0, 1, 1], [], []>} : vector<32x864xbf16>, vector<864x18xbf16>, vector<32x18xf32> -> vector<32x18xf32>
    %c0_3 = arith.constant 0 : index
    %c0_4 = arith.constant 0 : index
    %3 = vector.load %arg3[%c0_3, %c0_4] : memref<1x18xf32, #tpu.memory_space<vmem>>, vector<1x18xf32>
    %4 = vector.broadcast %3 : vector<1x18xf32> to vector<32x18xf32>
    %5 = arith.addf %2, %4 : vector<32x18xf32>
    %cst_5 = arith.constant 0.000000e+00 : f32
    %6 = vector.broadcast %cst_5 : f32 to vector<32x18xf32>
    %7 = arith.cmpf ogt, %5, %6 : vector<32x18xf32>
    %cst_6 = arith.constant 1.000000e-01 : f32
    %8 = vector.broadcast %cst_6 : f32 to vector<32x18xf32>
    %9 = arith.mulf %8, %5 : vector<32x18xf32>
    %10 = arith.select %7, %5, %9 : vector<32x18xi1>, vector<32x18xf32>
    %11 = arith.truncf %10 : vector<32x18xf32> to vector<32x18xbf16>
    %c0_7 = arith.constant 0 : index
    %c0_8 = arith.constant 0 : index
    %12 = vector.load %arg4[%c0_7, %c0_8] : memref<32x18xbf16, #tpu.memory_space<vmem>>, vector<32x18xbf16>
    tpu.vector_store %arg4[%c0_7, %c0_8], %11 {strides = array<i32>} : memref<32x18xbf16, #tpu.memory_space<vmem>>, vector<32x18xbf16>,
    return
  }
  func.func @transform_0(%arg0: i32) -> (i32, i32) {
    %c0_i32 = arith.constant 0 : i32
    %c0_i32_0 = arith.constant 0 : i32
    return %arg0, %c0_i32 : i32, i32
  }
  func.func @transform_1(%arg0: i32) -> (i32, i32) {
    %c0_i32 = arith.constant 0 : i32
    %c0_i32_0 = arith.constant 0 : i32
    %c0_i32_1 = arith.constant 0 : i32
    return %c0_i32, %c0_i32_0 : i32, i32
  }
  func.func @transform_2(%arg0: i32) -> (i32, i32) {
    %c0_i32 = arith.constant 0 : i32
    %c0_i32_0 = arith.constant 0 : i32
    %c0_i32_1 = arith.constant 0 : i32
    return %c0_i32, %c0_i32_0 : i32, i32
  }
  func.func @transform_3(%arg0: i32) -> (i32, i32) {
    %c0_i32 = arith.constant 0 : i32
    %c0_i32_0 = arith.constant 0 : i32
    return %arg0, %c0_i32 : i32, i32
  }
}

module attributes {stable_mosaic.version = 11 : i64} {
  func.func @kernel(%arg0: i32, %arg1: memref<32x384xbf16, #tpu.memory_space<vmem>>, %arg2: memref<384x128xbf16, #tpu.memory_space<vmem>>, %arg3: memref<1x128xf32, #tpu.memory_space<vmem>>, %arg4: memref<32x128xf32, #tpu.memory_space<vmem>>) attributes {dimension_semantics = [#tpu.dimension_semantics<parallel>], iteration_bounds = array<i64: 1>, scalar_prefetch = 0 : i64, scratch_operands = 0 : i64, tpu.core_type = #tpu.core_type<tc>, window_params = [{transform_indices = @transform_0, window_bounds = array<i64: 32, 384>}, {pipeline_mode = #tpu.pipeline_mode<synchronous>, transform_indices = @transform_1, window_bounds = array<i64: 384, 128>}, {pipeline_mode = #tpu.pipeline_mode<synchronous>, transform_indices = @transform_2, window_bounds = array<i64: 1, 128>}, {transform_indices = @transform_3, window_bounds = array<i64: 32, 128>}]} {
    %c0 = arith.constant 0 : index
    %c0_0 = arith.constant 0 : index
    %0 = vector.load %arg1[%c0, %c0_0] : memref<32x384xbf16, #tpu.memory_space<vmem>>, vector<32x384xbf16>
    %c0_1 = arith.constant 0 : index
    %c0_2 = arith.constant 0 : index
    %1 = vector.load %arg2[%c0_1, %c0_2] : memref<384x128xbf16, #tpu.memory_space<vmem>>, vector<384x128xbf16>
    %cst = arith.constant dense<0.000000e+00> : vector<32x128xf32>
    %2 = tpu.matmul %0, %1, %cst {dimension_numbers = #tpu.dot_dimension_numbers<[1], [0], [0], [1], [0, 0, 1, 1], [], []>} : vector<32x384xbf16>, vector<384x128xbf16>, vector<32x128xf32> -> vector<32x128xf32>
    %c0_3 = arith.constant 0 : index
    %c0_4 = arith.constant 0 : index
    %3 = vector.load %arg3[%c0_3, %c0_4] : memref<1x128xf32, #tpu.memory_space<vmem>>, vector<1x128xf32>
    %4 = vector.broadcast %3 : vector<1x128xf32> to vector<32x128xf32>
    %5 = arith.addf %2, %4 : vector<32x128xf32>
    %c0_5 = arith.constant 0 : index
    %c0_6 = arith.constant 0 : index
    %6 = vector.load %arg4[%c0_5, %c0_6] : memref<32x128xf32, #tpu.memory_space<vmem>>, vector<32x128xf32>
    tpu.vector_store %arg4[%c0_5, %c0_6], %5 {strides = array<i32>} : memref<32x128xf32, #tpu.memory_space<vmem>>, vector<32x128xf32>,
    return
  }
  func.func @transform_0(%arg0: i32) -> (i32, i32) {
    %c0_i32 = arith.constant 0 : i32
    %c0_i32_0 = arith.constant 0 : i32
    return %arg0, %c0_i32 : i32, i32
  }
  func.func @transform_1(%arg0: i32) -> (i32, i32) {
    %c0_i32 = arith.constant 0 : i32
    %c0_i32_0 = arith.constant 0 : i32
    %c0_i32_1 = arith.constant 0 : i32
    return %c0_i32, %c0_i32_0 : i32, i32
  }
  func.func @transform_2(%arg0: i32) -> (i32, i32) {
    %c0_i32 = arith.constant 0 : i32
    %c0_i32_0 = arith.constant 0 : i32
    %c0_i32_1 = arith.constant 0 : i32
    return %c0_i32, %c0_i32_0 : i32, i32
  }
  func.func @transform_3(%arg0: i32) -> (i32, i32) {
    %c0_i32 = arith.constant 0 : i32
    %c0_i32_0 = arith.constant 0 : i32
    return %arg0, %c0_i32 : i32, i32
  }
}

module attributes {stable_mosaic.version = 11 : i64} {
  func.func @kernel(%arg0: i32, %arg1: memref<32x864xbf16, #tpu.memory_space<vmem>>, %arg2: memref<864x128xbf16, #tpu.memory_space<vmem>>, %arg3: memref<1x128xf32, #tpu.memory_space<vmem>>, %arg4: memref<32x128xbf16, #tpu.memory_space<vmem>>) attributes {dimension_semantics = [#tpu.dimension_semantics<parallel>], iteration_bounds = array<i64: 1>, scalar_prefetch = 0 : i64, scratch_operands = 0 : i64, tpu.core_type = #tpu.core_type<tc>, window_params = [{transform_indices = @transform_0, window_bounds = array<i64: 32, 864>}, {pipeline_mode = #tpu.pipeline_mode<synchronous>, transform_indices = @transform_1, window_bounds = array<i64: 864, 128>}, {pipeline_mode = #tpu.pipeline_mode<synchronous>, transform_indices = @transform_2, window_bounds = array<i64: 1, 128>}, {transform_indices = @transform_3, window_bounds = array<i64: 32, 128>}]} {
    %c0 = arith.constant 0 : index
    %c0_0 = arith.constant 0 : index
    %0 = vector.load %arg1[%c0, %c0_0] : memref<32x864xbf16, #tpu.memory_space<vmem>>, vector<32x864xbf16>
    %c0_1 = arith.constant 0 : index
    %c0_2 = arith.constant 0 : index
    %1 = vector.load %arg2[%c0_1, %c0_2] : memref<864x128xbf16, #tpu.memory_space<vmem>>, vector<864x128xbf16>
    %cst = arith.constant dense<0.000000e+00> : vector<32x128xf32>
    %2 = tpu.matmul %0, %1, %cst {dimension_numbers = #tpu.dot_dimension_numbers<[1], [0], [0], [1], [0, 0, 1, 1], [], []>} : vector<32x864xbf16>, vector<864x128xbf16>, vector<32x128xf32> -> vector<32x128xf32>
    %c0_3 = arith.constant 0 : index
    %c0_4 = arith.constant 0 : index
    %3 = vector.load %arg3[%c0_3, %c0_4] : memref<1x128xf32, #tpu.memory_space<vmem>>, vector<1x128xf32>
    %4 = vector.broadcast %3 : vector<1x128xf32> to vector<32x128xf32>
    %5 = arith.addf %2, %4 : vector<32x128xf32>
    %6 = arith.truncf %5 : vector<32x128xf32> to vector<32x128xbf16>
    %c0_5 = arith.constant 0 : index
    %c0_6 = arith.constant 0 : index
    %7 = vector.load %arg4[%c0_5, %c0_6] : memref<32x128xbf16, #tpu.memory_space<vmem>>, vector<32x128xbf16>
    tpu.vector_store %arg4[%c0_5, %c0_6], %6 {strides = array<i32>} : memref<32x128xbf16, #tpu.memory_space<vmem>>, vector<32x128xbf16>,
    return
  }
  func.func @transform_0(%arg0: i32) -> (i32, i32) {
    %c0_i32 = arith.constant 0 : i32
    %c0_i32_0 = arith.constant 0 : i32
    return %arg0, %c0_i32 : i32, i32
  }
  func.func @transform_1(%arg0: i32) -> (i32, i32) {
    %c0_i32 = arith.constant 0 : i32
    %c0_i32_0 = arith.constant 0 : i32
    %c0_i32_1 = arith.constant 0 : i32
    return %c0_i32, %c0_i32_0 : i32, i32
  }
  func.func @transform_2(%arg0: i32) -> (i32, i32) {
    %c0_i32 = arith.constant 0 : i32
    %c0_i32_0 = arith.constant 0 : i32
    %c0_i32_1 = arith.constant 0 : i32
    return %c0_i32, %c0_i32_0 : i32, i32
  }
  func.func @transform_3(%arg0: i32) -> (i32, i32) {
    %c0_i32 = arith.constant 0 : i32
    %c0_i32_0 = arith.constant 0 : i32
    return %arg0, %c0_i32 : i32, i32
  }
}

</mosaic_0001>

<bundles_post_ra>
// kernel: small_encoder_forward.29
= control target key start
LH: loop header
LB: loop body
LE: loop exit
PB: predicated region body
PF: predicated region fallthrough
CT: control target
= control target key end

     0   :  { %s991_s12 = smov 0   ;;  %s1158_s0 = inlined_call_operand.vmem [shape: bf16[512,32], index: 0, kind: input, shape index: {}]   ;;  %s1159_s1 = inlined_call_operand.vmem [shape: bf16[32,8], index: 1, kind: input, shape index: {}]   ;;  %s1160_s2 = inlined_call_operand.vmem [shape: f32[1,8], index: 2, kind: input, shape index: {}]   ;;  %s1161_s3 = inlined_call_operand.vmem [shape: bf16[512,8], index: 3, kind: output, shape index: {}]  }
   0x1 LB: > { %s769_s13 = sadd.s32 4294967295, %s969_s12   ;;  %p773_p0 = scmp.ge.s32.totalorder %s969_s12, 1  ;;  %s969_s12 = sphi %s991_s12, %s13_s12  }
   0x2   : > { %p138_p1 = scmp.lt.s32.totalorder %s969_s12, 3 }
   0x4   : > { %p139_p2 = pnand %p773_p0, %p138_p1 }
   0x5   : > { %v945_v0 = vld [vmem:[%s1159_s1] sm:$0xff] (!%p139_p2)   ;;  %s774_s16 = sshll.u32 (!%p139_p2), %s769_s13, 5  ;;  %v946_v1 = vld [vmem:[%s1159_s1 + $0x8] sm:$0xff] (!%p139_p2)   ;;  %vm310_vm0 = vcmask (!%p139_p2), 261120   ;;  %vm680_vm1 = vcmask (!%p139_p2), 60416  }
   0x6   : > { %142 = sbr.rel (%p139_p2) target bundleno = 265 (0x109), region = 32  ;;  %p163_p3 = scmp.lt.s32.totalorder (!%p139_p2), %s774_s16, 63  ;;  %897 = vmatprep.subr.bf16.mxu0 (!%p139_p2), %v945_v0  ;;  %933 = vmatprep.subr.bf16.mxu1 (!%p139_p2), %v945_v0  ;;  %v1050_v18 = vld [vmem:[%s1160_s2] ss:$0 sm:$0xff] (!%p139_p2) }
   0x7   : > { %898 = vmatpush3.bf16.msra.mxu0 (!%p139_p2), %v945_v0  ;;  %935 = vmatpush3.bf16.msra.mxu1 (!%p139_p2), %v945_v0 }
   0x8   : > { %899 = vmatprep.subr.bf16.mxu0 (!%p139_p2), %v946_v1  ;;  %934 = vmatprep.subr.bf16.mxu1 (!%p139_p2), %v946_v1 }
   0xb   : > { %900 = vmatpush3.bf16.msra.mxu0 (!%p139_p2), %v946_v1  ;;  %936 = vmatpush3.bf16.msra.mxu1 (!%p139_p2), %v946_v1 }
   0xd   : > { %s1163_s16 = smov (!%p163_p3, %s774_s16), 63 }
   0xe   : > { %s775_s19 = sshll.u32 %s1163_s16, 2 }
   0xf   : > { %s1013_s22 = scalar_lea.vmem %s1158_s0, %s775_s19  ;;  %s1062_s27 = scalar_lea.vmem %s1161_s3, %s775_s19 }
  0x10   : > { %v947_v2 = vld [vmem:[%s1013_s22] sm:$0xff]   ;;  %v949_v4 = vld [vmem:[%s1013_s22 + $0x8] sm:$0xff]   ;;  %v951_v6 = vld [vmem:[%s1013_s22 + $0x10] sm:$0xff]  }
  0x11   : > { %v948_v3 = vld [vmem:[%s1013_s22 + $0x40] sm:$0xff]   ;;  %901 = vmatprep.mubr.msk.bf16.mxu0 %vm310_vm0, %v947_v2  ;;  %v950_v5 = vld [vmem:[%s1013_s22 + $0x48] sm:$0xff]   ;;  %v952_v7 = vld [vmem:[%s1013_s22 + $0x50] sm:$0xff]  }
  0x12   : > { %917 = vmatprep.mubr.msk.bf16.mxu1 %vm310_vm0, %v948_v3  ;;  %902 = vmatmul.mubr.msk.bf16.vlgmr.msra.gmra.mrb[0].mxu0 %vm310_vm0, %v949_v4  ;;  %v953_v8 = vld [vmem:[%s1013_s22 + $0x18] sm:$0xff]   ;;  %v955_v10 = vld [vmem:[%s1013_s22 + $0x20] sm:$0xff]   ;;  %v957_v12 = vld [vmem:[%s1013_s22 + $0x28] sm:$0xff]  }
  0x13   : > { %918 = vmatmul.mubr.msk.bf16.vlgmr.msra.gmra.mrb[0].mxu1 %vm310_vm0, %v950_v5  ;;  %905 = vmatprep.mubr.msk.bf16.mxu0 %vm310_vm0, %v951_v6  ;;  %v954_v9 = vld [vmem:[%s1013_s22 + $0x58] sm:$0xff]   ;;  %v956_v11 = vld [vmem:[%s1013_s22 + $0x60] sm:$0xff]   ;;  %v958_v13 = vld [vmem:[%s1013_s22 + $0x68] sm:$0xff]  }
  0x14   : > { %921 = vmatprep.mubr.msk.bf16.mxu1 %vm310_vm0, %v952_v7  ;;  %v959_v14 = vld [vmem:[%s1013_s22 + $0x30] sm:$0xff]   ;;  %v961_v16 = vld [vmem:[%s1013_s22 + $0x38] sm:$0xff]  }
  0x15   : > { %v960_v15 = vld [vmem:[%s1013_s22 + $0x70] sm:$0xff]   ;;  %v962_v17 = vld [vmem:[%s1013_s22 + $0x78] sm:$0xff]  }
  0x1a   : > { %906 = vmatmul.mubr.msk.bf16.gmra.mrb[4].mxu0 %vm310_vm0, %v953_v8 }
  0x1b   : > { %922 = vmatmul.mubr.msk.bf16.gmra.mrb[4].mxu1 %vm310_vm0, %v954_v9  ;;  %909 = vmatprep.mubr.msk.bf16.mxu0 %vm310_vm0, %v955_v10 }
  0x1c   : > { %925 = vmatprep.mubr.msk.bf16.mxu1 %vm310_vm0, %v956_v11 }
  0x22   : > { %910 = vmatmul.mubr.msk.bf16.gmra.mrb[8].mxu0 %vm310_vm0, %v957_v12 }
  0x23   : > { %926 = vmatmul.mubr.msk.bf16.gmra.mrb[8].mxu1 %vm310_vm0, %v958_v13  ;;  %913 = vmatprep.mubr.msk.bf16.mxu0 %vm310_vm0, %v959_v14 }
  0x24   : > { %929 = vmatprep.mubr.msk.bf16.mxu1 %vm310_vm0, %v960_v15 }
  0x2a   : > { %914 = vmatmul.mubr.msk.bf16.gmra.mrb[12].mxu0 %vm310_vm0, %v961_v16 }
  0x2b   : > { %930 = vmatmul.mubr.msk.bf16.gmra.mrb[12].mxu1 %vm310_vm0, %v962_v17 }
  0xe5   : > { %v903_v19 = vpop.f32.mrb[0].mxu0 }
  0xe6   : > { %v402_v20 = vadd.f32 %v903_v19, %v1050_v18  ;;  %v919_v21 = vpop.f32.mrb[0].mxu1  ;;  %v393_v22 = vpop.f32.mrb[1].mxu0 }
  0xe7   : > { %v466_v23 = vadd.f32 %v919_v21, %v1050_v18  ;;  %v394_v24 = vadd.f32 %v1050_v18, %v393_v22  ;;  %v457_v25 = vpop.f32.mrb[1].mxu1  ;;  %v904_v26 = vpop.f32.mrb[2].mxu0 }
  0xe8   : > { %v522_v27 = vmax.f32 %v402_v20, 0.0  ;;  %v458_v28 = vadd.f32 %v1050_v18, %v457_v25  ;;  %v405_v29 = vadd.f32 %v904_v26, %v1050_v18  ;;  %v920_v30 = vpop.f32.mrb[2].mxu1  ;;  %v396_v31 = vpop.f32.mrb[3].mxu0 }
  0xe9   : > { %v538_v32 = vmax.f32 %v466_v23, 0.0  ;;  %v520_v33 = vmax.f32 %v394_v24, 0.0  ;;  %v469_v34 = vadd.f32 %v920_v30, %v1050_v18  ;;  %v397_v35 = vadd.f32 %v1050_v18, %v396_v31  ;;  %v460_v36 = vpop.f32.mrb[3].mxu1 }
  0xea   : > { %v849_v37 = vpack.c.bf16 %v522_v27, %v522_v27  ;;  %v536_v38 = vmax.f32 %v458_v28, 0.0  ;;  %v523_v39 = vmax.f32 %v405_v29, 0.0  ;;  %v461_v40 = vadd.f32 %v1050_v18, %v460_v36 }
  0xeb   : > { %v865_v41 = vpack.c.bf16 %v538_v32, %v538_v32  ;;  %v847_v42 = vpack.c.bf16 %v520_v33, %v520_v33  ;;  %v539_v43 = vmax.f32 %v469_v34, 0.0  ;;  %v521_v44 = vmax.f32 %v397_v35, 0.0 }
  0xec   : > { %683 = vst.msk [vmem:[%s1062_s27 + $0x8] sm:$0xf] %vm680_vm1, %v849_v37  ;;  %v863_v45 = vpack.c.bf16 %v536_v38, %v536_v38  ;;  %v850_v46 = vpack.c.bf16 %v523_v39, %v523_v39  ;;  %v537_v47 = vmax.f32 %v461_v40, 0.0 }
  0xed   : > { %699 = vst.msk [vmem:[%s1062_s27 + $0x48] sm:$0xf] %vm680_vm1, %v865_v41  ;;  %681 = vst.msk [vmem:[%s1062_s27] sm:$0xf] %vm680_vm1, %v847_v42  ;;  %v866_v48 = vpack.c.bf16 %v539_v43, %v539_v43  ;;  %v848_v49 = vpack.c.bf16 %v521_v44, %v521_v44  ;;  %v907_v50 = vpop.f32.mrb[4].mxu0 }
  0xee   : > { %697 = vst.msk [vmem:[%s1062_s27 + $0x40] sm:$0xf] %vm680_vm1, %v863_v45  ;;  %684 = vst.msk [vmem:[%s1062_s27 + $0xc] sm:$0xf] %vm680_vm1, %v850_v46  ;;  %v864_v51 = vpack.c.bf16 %v537_v47, %v537_v47  ;;  %v418_v52 = vadd.f32 %v907_v50, %v1050_v18  ;;  %v923_v53 = vpop.f32.mrb[4].mxu1  ;;  %v409_v54 = vpop.f32.mrb[5].mxu0 }
  0xef   : > { %700 = vst.msk [vmem:[%s1062_s27 + $0x4c] sm:$0xf] %vm680_vm1, %v866_v48  ;;  %682 = vst.msk [vmem:[%s1062_s27 + $0x4] sm:$0xf] %vm680_vm1, %v848_v49  ;;  %v482_v55 = vadd.f32 %v923_v53, %v1050_v18  ;;  %v410_v56 = vadd.f32 %v1050_v18, %v409_v54  ;;  %v473_v57 = vpop.f32.mrb[5].mxu1  ;;  %v908_v58 = vpop.f32.mrb[6].mxu0 }
  0xf0   : > { %698 = vst.msk [vmem:[%s1062_s27 + $0x44] sm:$0xf] %vm680_vm1, %v864_v51  ;;  %v526_v59 = vmax.f32 %v418_v52, 0.0  ;;  %v474_v60 = vadd.f32 %v1050_v18, %v473_v57  ;;  %v421_v61 = vadd.f32 %v908_v58, %v1050_v18  ;;  %v924_v62 = vpop.f32.mrb[6].mxu1  ;;  %v412_v63 = vpop.f32.mrb[7].mxu0 }
  0xf1   : > { %v542_v0 = vmax.f32 %v482_v55, 0.0  ;;  %v524_v1 = vmax.f32 %v410_v56, 0.0  ;;  %v485_v2 = vadd.f32 %v924_v62, %v1050_v18  ;;  %v413_v3 = vadd.f32 %v1050_v18, %v412_v63  ;;  %v476_v4 = vpop.f32.mrb[7].mxu1 }
  0xf2   : > { %v853_v5 = vpack.c.bf16 %v526_v59, %v526_v59  ;;  %v540_v6 = vmax.f32 %v474_v60, 0.0  ;;  %v527_v7 = vmax.f32 %v421_v61, 0.0  ;;  %v477_v8 = vadd.f32 %v1050_v18, %v476_v4 }
  0xf3   : > { %v869_v9 = vpack.c.bf16 %v542_v0, %v542_v0  ;;  %v851_v10 = vpack.c.bf16 %v524_v1, %v524_v1  ;;  %v543_v11 = vmax.f32 %v485_v2, 0.0  ;;  %v525_v12 = vmax.f32 %v413_v3, 0.0 }
  0xf4   : > { %687 = vst.msk [vmem:[%s1062_s27 + $0x18] sm:$0xf] %vm680_vm1, %v853_v5  ;;  %v867_v13 = vpack.c.bf16 %v540_v6, %v540_v6  ;;  %v854_v14 = vpack.c.bf16 %v527_v7, %v527_v7  ;;  %v541_v15 = vmax.f32 %v477_v8, 0.0 }
  0xf5   : > { %703 = vst.msk [vmem:[%s1062_s27 + $0x58] sm:$0xf] %vm680_vm1, %v869_v9  ;;  %685 = vst.msk [vmem:[%s1062_s27 + $0x10] sm:$0xf] %vm680_vm1, %v851_v10  ;;  %v870_v16 = vpack.c.bf16 %v543_v11, %v543_v11  ;;  %v852_v17 = vpack.c.bf16 %v525_v12, %v525_v12  ;;  %v911_v19 = vpop.f32.mrb[8].mxu0 }
  0xf6   : > { %701 = vst.msk [vmem:[%s1062_s27 + $0x50] sm:$0xf] %vm680_vm1, %v867_v13  ;;  %688 = vst.msk [vmem:[%s1062_s27 + $0x1c] sm:$0xf] %vm680_vm1, %v854_v14  ;;  %v868_v20 = vpack.c.bf16 %v541_v15, %v541_v15  ;;  %v434_v21 = vadd.f32 %v911_v19, %v1050_v18  ;;  %v927_v22 = vpop.f32.mrb[8].mxu1  ;;  %v425_v23 = vpop.f32.mrb[9].mxu0 }
  0xf7   : > { %704 = vst.msk [vmem:[%s1062_s27 + $0x5c] sm:$0xf] %vm680_vm1, %v870_v16  ;;  %686 = vst.msk [vmem:[%s1062_s27 + $0x14] sm:$0xf] %vm680_vm1, %v852_v17  ;;  %v498_v24 = vadd.f32 %v927_v22, %v1050_v18  ;;  %v426_v25 = vadd.f32 %v1050_v18, %v425_v23  ;;  %v489_v26 = vpop.f32.mrb[9].mxu1  ;;  %v912_v27 = vpop.f32.mrb[10].mxu0 }
  0xf8   : > { %702 = vst.msk [vmem:[%s1062_s27 + $0x54] sm:$0xf] %vm680_vm1, %v868_v20  ;;  %v530_v28 = vmax.f32 %v434_v21, 0.0  ;;  %v490_v29 = vadd.f32 %v1050_v18, %v489_v26  ;;  %v437_v30 = vadd.f32 %v912_v27, %v1050_v18  ;;  %v928_v31 = vpop.f32.mrb[10].mxu1  ;;  %v428_v32 = vpop.f32.mrb[11].mxu0 }
  0xf9   : > { %v546_v33 = vmax.f32 %v498_v24, 0.0  ;;  %v528_v34 = vmax.f32 %v426_v25, 0.0  ;;  %v501_v35 = vadd.f32 %v928_v31, %v1050_v18  ;;  %v429_v36 = vadd.f32 %v1050_v18, %v428_v32  ;;  %v492_v37 = vpop.f32.mrb[11].mxu1 }
  0xfa   : > { %v857_v38 = vpack.c.bf16 %v530_v28, %v530_v28  ;;  %v544_v39 = vmax.f32 %v490_v29, 0.0  ;;  %v531_v40 = vmax.f32 %v437_v30, 0.0  ;;  %v493_v41 = vadd.f32 %v1050_v18, %v492_v37 }
  0xfb   : > { %v873_v42 = vpack.c.bf16 %v546_v33, %v546_v33  ;;  %v855_v43 = vpack.c.bf16 %v528_v34, %v528_v34  ;;  %v547_v44 = vmax.f32 %v501_v35, 0.0  ;;  %v529_v45 = vmax.f32 %v429_v36, 0.0 }
  0xfc   : > { %691 = vst.msk [vmem:[%s1062_s27 + $0x28] sm:$0xf] %vm680_vm1, %v857_v38  ;;  %v871_v46 = vpack.c.bf16 %v544_v39, %v544_v39  ;;  %v858_v47 = vpack.c.bf16 %v531_v40, %v531_v40  ;;  %v545_v48 = vmax.f32 %v493_v41, 0.0 }
  0xfd   : > { %707 = vst.msk [vmem:[%s1062_s27 + $0x68] sm:$0xf] %vm680_vm1, %v873_v42  ;;  %689 = vst.msk [vmem:[%s1062_s27 + $0x20] sm:$0xf] %vm680_vm1, %v855_v43  ;;  %v874_v49 = vpack.c.bf16 %v547_v44, %v547_v44  ;;  %v856_v50 = vpack.c.bf16 %v529_v45, %v529_v45  ;;  %v915_v51 = vpop.f32.mrb[12].mxu0 }
  0xfe   : > { %705 = vst.msk [vmem:[%s1062_s27 + $0x60] sm:$0xf] %vm680_vm1, %v871_v46  ;;  %692 = vst.msk [vmem:[%s1062_s27 + $0x2c] sm:$0xf] %vm680_vm1, %v858_v47  ;;  %v872_v52 = vpack.c.bf16 %v545_v48, %v545_v48  ;;  %v450_v53 = vadd.f32 %v915_v51, %v1050_v18  ;;  %v931_v54 = vpop.f32.mrb[12].mxu1  ;;  %v441_v55 = vpop.f32.mrb[13].mxu0 }
  0xff   : > { %708 = vst.msk [vmem:[%s1062_s27 + $0x6c] sm:$0xf] %vm680_vm1, %v874_v49  ;;  %690 = vst.msk [vmem:[%s1062_s27 + $0x24] sm:$0xf] %vm680_vm1, %v856_v50  ;;  %v514_v56 = vadd.f32 %v931_v54, %v1050_v18  ;;  %v442_v57 = vadd.f32 %v1050_v18, %v441_v55  ;;  %v505_v58 = vpop.f32.mrb[13].mxu1  ;;  %v916_v59 = vpop.f32.mrb[14].mxu0 }
 0x100   : > { %706 = vst.msk [vmem:[%s1062_s27 + $0x64] sm:$0xf] %vm680_vm1, %v872_v52  ;;  %v534_v60 = vmax.f32 %v450_v53, 0.0  ;;  %v506_v61 = vadd.f32 %v1050_v18, %v505_v58  ;;  %v453_v62 = vadd.f32 %v916_v59, %v1050_v18  ;;  %v932_v63 = vpop.f32.mrb[14].mxu1  ;;  %v444_v0 = vpop.f32.mrb[15].mxu0 }
 0x101   : > { %v550_v1 = vmax.f32 %v514_v56, 0.0  ;;  %v532_v2 = vmax.f32 %v442_v57, 0.0  ;;  %v517_v3 = vadd.f32 %v932_v63, %v1050_v18  ;;  %v445_v4 = vadd.f32 %v1050_v18, %v444_v0  ;;  %v508_v5 = vpop.f32.mrb[15].mxu1 }
 0x102   : > { %v861_v6 = vpack.c.bf16 %v534_v60, %v534_v60  ;;  %v548_v7 = vmax.f32 %v506_v61, 0.0  ;;  %v535_v8 = vmax.f32 %v453_v62, 0.0  ;;  %v509_v9 = vadd.f32 %v1050_v18, %v508_v5 }
 0x103   : > { %v877_v10 = vpack.c.bf16 %v550_v1, %v550_v1  ;;  %v859_v11 = vpack.c.bf16 %v532_v2, %v532_v2  ;;  %v551_v12 = vmax.f32 %v517_v3, 0.0  ;;  %v533_v13 = vmax.f32 %v445_v4, 0.0 }
 0x104   : > { %695 = vst.msk [vmem:[%s1062_s27 + $0x38] sm:$0xf] %vm680_vm1, %v861_v6  ;;  %v875_v14 = vpack.c.bf16 %v548_v7, %v548_v7  ;;  %v862_v15 = vpack.c.bf16 %v535_v8, %v535_v8  ;;  %v549_v16 = vmax.f32 %v509_v9, 0.0 }
 0x105   : > { %711 = vst.msk [vmem:[%s1062_s27 + $0x78] sm:$0xf] %vm680_vm1, %v877_v10  ;;  %693 = vst.msk [vmem:[%s1062_s27 + $0x30] sm:$0xf] %vm680_vm1, %v859_v11  ;;  %v878_v17 = vpack.c.bf16 %v551_v12, %v551_v12  ;;  %v860_v19 = vpack.c.bf16 %v533_v13, %v533_v13 }
 0x106   : > { %709 = vst.msk [vmem:[%s1062_s27 + $0x70] sm:$0xf] %vm680_vm1, %v875_v14  ;;  %696 = vst.msk [vmem:[%s1062_s27 + $0x3c] sm:$0xf] %vm680_vm1, %v862_v15  ;;  %v876_v18 = vpack.c.bf16 %v549_v16, %v549_v16 }
 0x107   : > { %712 = vst.msk [vmem:[%s1062_s27 + $0x7c] sm:$0xf] %vm680_vm1, %v878_v17  ;;  %694 = vst.msk [vmem:[%s1062_s27 + $0x34] sm:$0xf] %vm680_vm1, %v860_v19 }
 0x108   : > { %710 = vst.msk [vmem:[%s1062_s27 + $0x74] sm:$0xf] %vm680_vm1, %v876_v18 }
 0x109 PF: > { %s13_s12 = sadd.s32 1, %s969_s12  }
 0x10a   : > { %p10_p4 = scmp.ge.s32.totalorder %s13_s12, 4  }
 0x10c   :  { %12 = sbr.rel (!%p10_p4) target bundleno = 1 (0x1), region = 62 }

// kernel: small_encoder_forward.28
= control target key start
LH: loop header
LB: loop body
LE: loop exit
PB: predicated region body
PF: predicated region fallthrough
CT: control target
= control target key end

     0   :  { %s1157_s12 = smov 0   ;;  %s1361_s0 = inlined_call_operand.vmem [shape: bf16[512,147], index: 0, kind: input, shape index: {}]   ;;  %s1362_s1 = inlined_call_operand.vmem [shape: bf16[147,32], index: 1, kind: input, shape index: {}]   ;;  %s1363_s2 = inlined_call_operand.vmem [shape: f32[1,32], index: 2, kind: input, shape index: {}]   ;;  %s1364_s3 = inlined_call_operand.vmem [shape: bf16[512,32], index: 3, kind: output, shape index: {}]  }
   0x1 LB: > { %s903_s13 = sadd.s32 4294967295, %s1133_s12   ;;  %p907_p0 = scmp.ge.s32.totalorder %s1133_s12, 1  ;;  %s1133_s12 = sphi %s1157_s12, %s13_s12  }
   0x2   : > { %p139_p1 = scmp.lt.s32.totalorder %s1133_s12, 3 }
   0x4   : > { %p140_p2 = pnand %p907_p0, %p139_p1 }
   0x5   : > { %v1069_v0 = vld [vmem:[%s1362_s1] sm:$0xff] (!%p140_p2)   ;;  %v1135_v1 = vmov (!%p140_p2), 0   ;;  %v1070_v2 = vld [vmem:[%s1362_s1 + $0x8] sm:$0xff] (!%p140_p2)   ;;  %v1071_v3 = vld [vmem:[%s1362_s1 + $0x10] sm:$0xff] (!%p140_p2)   ;;  %s908_s20 = sshll.u32 (!%p140_p2), %s903_s13, 5  ;;  %vm437_vm0 = vcmask (!%p140_p2), 154624  }
   0x6   : > { %143 = sbr.rel (%p140_p2) target bundleno = 323 (0x143), region = 32  ;;  %493 = vmatprep.subr.bf16.mxu0 (!%p140_p2), %v1135_v1  ;;  %1039 = vmatprep.subr.bf16.mxu1 (!%p140_p2), %v1135_v1  ;;  %p165_p3 = scmp.lt.s32.totalorder (!%p140_p2), %s908_s20, 63  ;;  %v1072_v4 = vld [vmem:[%s1362_s1 + $0x18] sm:$0xff] (!%p140_p2)   ;;  %v1073_v5 = vld [vmem:[%s1362_s1 + $0x20] sm:$0xff] (!%p140_p2)   ;;  %v1074_v8 = vld [vmem:[%s1362_s1 + $0x28] sm:$0xff] (!%p140_p2)   ;;  %vm486_vm1 = vcmask (!%p140_p2), 1040384  }
   0x7   : > { %494 = vmatpush1.bf16.msra.mxu0 (!%p140_p2), %v1069_v0  ;;  %1049 = vmatpush1.bf16.msra.mxu1 (!%p140_p2), %v1069_v0  ;;  %v1075_v9 = vld [vmem:[%s1362_s1 + $0x30] sm:$0xff] (!%p140_p2)   ;;  %v1076_v10 = vld [vmem:[%s1362_s1 + $0x38] sm:$0xff] (!%p140_p2)   ;;  %vm487_vm2 = vcmask (!%p140_p2), 1041408   ;;  %v1136_v11 = vmov (!%p140_p2), 65535   ;;  %v1077_v13 = vld [vmem:[%s1362_s1 + $0x40] sm:$0xff] (!%p140_p2)   ;;  %vm814_vm3 = vcmask (!%p140_p2), 257024  }
   0x8   : > { %495 = vmatprep.subr.bf16.mxu0 (!%p140_p2), %v1135_v1  ;;  %1040 = vmatprep.subr.bf16.mxu1 (!%p140_p2), %v1135_v1  ;;  %v488_v12 = vsel (!%p140_p2), %vm486_vm1, 4294967295, %v1136_v11  ;;  %v1078_v14 = vld [vmem:[%s1362_s1 + $0x48] ss:$0 sps:$4 sm:$0x33] (!%p140_p2)   ;;  %v1254_v47 = vld [vmem:[%s1363_s2] ss:$0 sm:$0xff] (!%p140_p2) }
   0x9   : > { %v489_v15 = vsel (!%p140_p2), %vm487_vm2, %v488_v12, 0 }
   0xa   : > { %v491_v16 = vand.u32 (!%p140_p2), %v1078_v14, %v489_v15 }
   0xb   : > { %496 = vmatpush1.bf16.msra.mxu0 (!%p140_p2), %v1070_v2  ;;  %1050 = vmatpush1.bf16.msra.mxu1 (!%p140_p2), %v1070_v2 }
   0xc   : > { %497 = vmatprep.subr.bf16.mxu0 (!%p140_p2), %v1135_v1  ;;  %1041 = vmatprep.subr.bf16.mxu1 (!%p140_p2), %v1135_v1 }
   0xd   : > { %s1366_s20 = smov (!%p165_p3, %s908_s20), 63 }
   0xe   : > { %s1006_s23 = sshll.u32 %s1366_s20, 3  ;;  %s912_s15 = sshll.u32 %s1366_s20, 2 }
   0xf   : > { %498 = vmatpush1.bf16.msra.mxu0 %v1071_v3  ;;  %1051 = vmatpush1.bf16.msra.mxu1 %v1071_v3  ;;  %s1183_s26 = scalar_lea.vmem %s1361_s0, %s1006_s23  ;;  %s1264_s18 = scalar_lea.vmem %s1364_s3, %s912_s15 }
  0x10   : > { %499 = vmatprep.subr.bf16.mxu0 %v1135_v1  ;;  %1042 = vmatprep.subr.bf16.mxu1 %v1135_v1  ;;  %v1081_v6 = vld [vmem:[%s1183_s26 + $0x4] ss:$8 sps:$4 sm:$0xff]   ;;  %v1079_v17 = vld [vmem:[%s1183_s26] ss:$8 sps:$4 sm:$0xff]   ;;  %v1085_v19 = vld [vmem:[%s1183_s26 + $0x14] ss:$8 sps:$4 sm:$0xff]  }
  0x11   : > { %v1084_v7 = vld [vmem:[%s1183_s26 + $0x84] ss:$8 sps:$4 sm:$0xff]   ;;  %956 = vmatprep.mubr.msk.bf16.mxu0 %vm437_vm0, %v1081_v6  ;;  %v1082_v18 = vld [vmem:[%s1183_s26 + $0x80] ss:$8 sps:$4 sm:$0xff]   ;;  %v1087_v20 = vld [vmem:[%s1183_s26 + $0x94] ss:$8 sps:$4 sm:$0xff]  }
  0x12   : > { %964 = vmatprep.mubr.msk.bf16.mxu1 %vm437_vm0, %v1084_v7  ;;  %v1089_v21 = vld [vmem:[%s1183_s26 + $0x10] ss:$8 sps:$4 sm:$0xff]   ;;  %v1091_v23 = vld [vmem:[%s1183_s26 + $0x24] ss:$8 sps:$4 sm:$0xff]   ;;  %v1095_v25 = vld [vmem:[%s1183_s26 + $0x20] ss:$8 sps:$4 sm:$0xff]  }
  0x13   : > { %500 = vmatpush1.bf16.msra.mxu0 %v1072_v4  ;;  %1052 = vmatpush1.bf16.msra.mxu1 %v1072_v4  ;;  %v1090_v22 = vld [vmem:[%s1183_s26 + $0x90] ss:$8 sps:$4 sm:$0xff]   ;;  %v1093_v24 = vld [vmem:[%s1183_s26 + $0xa4] ss:$8 sps:$4 sm:$0xff]   ;;  %v1096_v26 = vld [vmem:[%s1183_s26 + $0xa0] ss:$8 sps:$4 sm:$0xff]  }
  0x14   : > { %501 = vmatprep.subr.bf16.mxu0 %v1135_v1  ;;  %1043 = vmatprep.subr.bf16.mxu1 %v1135_v1  ;;  %v1097_v27 = vld [vmem:[%s1183_s26 + $0x34] ss:$8 sps:$4 sm:$0xff]   ;;  %v1101_v29 = vld [vmem:[%s1183_s26 + $0x30] ss:$8 sps:$4 sm:$0xff]   ;;  %v1103_v31 = vld [vmem:[%s1183_s26 + $0x44] ss:$8 sps:$4 sm:$0xff]  }
  0x15   : > { %v1099_v28 = vld [vmem:[%s1183_s26 + $0xb4] ss:$8 sps:$4 sm:$0xff]   ;;  %v1102_v30 = vld [vmem:[%s1183_s26 + $0xb0] ss:$8 sps:$4 sm:$0xff]   ;;  %v1105_v32 = vld [vmem:[%s1183_s26 + $0xc4] ss:$8 sps:$4 sm:$0xff]  }
  0x16   : > { %v1107_v33 = vld [vmem:[%s1183_s26 + $0x40] ss:$8 sps:$4 sm:$0xff]   ;;  %v1109_v35 = vld [vmem:[%s1183_s26 + $0x54] ss:$8 sps:$4 sm:$0xff]   ;;  %v1113_v37 = vld [vmem:[%s1183_s26 + $0x50] ss:$8 sps:$4 sm:$0xff]  }
  0x17   : > { %502 = vmatpush1.bf16.msra.mxu0 %v1073_v5  ;;  %1053 = vmatpush1.bf16.msra.mxu1 %v1073_v5  ;;  %v1108_v34 = vld [vmem:[%s1183_s26 + $0xc0] ss:$8 sps:$4 sm:$0xff]   ;;  %v1111_v36 = vld [vmem:[%s1183_s26 + $0xd4] ss:$8 sps:$4 sm:$0xff]   ;;  %v1114_v38 = vld [vmem:[%s1183_s26 + $0xd0] ss:$8 sps:$4 sm:$0xff]  }
  0x18   : > { %503 = vmatprep.subr.bf16.mxu0 %v1135_v1  ;;  %1044 = vmatprep.subr.bf16.mxu1 %v1135_v1  ;;  %v1115_v39 = vld [vmem:[%s1183_s26 + $0x64] ss:$8 sps:$4 sm:$0xff]   ;;  %v1119_v41 = vld [vmem:[%s1183_s26 + $0x60] ss:$8 sps:$4 sm:$0xff]   ;;  %v1121_v43 = vld [vmem:[%s1183_s26 + $0x74] ss:$8 sps:$4 sm:$0xff]  }
  0x19   : > { %v1117_v40 = vld [vmem:[%s1183_s26 + $0xe4] ss:$8 sps:$4 sm:$0xff]   ;;  %v1120_v42 = vld [vmem:[%s1183_s26 + $0xe0] ss:$8 sps:$4 sm:$0xff]   ;;  %v1123_v44 = vld [vmem:[%s1183_s26 + $0xf4] ss:$8 sps:$4 sm:$0xff]  }
  0x1a   : > { %v1125_v45 = vld [vmem:[%s1183_s26 + $0x70] ss:$8 sps:$4 sm:$0xff]  }
  0x1b   : > { %504 = vmatpush1.bf16.msra.mxu0 %v1074_v8  ;;  %1054 = vmatpush1.bf16.msra.mxu1 %v1074_v8  ;;  %v1126_v46 = vld [vmem:[%s1183_s26 + $0xf0] ss:$8 sps:$4 sm:$0xff]  }
  0x1c   : > { %505 = vmatprep.subr.bf16.mxu0 %v1135_v1  ;;  %1045 = vmatprep.subr.bf16.mxu1 %v1135_v1 }
  0x1f   : > { %506 = vmatpush1.bf16.msra.mxu0 %v1075_v9  ;;  %1055 = vmatpush1.bf16.msra.mxu1 %v1075_v9 }
  0x20   : > { %507 = vmatprep.subr.bf16.mxu0 %v1135_v1  ;;  %1046 = vmatprep.subr.bf16.mxu1 %v1135_v1 }
  0x23   : > { %508 = vmatpush1.bf16.msra.mxu0 %v1076_v10  ;;  %1056 = vmatpush1.bf16.msra.mxu1 %v1076_v10 }
  0x24   : > { %509 = vmatprep.subr.bf16.mxu0 %v1135_v1  ;;  %1047 = vmatprep.subr.bf16.mxu1 %v1135_v1 }
  0x27   : > { %510 = vmatpush1.bf16.msra.mxu0 %v1077_v13  ;;  %1057 = vmatpush1.bf16.msra.mxu1 %v1077_v13 }
  0x28   : > { %511 = vmatprep.subr.bf16.mxu0 %v1135_v1  ;;  %1048 = vmatprep.subr.bf16.mxu1 %v1135_v1 }
  0x2b   : > { %512 = vmatpush1.bf16.msra.mxu0 %v491_v16  ;;  %1058 = vmatpush1.bf16.msra.mxu1 %v491_v16 }
  0x2e   : > { %526 = vmatmul.mubr.bf16.vlgmr.msra.gmra.mrb[0].mxu0 %v1079_v17  ;;  %590 = vmatmul.mubr.bf16.vlgmr.msra.gmra.mrb[0].mxu1 %v1082_v18 }
  0x2f   : > { %957 = vmatprep.mubr.msk.bf16.mxu0 %vm437_vm0, %v1085_v19  ;;  %965 = vmatprep.mubr.msk.bf16.mxu1 %vm437_vm0, %v1087_v20 }
  0x36   : > { %534 = vmatmul.mubr.bf16.gmra.mrb[4].mxu0 %v1089_v21  ;;  %598 = vmatmul.mubr.bf16.gmra.mrb[4].mxu1 %v1090_v22 }
  0x37   : > { %958 = vmatprep.mubr.msk.bf16.mxu0 %vm437_vm0, %v1091_v23  ;;  %966 = vmatprep.mubr.msk.bf16.mxu1 %vm437_vm0, %v1093_v24 }
  0x3e   : > { %542 = vmatmul.mubr.bf16.gmra.mrb[8].mxu0 %v1095_v25  ;;  %606 = vmatmul.mubr.bf16.gmra.mrb[8].mxu1 %v1096_v26 }
  0x3f   : > { %959 = vmatprep.mubr.msk.bf16.mxu0 %vm437_vm0, %v1097_v27  ;;  %967 = vmatprep.mubr.msk.bf16.mxu1 %vm437_vm0, %v1099_v28 }
  0x46   : > { %550 = vmatmul.mubr.bf16.gmra.mrb[12].mxu0 %v1101_v29  ;;  %614 = vmatmul.mubr.bf16.gmra.mrb[12].mxu1 %v1102_v30 }
  0x47   : > { %960 = vmatprep.mubr.msk.bf16.mxu0 %vm437_vm0, %v1103_v31  ;;  %968 = vmatprep.mubr.msk.bf16.mxu1 %vm437_vm0, %v1105_v32 }
  0x4e   : > { %558 = vmatmul.mubr.bf16.gmra.mrb[16].mxu0 %v1107_v33  ;;  %622 = vmatmul.mubr.bf16.gmra.mrb[16].mxu1 %v1108_v34 }
  0x4f   : > { %961 = vmatprep.mubr.msk.bf16.mxu0 %vm437_vm0, %v1109_v35  ;;  %969 = vmatprep.mubr.msk.bf16.mxu1 %vm437_vm0, %v1111_v36 }
  0x56   : > { %566 = vmatmul.mubr.bf16.gmra.mrb[20].mxu0 %v1113_v37  ;;  %630 = vmatmul.mubr.bf16.gmra.mrb[20].mxu1 %v1114_v38 }
  0x57   : > { %962 = vmatprep.mubr.msk.bf16.mxu0 %vm437_vm0, %v1115_v39  ;;  %970 = vmatprep.mubr.msk.bf16.mxu1 %vm437_vm0, %v1117_v40 }
  0x5e   : > { %574 = vmatmul.mubr.bf16.gmra.mrb[24].mxu0 %v1119_v41  ;;  %638 = vmatmul.mubr.bf16.gmra.mrb[24].mxu1 %v1120_v42 }
  0x5f   : > { %963 = vmatprep.mubr.msk.bf16.mxu0 %vm437_vm0, %v1121_v43  ;;  %971 = vmatprep.mubr.msk.bf16.mxu1 %vm437_vm0, %v1123_v44 }
  0x66   : > { %582 = vmatmul.mubr.bf16.gmra.mrb[28].mxu0 %v1125_v45  ;;  %646 = vmatmul.mubr.bf16.gmra.mrb[28].mxu1 %v1126_v46 }
 0x101   : > { %v527_v48 = vpop.f32.mrb[0].mxu0  ;;  %v591_v49 = vpop.f32.mrb[0].mxu1 }
 0x102   : > { %v528_v50 = vadd.f32 %v1254_v47, %v527_v48  ;;  %v592_v51 = vadd.f32 %v1254_v47, %v591_v49  ;;  %v529_v52 = vpop.f32.mrb[1].mxu0  ;;  %v593_v53 = vpop.f32.mrb[1].mxu1 }
 0x103   : > { %v530_v54 = vpop.f32.mrb[2].mxu0  ;;  %v594_v55 = vpop.f32.mrb[2].mxu1 }
 0x104   : > { %v654_v56 = vmax.f32 %v528_v50, 0.0  ;;  %v670_v57 = vmax.f32 %v592_v51, 0.0  ;;  %v531_v58 = vadd.f32 %v1254_v47, %v530_v54  ;;  %v595_v59 = vadd.f32 %v1254_v47, %v594_v55  ;;  %v532_v60 = vpop.f32.mrb[3].mxu0  ;;  %v596_v61 = vpop.f32.mrb[3].mxu1 }
 0x106   : > { %v1007_v62 = vpack.c.bf16 %v654_v56, %v654_v56  ;;  %v1023_v63 = vpack.c.bf16 %v670_v57, %v670_v57  ;;  %v655_v0 = vmax.f32 %v531_v58, 0.0  ;;  %v671_v1 = vmax.f32 %v595_v59, 0.0 }
 0x108   : > { %815 = vst.msk [vmem:[%s1264_s18] sm:$0xf] %vm814_vm3, %v1007_v62  ;;  %831 = vst.msk [vmem:[%s1264_s18 + $0x40] sm:$0xf] %vm814_vm3, %v1023_v63  ;;  %v1008_v2 = vpack.c.bf16 %v655_v0, %v655_v0  ;;  %v1024_v3 = vpack.c.bf16 %v671_v1, %v671_v1 }
 0x109   : > { %v535_v4 = vpop.f32.mrb[4].mxu0  ;;  %v599_v5 = vpop.f32.mrb[4].mxu1 }
 0x10a   : > { %816 = vst.msk [vmem:[%s1264_s18 + $0x4] sm:$0xf] %vm814_vm3, %v1008_v2  ;;  %832 = vst.msk [vmem:[%s1264_s18 + $0x44] sm:$0xf] %vm814_vm3, %v1024_v3  ;;  %v536_v6 = vadd.f32 %v1254_v47, %v535_v4  ;;  %v600_v7 = vadd.f32 %v1254_v47, %v599_v5  ;;  %v537_v8 = vpop.f32.mrb[5].mxu0  ;;  %v601_v9 = vpop.f32.mrb[5].mxu1 }
 0x10b   : > { %v538_v10 = vpop.f32.mrb[6].mxu0  ;;  %v602_v11 = vpop.f32.mrb[6].mxu1 }
 0x10c   : > { %v656_v12 = vmax.f32 %v536_v6, 0.0  ;;  %v672_v13 = vmax.f32 %v600_v7, 0.0  ;;  %v539_v14 = vadd.f32 %v1254_v47, %v538_v10  ;;  %v603_v15 = vadd.f32 %v1254_v47, %v602_v11  ;;  %v540_v16 = vpop.f32.mrb[7].mxu0  ;;  %v604_v17 = vpop.f32.mrb[7].mxu1 }
 0x10e   : > { %v1009_v18 = vpack.c.bf16 %v656_v12, %v656_v12  ;;  %v1025_v19 = vpack.c.bf16 %v672_v13, %v672_v13  ;;  %v657_v20 = vmax.f32 %v539_v14, 0.0  ;;  %v673_v21 = vmax.f32 %v603_v15, 0.0 }
 0x110   : > { %817 = vst.msk [vmem:[%s1264_s18 + $0x8] sm:$0xf] %vm814_vm3, %v1009_v18  ;;  %833 = vst.msk [vmem:[%s1264_s18 + $0x48] sm:$0xf] %vm814_vm3, %v1025_v19  ;;  %v1010_v22 = vpack.c.bf16 %v657_v20, %v657_v20  ;;  %v1026_v23 = vpack.c.bf16 %v673_v21, %v673_v21 }
 0x111   : > { %v543_v24 = vpop.f32.mrb[8].mxu0  ;;  %v607_v25 = vpop.f32.mrb[8].mxu1 }
 0x112   : > { %818 = vst.msk [vmem:[%s1264_s18 + $0xc] sm:$0xf] %vm814_vm3, %v1010_v22  ;;  %834 = vst.msk [vmem:[%s1264_s18 + $0x4c] sm:$0xf] %vm814_vm3, %v1026_v23  ;;  %v544_v26 = vadd.f32 %v1254_v47, %v543_v24  ;;  %v608_v27 = vadd.f32 %v1254_v47, %v607_v25  ;;  %v545_v28 = vpop.f32.mrb[9].mxu0  ;;  %v609_v29 = vpop.f32.mrb[9].mxu1 }
 0x113   : > { %v546_v30 = vpop.f32.mrb[10].mxu0  ;;  %v610_v31 = vpop.f32.mrb[10].mxu1 }
 0x114   : > { %v658_v32 = vmax.f32 %v544_v26, 0.0  ;;  %v674_v33 = vmax.f32 %v608_v27, 0.0  ;;  %v547_v34 = vadd.f32 %v1254_v47, %v546_v30  ;;  %v611_v35 = vadd.f32 %v1254_v47, %v610_v31  ;;  %v548_v36 = vpop.f32.mrb[11].mxu0  ;;  %v612_v37 = vpop.f32.mrb[11].mxu1 }
 0x116   : > { %v1011_v38 = vpack.c.bf16 %v658_v32, %v658_v32  ;;  %v1027_v39 = vpack.c.bf16 %v674_v33, %v674_v33  ;;  %v659_v40 = vmax.f32 %v547_v34, 0.0  ;;  %v675_v41 = vmax.f32 %v611_v35, 0.0 }
 0x118   : > { %819 = vst.msk [vmem:[%s1264_s18 + $0x10] sm:$0xf] %vm814_vm3, %v1011_v38  ;;  %835 = vst.msk [vmem:[%s1264_s18 + $0x50] sm:$0xf] %vm814_vm3, %v1027_v39  ;;  %v1012_v42 = vpack.c.bf16 %v659_v40, %v659_v40  ;;  %v1028_v43 = vpack.c.bf16 %v675_v41, %v675_v41 }
 0x119   : > { %v551_v44 = vpop.f32.mrb[12].mxu0  ;;  %v615_v45 = vpop.f32.mrb[12].mxu1 }
 0x11a   : > { %820 = vst.msk [vmem:[%s1264_s18 + $0x14] sm:$0xf] %vm814_vm3, %v1012_v42  ;;  %836 = vst.msk [vmem:[%s1264_s18 + $0x54] sm:$0xf] %vm814_vm3, %v1028_v43  ;;  %v552_v46 = vadd.f32 %v1254_v47, %v551_v44  ;;  %v616_v48 = vadd.f32 %v1254_v47, %v615_v45  ;;  %v553_v49 = vpop.f32.mrb[13].mxu0  ;;  %v617_v50 = vpop.f32.mrb[13].mxu1 }
 0x11b   : > { %v554_v51 = vpop.f32.mrb[14].mxu0  ;;  %v618_v52 = vpop.f32.mrb[14].mxu1 }
 0x11c   : > { %v660_v53 = vmax.f32 %v552_v46, 0.0  ;;  %v676_v54 = vmax.f32 %v616_v48, 0.0  ;;  %v555_v55 = vadd.f32 %v1254_v47, %v554_v51  ;;  %v619_v56 = vadd.f32 %v1254_v47, %v618_v52  ;;  %v556_v57 = vpop.f32.mrb[15].mxu0  ;;  %v620_v58 = vpop.f32.mrb[15].mxu1 }
 0x11e   : > { %v1013_v59 = vpack.c.bf16 %v660_v53, %v660_v53  ;;  %v1029_v60 = vpack.c.bf16 %v676_v54, %v676_v54  ;;  %v661_v61 = vmax.f32 %v555_v55, 0.0  ;;  %v677_v62 = vmax.f32 %v619_v56, 0.0 }
 0x120   : > { %821 = vst.msk [vmem:[%s1264_s18 + $0x18] sm:$0xf] %vm814_vm3, %v1013_v59  ;;  %837 = vst.msk [vmem:[%s1264_s18 + $0x58] sm:$0xf] %vm814_vm3, %v1029_v60  ;;  %v1014_v63 = vpack.c.bf16 %v661_v61, %v661_v61  ;;  %v1030_v0 = vpack.c.bf16 %v677_v62, %v677_v62 }
 0x121   : > { %v559_v1 = vpop.f32.mrb[16].mxu0  ;;  %v623_v2 = vpop.f32.mrb[16].mxu1 }
 0x122   : > { %822 = vst.msk [vmem:[%s1264_s18 + $0x1c] sm:$0xf] %vm814_vm3, %v1014_v63  ;;  %838 = vst.msk [vmem:[%s1264_s18 + $0x5c] sm:$0xf] %vm814_vm3, %v1030_v0  ;;  %v560_v3 = vadd.f32 %v1254_v47, %v559_v1  ;;  %v624_v4 = vadd.f32 %v1254_v47, %v623_v2  ;;  %v561_v5 = vpop.f32.mrb[17].mxu0  ;;  %v625_v6 = vpop.f32.mrb[17].mxu1 }
 0x123   : > { %v562_v7 = vpop.f32.mrb[18].mxu0  ;;  %v626_v8 = vpop.f32.mrb[18].mxu1 }
 0x124   : > { %v662_v9 = vmax.f32 %v560_v3, 0.0  ;;  %v678_v10 = vmax.f32 %v624_v4, 0.0  ;;  %v563_v11 = vadd.f32 %v1254_v47, %v562_v7  ;;  %v627_v12 = vadd.f32 %v1254_v47, %v626_v8  ;;  %v564_v13 = vpop.f32.mrb[19].mxu0  ;;  %v628_v14 = vpop.f32.mrb[19].mxu1 }
 0x126   : > { %v1015_v15 = vpack.c.bf16 %v662_v9, %v662_v9  ;;  %v1031_v16 = vpack.c.bf16 %v678_v10, %v678_v10  ;;  %v663_v17 = vmax.f32 %v563_v11, 0.0  ;;  %v679_v18 = vmax.f32 %v627_v12, 0.0 }
 0x128   : > { %823 = vst.msk [vmem:[%s1264_s18 + $0x20] sm:$0xf] %vm814_vm3, %v1015_v15  ;;  %839 = vst.msk [vmem:[%s1264_s18 + $0x60] sm:$0xf] %vm814_vm3, %v1031_v16  ;;  %v1016_v19 = vpack.c.bf16 %v663_v17, %v663_v17  ;;  %v1032_v20 = vpack.c.bf16 %v679_v18, %v679_v18 }
 0x129   : > { %v567_v21 = vpop.f32.mrb[20].mxu0  ;;  %v631_v22 = vpop.f32.mrb[20].mxu1 }
 0x12a   : > { %824 = vst.msk [vmem:[%s1264_s18 + $0x24] sm:$0xf] %vm814_vm3, %v1016_v19  ;;  %840 = vst.msk [vmem:[%s1264_s18 + $0x64] sm:$0xf] %vm814_vm3, %v1032_v20  ;;  %v568_v23 = vadd.f32 %v1254_v47, %v567_v21  ;;  %v632_v24 = vadd.f32 %v1254_v47, %v631_v22  ;;  %v569_v25 = vpop.f32.mrb[21].mxu0  ;;  %v633_v26 = vpop.f32.mrb[21].mxu1 }
 0x12b   : > { %v570_v27 = vpop.f32.mrb[22].mxu0  ;;  %v634_v28 = vpop.f32.mrb[22].mxu1 }
 0x12c   : > { %v664_v29 = vmax.f32 %v568_v23, 0.0  ;;  %v680_v30 = vmax.f32 %v632_v24, 0.0  ;;  %v571_v31 = vadd.f32 %v1254_v47, %v570_v27  ;;  %v635_v32 = vadd.f32 %v1254_v47, %v634_v28  ;;  %v572_v33 = vpop.f32.mrb[23].mxu0  ;;  %v636_v34 = vpop.f32.mrb[23].mxu1 }
 0x12e   : > { %v1017_v35 = vpack.c.bf16 %v664_v29, %v664_v29  ;;  %v1033_v36 = vpack.c.bf16 %v680_v30, %v680_v30  ;;  %v665_v37 = vmax.f32 %v571_v31, 0.0  ;;  %v681_v38 = vmax.f32 %v635_v32, 0.0 }
 0x130   : > { %825 = vst.msk [vmem:[%s1264_s18 + $0x28] sm:$0xf] %vm814_vm3, %v1017_v35  ;;  %841 = vst.msk [vmem:[%s1264_s18 + $0x68] sm:$0xf] %vm814_vm3, %v1033_v36  ;;  %v1018_v39 = vpack.c.bf16 %v665_v37, %v665_v37  ;;  %v1034_v40 = vpack.c.bf16 %v681_v38, %v681_v38 }
 0x131   : > { %v575_v41 = vpop.f32.mrb[24].mxu0  ;;  %v639_v42 = vpop.f32.mrb[24].mxu1 }
 0x132   : > { %826 = vst.msk [vmem:[%s1264_s18 + $0x2c] sm:$0xf] %vm814_vm3, %v1018_v39  ;;  %842 = vst.msk [vmem:[%s1264_s18 + $0x6c] sm:$0xf] %vm814_vm3, %v1034_v40  ;;  %v576_v43 = vadd.f32 %v1254_v47, %v575_v41  ;;  %v640_v44 = vadd.f32 %v1254_v47, %v639_v42  ;;  %v577_v45 = vpop.f32.mrb[25].mxu0  ;;  %v641_v46 = vpop.f32.mrb[25].mxu1 }
 0x133   : > { %v578_v48 = vpop.f32.mrb[26].mxu0  ;;  %v642_v49 = vpop.f32.mrb[26].mxu1 }
 0x134   : > { %v666_v50 = vmax.f32 %v576_v43, 0.0  ;;  %v682_v51 = vmax.f32 %v640_v44, 0.0  ;;  %v579_v52 = vadd.f32 %v1254_v47, %v578_v48  ;;  %v643_v53 = vadd.f32 %v1254_v47, %v642_v49  ;;  %v580_v54 = vpop.f32.mrb[27].mxu0  ;;  %v644_v55 = vpop.f32.mrb[27].mxu1 }
 0x136   : > { %v1019_v56 = vpack.c.bf16 %v666_v50, %v666_v50  ;;  %v1035_v57 = vpack.c.bf16 %v682_v51, %v682_v51  ;;  %v667_v58 = vmax.f32 %v579_v52, 0.0  ;;  %v683_v59 = vmax.f32 %v643_v53, 0.0 }
 0x138   : > { %827 = vst.msk [vmem:[%s1264_s18 + $0x30] sm:$0xf] %vm814_vm3, %v1019_v56  ;;  %843 = vst.msk [vmem:[%s1264_s18 + $0x70] sm:$0xf] %vm814_vm3, %v1035_v57  ;;  %v1020_v60 = vpack.c.bf16 %v667_v58, %v667_v58  ;;  %v1036_v61 = vpack.c.bf16 %v683_v59, %v683_v59 }
 0x139   : > { %v583_v62 = vpop.f32.mrb[28].mxu0  ;;  %v647_v63 = vpop.f32.mrb[28].mxu1 }
 0x13a   : > { %828 = vst.msk [vmem:[%s1264_s18 + $0x34] sm:$0xf] %vm814_vm3, %v1020_v60  ;;  %844 = vst.msk [vmem:[%s1264_s18 + $0x74] sm:$0xf] %vm814_vm3, %v1036_v61  ;;  %v584_v0 = vadd.f32 %v1254_v47, %v583_v62  ;;  %v648_v1 = vadd.f32 %v1254_v47, %v647_v63  ;;  %v585_v2 = vpop.f32.mrb[29].mxu0  ;;  %v649_v3 = vpop.f32.mrb[29].mxu1 }
 0x13b   : > { %v586_v4 = vpop.f32.mrb[30].mxu0  ;;  %v650_v5 = vpop.f32.mrb[30].mxu1 }
 0x13c   : > { %v668_v6 = vmax.f32 %v584_v0, 0.0  ;;  %v684_v7 = vmax.f32 %v648_v1, 0.0  ;;  %v587_v8 = vadd.f32 %v1254_v47, %v586_v4  ;;  %v651_v9 = vadd.f32 %v1254_v47, %v650_v5  ;;  %v588_v10 = vpop.f32.mrb[31].mxu0  ;;  %v652_v11 = vpop.f32.mrb[31].mxu1 }
 0x13e   : > { %v1021_v12 = vpack.c.bf16 %v668_v6, %v668_v6  ;;  %v1037_v13 = vpack.c.bf16 %v684_v7, %v684_v7  ;;  %v669_v14 = vmax.f32 %v587_v8, 0.0  ;;  %v685_v15 = vmax.f32 %v651_v9, 0.0 }
 0x140   : > { %829 = vst.msk [vmem:[%s1264_s18 + $0x38] sm:$0xf] %vm814_vm3, %v1021_v12  ;;  %845 = vst.msk [vmem:[%s1264_s18 + $0x78] sm:$0xf] %vm814_vm3, %v1037_v13  ;;  %v1022_v16 = vpack.c.bf16 %v669_v14, %v669_v14  ;;  %v1038_v17 = vpack.c.bf16 %v685_v15, %v685_v15 }
 0x142   : > { %830 = vst.msk [vmem:[%s1264_s18 + $0x3c] sm:$0xf] %vm814_vm3, %v1022_v16  ;;  %846 = vst.msk [vmem:[%s1264_s18 + $0x7c] sm:$0xf] %vm814_vm3, %v1038_v17 }
 0x143 PF: > { %s13_s12 = sadd.s32 1, %s1133_s12  }
 0x144   : > { %p10_p4 = scmp.ge.s32.totalorder %s13_s12, 4  }
 0x146   :  { %12 = sbr.rel (!%p10_p4) target bundleno = 1 (0x1), region = 62 }

// kernel: small_encoder_forward.30
= control target key start
LH: loop header
LB: loop body
LE: loop exit
PB: predicated region body
PF: predicated region fallthrough
CT: control target
= control target key end

     0   :  { %s1038_s12 = smov 0   ;;  %s1214_s0 = inlined_call_operand.vmem [shape: bf16[512,72], index: 0, kind: input, shape index: {}]   ;;  %s1215_s1 = inlined_call_operand.vmem [shape: bf16[72,8], index: 1, kind: input, shape index: {}]   ;;  %s1216_s2 = inlined_call_operand.vmem [shape: f32[1,8], index: 2, kind: input, shape index: {}]   ;;  %s1217_s3 = inlined_call_operand.vmem [shape: bf16[512,8], index: 3, kind: output, shape index: {}]  }
   0x1 LB: > { %s793_s13 = sadd.s32 4294967295, %s1016_s12   ;;  %p797_p0 = scmp.ge.s32.totalorder %s1016_s12, 1  ;;  %s1016_s12 = sphi %s1038_s12, %s13_s12  }
   0x2   : > { %p138_p1 = scmp.lt.s32.totalorder %s1016_s12, 3 }
   0x4   : > { %p139_p2 = pnand %p797_p0, %p138_p1 }
   0x5   : > { %v989_v0 = vld [vmem:[%s1215_s1] sm:$0xff] (!%p139_p2)   ;;  %v990_v1 = vld [vmem:[%s1215_s1 + $0x8] sm:$0xff] (!%p139_p2)   ;;  %s798_s18 = sshll.u32 (!%p139_p2), %s793_s13, 5  ;;  %v991_v2 = vld [vmem:[%s1215_s1 + $0x10] sm:$0xff] (!%p139_p2)   ;;  %vm330_vm0 = vcmask (!%p139_p2), 588800   ;;  %vm379_vm1 = vcmask (!%p139_p2), 1043456  }
   0x6   : > { %142 = sbr.rel (%p139_p2) target bundleno = 272 (0x110), region = 32  ;;  %927 = vmatprep.subr.bf16.mxu0 (!%p139_p2), %v989_v0  ;;  %969 = vmatprep.subr.bf16.mxu1 (!%p139_p2), %v989_v0  ;;  %p163_p3 = scmp.lt.s32.totalorder (!%p139_p2), %s798_s18, 63  ;;  %v992_v3 = vld [vmem:[%s1215_s1 + $0x18] sm:$0xff] (!%p139_p2)   ;;  %v993_v6 = vld [vmem:[%s1215_s1 + $0x20] ss:$0 sps:$4 sm:$0xff] (!%p139_p2)   ;;  %vm704_vm2 = vcmask (!%p139_p2), 60416  }
   0x7   : > { %928 = vmatpush3.bf16.msra.mxu0 (!%p139_p2), %v989_v0  ;;  %974 = vmatpush3.bf16.msra.mxu1 (!%p139_p2), %v989_v0  ;;  %v381_v7 = vsel (!%p139_p2), %vm379_vm1, %v993_v6, 0  ;;  %v1106_v22 = vld [vmem:[%s1216_s2] ss:$0 sm:$0xff] (!%p139_p2) }
   0x8   : > { %929 = vmatprep.subr.bf16.mxu0 (!%p139_p2), %v990_v1  ;;  %970 = vmatprep.subr.bf16.mxu1 (!%p139_p2), %v990_v1 }
   0xb   : > { %930 = vmatpush3.bf16.msra.mxu0 (!%p139_p2), %v990_v1  ;;  %975 = vmatpush3.bf16.msra.mxu1 (!%p139_p2), %v990_v1 }
   0xc   : > { %931 = vmatprep.subr.bf16.mxu0 (!%p139_p2), %v991_v2  ;;  %971 = vmatprep.subr.bf16.mxu1 (!%p139_p2), %v991_v2 }
   0xd   : > { %s1219_s18 = smov (!%p163_p3, %s798_s18), 63 }
   0xe   : > { %s799_s21 = sshll.u32 %s1219_s18, 2 }
   0xf   : > { %s1066_s26 = scalar_lea.vmem %s1214_s0, %s799_s21  ;;  %932 = vmatpush3.bf16.msra.mxu0 %v991_v2  ;;  %976 = vmatpush3.bf16.msra.mxu1 %v991_v2  ;;  %s1119_s6 = scalar_lea.vmem %s1217_s3, %s799_s21 }
  0x10   : > { %v994_v4 = vld [vmem:[%s1066_s26] sm:$0xff]   ;;  %933 = vmatprep.subr.bf16.mxu0 %v992_v3  ;;  %972 = vmatprep.subr.bf16.mxu1 %v992_v3  ;;  %v996_v8 = vld [vmem:[%s1066_s26 + $0x8] sm:$0xff]   ;;  %v998_v10 = vld [vmem:[%s1066_s26 + $0x10] sm:$0xff]  }
  0x11   : > { %v995_v5 = vld [vmem:[%s1066_s26 + $0x40] sm:$0xff]   ;;  %937 = vmatprep.mubr.msk.bf16.mxu0 %vm330_vm0, %v994_v4  ;;  %v997_v9 = vld [vmem:[%s1066_s26 + $0x48] sm:$0xff]   ;;  %v999_v11 = vld [vmem:[%s1066_s26 + $0x50] sm:$0xff]  }
  0x12   : > { %953 = vmatprep.mubr.msk.bf16.mxu1 %vm330_vm0, %v995_v5  ;;  %v1000_v12 = vld [vmem:[%s1066_s26 + $0x18] sm:$0xff]   ;;  %v1002_v14 = vld [vmem:[%s1066_s26 + $0x20] sm:$0xff]   ;;  %v1004_v16 = vld [vmem:[%s1066_s26 + $0x28] sm:$0xff]  }
  0x13   : > { %934 = vmatpush3.bf16.msra.mxu0 %v992_v3  ;;  %977 = vmatpush3.bf16.msra.mxu1 %v992_v3  ;;  %v1001_v13 = vld [vmem:[%s1066_s26 + $0x58] sm:$0xff]   ;;  %v1003_v15 = vld [vmem:[%s1066_s26 + $0x60] sm:$0xff]   ;;  %v1005_v17 = vld [vmem:[%s1066_s26 + $0x68] sm:$0xff]  }
  0x14   : > { %979 = vmatprep.subr.msk.bf16.mxu0 %vm379_vm1, %v993_v6  ;;  %980 = vmatprep.subr.msk.bf16.mxu1 %vm379_vm1, %v993_v6  ;;  %v1006_v18 = vld [vmem:[%s1066_s26 + $0x30] sm:$0xff]   ;;  %v1008_v20 = vld [vmem:[%s1066_s26 + $0x38] sm:$0xff]  }
  0x15   : > { %v1007_v19 = vld [vmem:[%s1066_s26 + $0x70] sm:$0xff]   ;;  %v1009_v21 = vld [vmem:[%s1066_s26 + $0x78] sm:$0xff]  }
  0x17   : > { %936 = vmatpush3.bf16.msra.mxu0 %v381_v7  ;;  %978 = vmatpush3.bf16.msra.mxu1 %v381_v7 }
  0x1a   : > { %938 = vmatmul.mubr.msk.bf16.vlgmr.msra.gmra.mrb[0].mxu0 %vm330_vm0, %v996_v8  ;;  %954 = vmatmul.mubr.msk.bf16.vlgmr.msra.gmra.mrb[0].mxu1 %vm330_vm0, %v997_v9 }
  0x1b   : > { %941 = vmatprep.mubr.msk.bf16.mxu0 %vm330_vm0, %v998_v10  ;;  %957 = vmatprep.mubr.msk.bf16.mxu1 %vm330_vm0, %v999_v11 }
  0x22   : > { %942 = vmatmul.mubr.msk.bf16.gmra.mrb[4].mxu0 %vm330_vm0, %v1000_v12  ;;  %958 = vmatmul.mubr.msk.bf16.gmra.mrb[4].mxu1 %vm330_vm0, %v1001_v13 }
  0x23   : > { %945 = vmatprep.mubr.msk.bf16.mxu0 %vm330_vm0, %v1002_v14  ;;  %961 = vmatprep.mubr.msk.bf16.mxu1 %vm330_vm0, %v1003_v15 }
  0x2a   : > { %946 = vmatmul.mubr.msk.bf16.gmra.mrb[8].mxu0 %vm330_vm0, %v1004_v16  ;;  %962 = vmatmul.mubr.msk.bf16.gmra.mrb[8].mxu1 %vm330_vm0, %v1005_v17 }
  0x2b   : > { %949 = vmatprep.mubr.msk.bf16.mxu0 %vm330_vm0, %v1006_v18  ;;  %965 = vmatprep.mubr.msk.bf16.mxu1 %vm330_vm0, %v1007_v19 }
  0x32   : > { %950 = vmatmul.mubr.msk.bf16.gmra.mrb[12].mxu0 %vm330_vm0, %v1008_v20  ;;  %966 = vmatmul.mubr.msk.bf16.gmra.mrb[12].mxu1 %vm330_vm0, %v1009_v21 }
  0xed   : > { %v939_v23 = vpop.f32.mrb[0].mxu0  ;;  %v955_v24 = vpop.f32.mrb[0].mxu1 }
  0xee   : > { %v426_v25 = vadd.f32 %v939_v23, %v1106_v22  ;;  %v490_v26 = vadd.f32 %v955_v24, %v1106_v22  ;;  %v417_v27 = vpop.f32.mrb[1].mxu0  ;;  %v481_v28 = vpop.f32.mrb[1].mxu1 }
  0xef   : > { %v418_v29 = vadd.f32 %v1106_v22, %v417_v27  ;;  %v482_v30 = vadd.f32 %v1106_v22, %v481_v28  ;;  %v940_v31 = vpop.f32.mrb[2].mxu0  ;;  %v956_v32 = vpop.f32.mrb[2].mxu1 }
  0xf0   : > { %v546_v33 = vmax.f32 %v426_v25, 0.0  ;;  %v562_v34 = vmax.f32 %v490_v26, 0.0  ;;  %v429_v35 = vadd.f32 %v940_v31, %v1106_v22  ;;  %v493_v36 = vadd.f32 %v956_v32, %v1106_v22  ;;  %v420_v37 = vpop.f32.mrb[3].mxu0  ;;  %v484_v38 = vpop.f32.mrb[3].mxu1 }
  0xf1   : > { %v544_v39 = vmax.f32 %v418_v29, 0.0  ;;  %v560_v40 = vmax.f32 %v482_v30, 0.0  ;;  %v421_v41 = vadd.f32 %v1106_v22, %v420_v37  ;;  %v485_v42 = vadd.f32 %v1106_v22, %v484_v38 }
  0xf2   : > { %v876_v43 = vpack.c.bf16 %v546_v33, %v546_v33  ;;  %v892_v44 = vpack.c.bf16 %v562_v34, %v562_v34  ;;  %v547_v45 = vmax.f32 %v429_v35, 0.0  ;;  %v563_v46 = vmax.f32 %v493_v36, 0.0 }
  0xf3   : > { %v874_v47 = vpack.c.bf16 %v544_v39, %v544_v39  ;;  %v890_v48 = vpack.c.bf16 %v560_v40, %v560_v40  ;;  %v545_v49 = vmax.f32 %v421_v41, 0.0  ;;  %v561_v50 = vmax.f32 %v485_v42, 0.0 }
  0xf4   : > { %707 = vst.msk [vmem:[%s1119_s6 + $0x8] sm:$0xf] %vm704_vm2, %v876_v43  ;;  %723 = vst.msk [vmem:[%s1119_s6 + $0x48] sm:$0xf] %vm704_vm2, %v892_v44  ;;  %v877_v51 = vpack.c.bf16 %v547_v45, %v547_v45  ;;  %v893_v52 = vpack.c.bf16 %v563_v46, %v563_v46 }
  0xf5   : > { %705 = vst.msk [vmem:[%s1119_s6] sm:$0xf] %vm704_vm2, %v874_v47  ;;  %721 = vst.msk [vmem:[%s1119_s6 + $0x40] sm:$0xf] %vm704_vm2, %v890_v48  ;;  %v875_v53 = vpack.c.bf16 %v545_v49, %v545_v49  ;;  %v891_v54 = vpack.c.bf16 %v561_v50, %v561_v50  ;;  %v943_v55 = vpop.f32.mrb[4].mxu0  ;;  %v959_v56 = vpop.f32.mrb[4].mxu1 }
  0xf6   : > { %708 = vst.msk [vmem:[%s1119_s6 + $0xc] sm:$0xf] %vm704_vm2, %v877_v51  ;;  %724 = vst.msk [vmem:[%s1119_s6 + $0x4c] sm:$0xf] %vm704_vm2, %v893_v52  ;;  %v442_v57 = vadd.f32 %v943_v55, %v1106_v22  ;;  %v506_v58 = vadd.f32 %v959_v56, %v1106_v22  ;;  %v433_v59 = vpop.f32.mrb[5].mxu0  ;;  %v497_v60 = vpop.f32.mrb[5].mxu1 }
  0xf7   : > { %706 = vst.msk [vmem:[%s1119_s6 + $0x4] sm:$0xf] %vm704_vm2, %v875_v53  ;;  %722 = vst.msk [vmem:[%s1119_s6 + $0x44] sm:$0xf] %vm704_vm2, %v891_v54  ;;  %v434_v61 = vadd.f32 %v1106_v22, %v433_v59  ;;  %v498_v62 = vadd.f32 %v1106_v22, %v497_v60  ;;  %v944_v63 = vpop.f32.mrb[6].mxu0  ;;  %v960_v0 = vpop.f32.mrb[6].mxu1 }
  0xf8   : > { %v550_v1 = vmax.f32 %v442_v57, 0.0  ;;  %v566_v2 = vmax.f32 %v506_v58, 0.0  ;;  %v445_v3 = vadd.f32 %v944_v63, %v1106_v22  ;;  %v509_v4 = vadd.f32 %v960_v0, %v1106_v22  ;;  %v436_v5 = vpop.f32.mrb[7].mxu0  ;;  %v500_v6 = vpop.f32.mrb[7].mxu1 }
  0xf9   : > { %v548_v7 = vmax.f32 %v434_v61, 0.0  ;;  %v564_v8 = vmax.f32 %v498_v62, 0.0  ;;  %v437_v9 = vadd.f32 %v1106_v22, %v436_v5  ;;  %v501_v10 = vadd.f32 %v1106_v22, %v500_v6 }
  0xfa   : > { %v880_v11 = vpack.c.bf16 %v550_v1, %v550_v1  ;;  %v896_v12 = vpack.c.bf16 %v566_v2, %v566_v2  ;;  %v551_v13 = vmax.f32 %v445_v3, 0.0  ;;  %v567_v14 = vmax.f32 %v509_v4, 0.0 }
  0xfb   : > { %v878_v15 = vpack.c.bf16 %v548_v7, %v548_v7  ;;  %v894_v16 = vpack.c.bf16 %v564_v8, %v564_v8  ;;  %v549_v17 = vmax.f32 %v437_v9, 0.0  ;;  %v565_v18 = vmax.f32 %v501_v10, 0.0 }
  0xfc   : > { %711 = vst.msk [vmem:[%s1119_s6 + $0x18] sm:$0xf] %vm704_vm2, %v880_v11  ;;  %727 = vst.msk [vmem:[%s1119_s6 + $0x58] sm:$0xf] %vm704_vm2, %v896_v12  ;;  %v881_v19 = vpack.c.bf16 %v551_v13, %v551_v13  ;;  %v897_v20 = vpack.c.bf16 %v567_v14, %v567_v14 }
  0xfd   : > { %709 = vst.msk [vmem:[%s1119_s6 + $0x10] sm:$0xf] %vm704_vm2, %v878_v15  ;;  %725 = vst.msk [vmem:[%s1119_s6 + $0x50] sm:$0xf] %vm704_vm2, %v894_v16  ;;  %v879_v21 = vpack.c.bf16 %v549_v17, %v549_v17  ;;  %v895_v23 = vpack.c.bf16 %v565_v18, %v565_v18  ;;  %v947_v24 = vpop.f32.mrb[8].mxu0  ;;  %v963_v25 = vpop.f32.mrb[8].mxu1 }
  0xfe   : > { %712 = vst.msk [vmem:[%s1119_s6 + $0x1c] sm:$0xf] %vm704_vm2, %v881_v19  ;;  %728 = vst.msk [vmem:[%s1119_s6 + $0x5c] sm:$0xf] %vm704_vm2, %v897_v20  ;;  %v458_v26 = vadd.f32 %v947_v24, %v1106_v22  ;;  %v522_v27 = vadd.f32 %v963_v25, %v1106_v22  ;;  %v449_v28 = vpop.f32.mrb[9].mxu0  ;;  %v513_v29 = vpop.f32.mrb[9].mxu1 }
  0xff   : > { %710 = vst.msk [vmem:[%s1119_s6 + $0x14] sm:$0xf] %vm704_vm2, %v879_v21  ;;  %726 = vst.msk [vmem:[%s1119_s6 + $0x54] sm:$0xf] %vm704_vm2, %v895_v23  ;;  %v450_v30 = vadd.f32 %v1106_v22, %v449_v28  ;;  %v514_v31 = vadd.f32 %v1106_v22, %v513_v29  ;;  %v948_v32 = vpop.f32.mrb[10].mxu0  ;;  %v964_v33 = vpop.f32.mrb[10].mxu1 }
 0x100   : > { %v554_v34 = vmax.f32 %v458_v26, 0.0  ;;  %v570_v35 = vmax.f32 %v522_v27, 0.0  ;;  %v461_v36 = vadd.f32 %v948_v32, %v1106_v22  ;;  %v525_v37 = vadd.f32 %v964_v33, %v1106_v22  ;;  %v452_v38 = vpop.f32.mrb[11].mxu0  ;;  %v516_v39 = vpop.f32.mrb[11].mxu1 }
 0x101   : > { %v552_v40 = vmax.f32 %v450_v30, 0.0  ;;  %v568_v41 = vmax.f32 %v514_v31, 0.0  ;;  %v453_v42 = vadd.f32 %v1106_v22, %v452_v38  ;;  %v517_v43 = vadd.f32 %v1106_v22, %v516_v39 }
 0x102   : > { %v884_v44 = vpack.c.bf16 %v554_v34, %v554_v34  ;;  %v900_v45 = vpack.c.bf16 %v570_v35, %v570_v35  ;;  %v555_v46 = vmax.f32 %v461_v36, 0.0  ;;  %v571_v47 = vmax.f32 %v525_v37, 0.0 }
 0x103   : > { %v882_v48 = vpack.c.bf16 %v552_v40, %v552_v40  ;;  %v898_v49 = vpack.c.bf16 %v568_v41, %v568_v41  ;;  %v553_v50 = vmax.f32 %v453_v42, 0.0  ;;  %v569_v51 = vmax.f32 %v517_v43, 0.0 }
 0x104   : > { %715 = vst.msk [vmem:[%s1119_s6 + $0x28] sm:$0xf] %vm704_vm2, %v884_v44  ;;  %731 = vst.msk [vmem:[%s1119_s6 + $0x68] sm:$0xf] %vm704_vm2, %v900_v45  ;;  %v885_v52 = vpack.c.bf16 %v555_v46, %v555_v46  ;;  %v901_v53 = vpack.c.bf16 %v571_v47, %v571_v47 }
 0x105   : > { %713 = vst.msk [vmem:[%s1119_s6 + $0x20] sm:$0xf] %vm704_vm2, %v882_v48  ;;  %729 = vst.msk [vmem:[%s1119_s6 + $0x60] sm:$0xf] %vm704_vm2, %v898_v49  ;;  %v883_v54 = vpack.c.bf16 %v553_v50, %v553_v50  ;;  %v899_v55 = vpack.c.bf16 %v569_v51, %v569_v51  ;;  %v951_v56 = vpop.f32.mrb[12].mxu0  ;;  %v967_v57 = vpop.f32.mrb[12].mxu1 }
 0x106   : > { %716 = vst.msk [vmem:[%s1119_s6 + $0x2c] sm:$0xf] %vm704_vm2, %v885_v52  ;;  %732 = vst.msk [vmem:[%s1119_s6 + $0x6c] sm:$0xf] %vm704_vm2, %v901_v53  ;;  %v474_v58 = vadd.f32 %v951_v56, %v1106_v22  ;;  %v538_v59 = vadd.f32 %v967_v57, %v1106_v22  ;;  %v465_v60 = vpop.f32.mrb[13].mxu0  ;;  %v529_v61 = vpop.f32.mrb[13].mxu1 }
 0x107   : > { %714 = vst.msk [vmem:[%s1119_s6 + $0x24] sm:$0xf] %vm704_vm2, %v883_v54  ;;  %730 = vst.msk [vmem:[%s1119_s6 + $0x64] sm:$0xf] %vm704_vm2, %v899_v55  ;;  %v466_v62 = vadd.f32 %v1106_v22, %v465_v60  ;;  %v530_v63 = vadd.f32 %v1106_v22, %v529_v61  ;;  %v952_v0 = vpop.f32.mrb[14].mxu0  ;;  %v968_v1 = vpop.f32.mrb[14].mxu1 }
 0x108   : > { %v558_v2 = vmax.f32 %v474_v58, 0.0  ;;  %v574_v3 = vmax.f32 %v538_v59, 0.0  ;;  %v477_v4 = vadd.f32 %v952_v0, %v1106_v22  ;;  %v541_v5 = vadd.f32 %v968_v1, %v1106_v22  ;;  %v468_v6 = vpop.f32.mrb[15].mxu0  ;;  %v532_v7 = vpop.f32.mrb[15].mxu1 }
 0x109   : > { %v556_v8 = vmax.f32 %v466_v62, 0.0  ;;  %v572_v9 = vmax.f32 %v530_v63, 0.0  ;;  %v469_v10 = vadd.f32 %v1106_v22, %v468_v6  ;;  %v533_v11 = vadd.f32 %v1106_v22, %v532_v7 }
 0x10a   : > { %v888_v12 = vpack.c.bf16 %v558_v2, %v558_v2  ;;  %v904_v13 = vpack.c.bf16 %v574_v3, %v574_v3  ;;  %v559_v14 = vmax.f32 %v477_v4, 0.0  ;;  %v575_v15 = vmax.f32 %v541_v5, 0.0 }
 0x10b   : > { %v886_v16 = vpack.c.bf16 %v556_v8, %v556_v8  ;;  %v902_v17 = vpack.c.bf16 %v572_v9, %v572_v9  ;;  %v557_v18 = vmax.f32 %v469_v10, 0.0  ;;  %v573_v19 = vmax.f32 %v533_v11, 0.0 }
 0x10c   : > { %719 = vst.msk [vmem:[%s1119_s6 + $0x38] sm:$0xf] %vm704_vm2, %v888_v12  ;;  %735 = vst.msk [vmem:[%s1119_s6 + $0x78] sm:$0xf] %vm704_vm2, %v904_v13  ;;  %v889_v20 = vpack.c.bf16 %v559_v14, %v559_v14  ;;  %v905_v21 = vpack.c.bf16 %v575_v15, %v575_v15 }
 0x10d   : > { %717 = vst.msk [vmem:[%s1119_s6 + $0x30] sm:$0xf] %vm704_vm2, %v886_v16  ;;  %733 = vst.msk [vmem:[%s1119_s6 + $0x70] sm:$0xf] %vm704_vm2, %v902_v17  ;;  %v887_v22 = vpack.c.bf16 %v557_v18, %v557_v18  ;;  %v903_v23 = vpack.c.bf16 %v573_v19, %v573_v19 }
 0x10e   : > { %720 = vst.msk [vmem:[%s1119_s6 + $0x3c] sm:$0xf] %vm704_vm2, %v889_v20  ;;  %736 = vst.msk [vmem:[%s1119_s6 + $0x7c] sm:$0xf] %vm704_vm2, %v905_v21 }
 0x10f   : > { %718 = vst.msk [vmem:[%s1119_s6 + $0x34] sm:$0xf] %vm704_vm2, %v887_v22  ;;  %734 = vst.msk [vmem:[%s1119_s6 + $0x74] sm:$0xf] %vm704_vm2, %v903_v23 }
 0x110 PF: > { %s13_s12 = sadd.s32 1, %s1016_s12  }
 0x111   : > { %p10_p4 = scmp.ge.s32.totalorder %s13_s12, 4  }
 0x113   :  { %12 = sbr.rel (!%p10_p4) target bundleno = 1 (0x1), region = 62 }

// kernel: small_encoder_forward.35
= control target key start
LH: loop header
LB: loop body
LE: loop exit
PB: predicated region body
PF: predicated region fallthrough
CT: control target
= control target key end

     0   :  { %s991_s12 = smov 0   ;;  %s1158_s0 = inlined_call_operand.vmem [shape: bf16[512,32], index: 0, kind: input, shape index: {}]   ;;  %s1159_s1 = inlined_call_operand.vmem [shape: bf16[32,16], index: 1, kind: input, shape index: {}]   ;;  %s1160_s2 = inlined_call_operand.vmem [shape: f32[1,16], index: 2, kind: input, shape index: {}]   ;;  %s1161_s3 = inlined_call_operand.vmem [shape: bf16[512,16], index: 3, kind: output, shape index: {}]  }
   0x1 LB: > { %s769_s13 = sadd.s32 4294967295, %s969_s12   ;;  %p773_p0 = scmp.ge.s32.totalorder %s969_s12, 1  ;;  %s969_s12 = sphi %s991_s12, %s13_s12  }
   0x2   : > { %p138_p1 = scmp.lt.s32.totalorder %s969_s12, 3 }
   0x4   : > { %p139_p2 = pnand %p773_p0, %p138_p1 }
   0x5   : > { %v945_v0 = vld [vmem:[%s1159_s1] sm:$0xff] (!%p139_p2)   ;;  %s774_s16 = sshll.u32 (!%p139_p2), %s769_s13, 5  ;;  %v946_v1 = vld [vmem:[%s1159_s1 + $0x8] sm:$0xff] (!%p139_p2)   ;;  %vm310_vm0 = vcmask (!%p139_p2), 261120   ;;  %vm680_vm1 = vcmask (!%p139_p2), 125952  }
   0x6   : > { %142 = sbr.rel (%p139_p2) target bundleno = 265 (0x109), region = 32  ;;  %p163_p3 = scmp.lt.s32.totalorder (!%p139_p2), %s774_s16, 63  ;;  %897 = vmatprep.subr.bf16.mxu0 (!%p139_p2), %v945_v0  ;;  %933 = vmatprep.subr.bf16.mxu1 (!%p139_p2), %v945_v0  ;;  %v1050_v18 = vld [vmem:[%s1160_s2] ss:$0 sm:$0xff] (!%p139_p2) }
   0x7   : > { %898 = vmatpush3.bf16.msra.mxu0 (!%p139_p2), %v945_v0  ;;  %935 = vmatpush3.bf16.msra.mxu1 (!%p139_p2), %v945_v0 }
   0x8   : > { %899 = vmatprep.subr.bf16.mxu0 (!%p139_p2), %v946_v1  ;;  %934 = vmatprep.subr.bf16.mxu1 (!%p139_p2), %v946_v1 }
   0xb   : > { %900 = vmatpush3.bf16.msra.mxu0 (!%p139_p2), %v946_v1  ;;  %936 = vmatpush3.bf16.msra.mxu1 (!%p139_p2), %v946_v1 }
   0xd   : > { %s1163_s16 = smov (!%p163_p3, %s774_s16), 63 }
   0xe   : > { %s775_s19 = sshll.u32 %s1163_s16, 2 }
   0xf   : > { %s1013_s22 = scalar_lea.vmem %s1158_s0, %s775_s19  ;;  %s1062_s27 = scalar_lea.vmem %s1161_s3, %s775_s19 }
  0x10   : > { %v947_v2 = vld [vmem:[%s1013_s22] sm:$0xff]   ;;  %v949_v4 = vld [vmem:[%s1013_s22 + $0x8] sm:$0xff]   ;;  %v951_v6 = vld [vmem:[%s1013_s22 + $0x10] sm:$0xff]  }
  0x11   : > { %v948_v3 = vld [vmem:[%s1013_s22 + $0x40] sm:$0xff]   ;;  %901 = vmatprep.mubr.msk.bf16.mxu0 %vm310_vm0, %v947_v2  ;;  %v950_v5 = vld [vmem:[%s1013_s22 + $0x48] sm:$0xff]   ;;  %v952_v7 = vld [vmem:[%s1013_s22 + $0x50] sm:$0xff]  }
  0x12   : > { %917 = vmatprep.mubr.msk.bf16.mxu1 %vm310_vm0, %v948_v3  ;;  %902 = vmatmul.mubr.msk.bf16.vlgmr.msra.gmra.mrb[0].mxu0 %vm310_vm0, %v949_v4  ;;  %v953_v8 = vld [vmem:[%s1013_s22 + $0x18] sm:$0xff]   ;;  %v955_v10 = vld [vmem:[%s1013_s22 + $0x20] sm:$0xff]   ;;  %v957_v12 = vld [vmem:[%s1013_s22 + $0x28] sm:$0xff]  }
  0x13   : > { %918 = vmatmul.mubr.msk.bf16.vlgmr.msra.gmra.mrb[0].mxu1 %vm310_vm0, %v950_v5  ;;  %905 = vmatprep.mubr.msk.bf16.mxu0 %vm310_vm0, %v951_v6  ;;  %v954_v9 = vld [vmem:[%s1013_s22 + $0x58] sm:$0xff]   ;;  %v956_v11 = vld [vmem:[%s1013_s22 + $0x60] sm:$0xff]   ;;  %v958_v13 = vld [vmem:[%s1013_s22 + $0x68] sm:$0xff]  }
  0x14   : > { %921 = vmatprep.mubr.msk.bf16.mxu1 %vm310_vm0, %v952_v7  ;;  %v959_v14 = vld [vmem:[%s1013_s22 + $0x30] sm:$0xff]   ;;  %v961_v16 = vld [vmem:[%s1013_s22 + $0x38] sm:$0xff]  }
  0x15   : > { %v960_v15 = vld [vmem:[%s1013_s22 + $0x70] sm:$0xff]   ;;  %v962_v17 = vld [vmem:[%s1013_s22 + $0x78] sm:$0xff]  }
  0x1a   : > { %906 = vmatmul.mubr.msk.bf16.gmra.mrb[4].mxu0 %vm310_vm0, %v953_v8 }
  0x1b   : > { %922 = vmatmul.mubr.msk.bf16.gmra.mrb[4].mxu1 %vm310_vm0, %v954_v9  ;;  %909 = vmatprep.mubr.msk.bf16.mxu0 %vm310_vm0, %v955_v10 }
  0x1c   : > { %925 = vmatprep.mubr.msk.bf16.mxu1 %vm310_vm0, %v956_v11 }
  0x22   : > { %910 = vmatmul.mubr.msk.bf16.gmra.mrb[8].mxu0 %vm310_vm0, %v957_v12 }
  0x23   : > { %926 = vmatmul.mubr.msk.bf16.gmra.mrb[8].mxu1 %vm310_vm0, %v958_v13  ;;  %913 = vmatprep.mubr.msk.bf16.mxu0 %vm310_vm0, %v959_v14 }
  0x24   : > { %929 = vmatprep.mubr.msk.bf16.mxu1 %vm310_vm0, %v960_v15 }
  0x2a   : > { %914 = vmatmul.mubr.msk.bf16.gmra.mrb[12].mxu0 %vm310_vm0, %v961_v16 }
  0x2b   : > { %930 = vmatmul.mubr.msk.bf16.gmra.mrb[12].mxu1 %vm310_vm0, %v962_v17 }
  0xe5   : > { %v903_v19 = vpop.f32.mrb[0].mxu0 }
  0xe6   : > { %v402_v20 = vadd.f32 %v903_v19, %v1050_v18  ;;  %v919_v21 = vpop.f32.mrb[0].mxu1  ;;  %v393_v22 = vpop.f32.mrb[1].mxu0 }
  0xe7   : > { %v466_v23 = vadd.f32 %v919_v21, %v1050_v18  ;;  %v394_v24 = vadd.f32 %v1050_v18, %v393_v22  ;;  %v457_v25 = vpop.f32.mrb[1].mxu1  ;;  %v904_v26 = vpop.f32.mrb[2].mxu0 }
  0xe8   : > { %v522_v27 = vmax.f32 %v402_v20, 0.0  ;;  %v458_v28 = vadd.f32 %v1050_v18, %v457_v25  ;;  %v405_v29 = vadd.f32 %v904_v26, %v1050_v18  ;;  %v920_v30 = vpop.f32.mrb[2].mxu1  ;;  %v396_v31 = vpop.f32.mrb[3].mxu0 }
  0xe9   : > { %v538_v32 = vmax.f32 %v466_v23, 0.0  ;;  %v520_v33 = vmax.f32 %v394_v24, 0.0  ;;  %v469_v34 = vadd.f32 %v920_v30, %v1050_v18  ;;  %v397_v35 = vadd.f32 %v1050_v18, %v396_v31  ;;  %v460_v36 = vpop.f32.mrb[3].mxu1 }
  0xea   : > { %v849_v37 = vpack.c.bf16 %v522_v27, %v522_v27  ;;  %v536_v38 = vmax.f32 %v458_v28, 0.0  ;;  %v523_v39 = vmax.f32 %v405_v29, 0.0  ;;  %v461_v40 = vadd.f32 %v1050_v18, %v460_v36 }
  0xeb   : > { %v865_v41 = vpack.c.bf16 %v538_v32, %v538_v32  ;;  %v847_v42 = vpack.c.bf16 %v520_v33, %v520_v33  ;;  %v539_v43 = vmax.f32 %v469_v34, 0.0  ;;  %v521_v44 = vmax.f32 %v397_v35, 0.0 }
  0xec   : > { %683 = vst.msk [vmem:[%s1062_s27 + $0x8] sm:$0xf] %vm680_vm1, %v849_v37  ;;  %v863_v45 = vpack.c.bf16 %v536_v38, %v536_v38  ;;  %v850_v46 = vpack.c.bf16 %v523_v39, %v523_v39  ;;  %v537_v47 = vmax.f32 %v461_v40, 0.0 }
  0xed   : > { %699 = vst.msk [vmem:[%s1062_s27 + $0x48] sm:$0xf] %vm680_vm1, %v865_v41  ;;  %681 = vst.msk [vmem:[%s1062_s27] sm:$0xf] %vm680_vm1, %v847_v42  ;;  %v866_v48 = vpack.c.bf16 %v539_v43, %v539_v43  ;;  %v848_v49 = vpack.c.bf16 %v521_v44, %v521_v44  ;;  %v907_v50 = vpop.f32.mrb[4].mxu0 }
  0xee   : > { %697 = vst.msk [vmem:[%s1062_s27 + $0x40] sm:$0xf] %vm680_vm1, %v863_v45  ;;  %684 = vst.msk [vmem:[%s1062_s27 + $0xc] sm:$0xf] %vm680_vm1, %v850_v46  ;;  %v864_v51 = vpack.c.bf16 %v537_v47, %v537_v47  ;;  %v418_v52 = vadd.f32 %v907_v50, %v1050_v18  ;;  %v923_v53 = vpop.f32.mrb[4].mxu1  ;;  %v409_v54 = vpop.f32.mrb[5].mxu0 }
  0xef   : > { %700 = vst.msk [vmem:[%s1062_s27 + $0x4c] sm:$0xf] %vm680_vm1, %v866_v48  ;;  %682 = vst.msk [vmem:[%s1062_s27 + $0x4] sm:$0xf] %vm680_vm1, %v848_v49  ;;  %v482_v55 = vadd.f32 %v923_v53, %v1050_v18  ;;  %v410_v56 = vadd.f32 %v1050_v18, %v409_v54  ;;  %v473_v57 = vpop.f32.mrb[5].mxu1  ;;  %v908_v58 = vpop.f32.mrb[6].mxu0 }
  0xf0   : > { %698 = vst.msk [vmem:[%s1062_s27 + $0x44] sm:$0xf] %vm680_vm1, %v864_v51  ;;  %v526_v59 = vmax.f32 %v418_v52, 0.0  ;;  %v474_v60 = vadd.f32 %v1050_v18, %v473_v57  ;;  %v421_v61 = vadd.f32 %v908_v58, %v1050_v18  ;;  %v924_v62 = vpop.f32.mrb[6].mxu1  ;;  %v412_v63 = vpop.f32.mrb[7].mxu0 }
  0xf1   : > { %v542_v0 = vmax.f32 %v482_v55, 0.0  ;;  %v524_v1 = vmax.f32 %v410_v56, 0.0  ;;  %v485_v2 = vadd.f32 %v924_v62, %v1050_v18  ;;  %v413_v3 = vadd.f32 %v1050_v18, %v412_v63  ;;  %v476_v4 = vpop.f32.mrb[7].mxu1 }
  0xf2   : > { %v853_v5 = vpack.c.bf16 %v526_v59, %v526_v59  ;;  %v540_v6 = vmax.f32 %v474_v60, 0.0  ;;  %v527_v7 = vmax.f32 %v421_v61, 0.0  ;;  %v477_v8 = vadd.f32 %v1050_v18, %v476_v4 }
  0xf3   : > { %v869_v9 = vpack.c.bf16 %v542_v0, %v542_v0  ;;  %v851_v10 = vpack.c.bf16 %v524_v1, %v524_v1  ;;  %v543_v11 = vmax.f32 %v485_v2, 0.0  ;;  %v525_v12 = vmax.f32 %v413_v3, 0.0 }
  0xf4   : > { %687 = vst.msk [vmem:[%s1062_s27 + $0x18] sm:$0xf] %vm680_vm1, %v853_v5  ;;  %v867_v13 = vpack.c.bf16 %v540_v6, %v540_v6  ;;  %v854_v14 = vpack.c.bf16 %v527_v7, %v527_v7  ;;  %v541_v15 = vmax.f32 %v477_v8, 0.0 }
  0xf5   : > { %703 = vst.msk [vmem:[%s1062_s27 + $0x58] sm:$0xf] %vm680_vm1, %v869_v9  ;;  %685 = vst.msk [vmem:[%s1062_s27 + $0x10] sm:$0xf] %vm680_vm1, %v851_v10  ;;  %v870_v16 = vpack.c.bf16 %v543_v11, %v543_v11  ;;  %v852_v17 = vpack.c.bf16 %v525_v12, %v525_v12  ;;  %v911_v19 = vpop.f32.mrb[8].mxu0 }
  0xf6   : > { %701 = vst.msk [vmem:[%s1062_s27 + $0x50] sm:$0xf] %vm680_vm1, %v867_v13  ;;  %688 = vst.msk [vmem:[%s1062_s27 + $0x1c] sm:$0xf] %vm680_vm1, %v854_v14  ;;  %v868_v20 = vpack.c.bf16 %v541_v15, %v541_v15  ;;  %v434_v21 = vadd.f32 %v911_v19, %v1050_v18  ;;  %v927_v22 = vpop.f32.mrb[8].mxu1  ;;  %v425_v23 = vpop.f32.mrb[9].mxu0 }
  0xf7   : > { %704 = vst.msk [vmem:[%s1062_s27 + $0x5c] sm:$0xf] %vm680_vm1, %v870_v16  ;;  %686 = vst.msk [vmem:[%s1062_s27 + $0x14] sm:$0xf] %vm680_vm1, %v852_v17  ;;  %v498_v24 = vadd.f32 %v927_v22, %v1050_v18  ;;  %v426_v25 = vadd.f32 %v1050_v18, %v425_v23  ;;  %v489_v26 = vpop.f32.mrb[9].mxu1  ;;  %v912_v27 = vpop.f32.mrb[10].mxu0 }
  0xf8   : > { %702 = vst.msk [vmem:[%s1062_s27 + $0x54] sm:$0xf] %vm680_vm1, %v868_v20  ;;  %v530_v28 = vmax.f32 %v434_v21, 0.0  ;;  %v490_v29 = vadd.f32 %v1050_v18, %v489_v26  ;;  %v437_v30 = vadd.f32 %v912_v27, %v1050_v18  ;;  %v928_v31 = vpop.f32.mrb[10].mxu1  ;;  %v428_v32 = vpop.f32.mrb[11].mxu0 }
  0xf9   : > { %v546_v33 = vmax.f32 %v498_v24, 0.0  ;;  %v528_v34 = vmax.f32 %v426_v25, 0.0  ;;  %v501_v35 = vadd.f32 %v928_v31, %v1050_v18  ;;  %v429_v36 = vadd.f32 %v1050_v18, %v428_v32  ;;  %v492_v37 = vpop.f32.mrb[11].mxu1 }
  0xfa   : > { %v857_v38 = vpack.c.bf16 %v530_v28, %v530_v28  ;;  %v544_v39 = vmax.f32 %v490_v29, 0.0  ;;  %v531_v40 = vmax.f32 %v437_v30, 0.0  ;;  %v493_v41 = vadd.f32 %v1050_v18, %v492_v37 }
  0xfb   : > { %v873_v42 = vpack.c.bf16 %v546_v33, %v546_v33  ;;  %v855_v43 = vpack.c.bf16 %v528_v34, %v528_v34  ;;  %v547_v44 = vmax.f32 %v501_v35, 0.0  ;;  %v529_v45 = vmax.f32 %v429_v36, 0.0 }
  0xfc   : > { %691 = vst.msk [vmem:[%s1062_s27 + $0x28] sm:$0xf] %vm680_vm1, %v857_v38  ;;  %v871_v46 = vpack.c.bf16 %v544_v39, %v544_v39  ;;  %v858_v47 = vpack.c.bf16 %v531_v40, %v531_v40  ;;  %v545_v48 = vmax.f32 %v493_v41, 0.0 }
  0xfd   : > { %707 = vst.msk [vmem:[%s1062_s27 + $0x68] sm:$0xf] %vm680_vm1, %v873_v42  ;;  %689 = vst.msk [vmem:[%s1062_s27 + $0x20] sm:$0xf] %vm680_vm1, %v855_v43  ;;  %v874_v49 = vpack.c.bf16 %v547_v44, %v547_v44  ;;  %v856_v50 = vpack.c.bf16 %v529_v45, %v529_v45  ;;  %v915_v51 = vpop.f32.mrb[12].mxu0 }
  0xfe   : > { %705 = vst.msk [vmem:[%s1062_s27 + $0x60] sm:$0xf] %vm680_vm1, %v871_v46  ;;  %692 = vst.msk [vmem:[%s1062_s27 + $0x2c] sm:$0xf] %vm680_vm1, %v858_v47  ;;  %v872_v52 = vpack.c.bf16 %v545_v48, %v545_v48  ;;  %v450_v53 = vadd.f32 %v915_v51, %v1050_v18  ;;  %v931_v54 = vpop.f32.mrb[12].mxu1  ;;  %v441_v55 = vpop.f32.mrb[13].mxu0 }
  0xff   : > { %708 = vst.msk [vmem:[%s1062_s27 + $0x6c] sm:$0xf] %vm680_vm1, %v874_v49  ;;  %690 = vst.msk [vmem:[%s1062_s27 + $0x24] sm:$0xf] %vm680_vm1, %v856_v50  ;;  %v514_v56 = vadd.f32 %v931_v54, %v1050_v18  ;;  %v442_v57 = vadd.f32 %v1050_v18, %v441_v55  ;;  %v505_v58 = vpop.f32.mrb[13].mxu1  ;;  %v916_v59 = vpop.f32.mrb[14].mxu0 }
 0x100   : > { %706 = vst.msk [vmem:[%s1062_s27 + $0x64] sm:$0xf] %vm680_vm1, %v872_v52  ;;  %v534_v60 = vmax.f32 %v450_v53, 0.0  ;;  %v506_v61 = vadd.f32 %v1050_v18, %v505_v58  ;;  %v453_v62 = vadd.f32 %v916_v59, %v1050_v18  ;;  %v932_v63 = vpop.f32.mrb[14].mxu1  ;;  %v444_v0 = vpop.f32.mrb[15].mxu0 }
 0x101   : > { %v550_v1 = vmax.f32 %v514_v56, 0.0  ;;  %v532_v2 = vmax.f32 %v442_v57, 0.0  ;;  %v517_v3 = vadd.f32 %v932_v63, %v1050_v18  ;;  %v445_v4 = vadd.f32 %v1050_v18, %v444_v0  ;;  %v508_v5 = vpop.f32.mrb[15].mxu1 }
 0x102   : > { %v861_v6 = vpack.c.bf16 %v534_v60, %v534_v60  ;;  %v548_v7 = vmax.f32 %v506_v61, 0.0  ;;  %v535_v8 = vmax.f32 %v453_v62, 0.0  ;;  %v509_v9 = vadd.f32 %v1050_v18, %v508_v5 }
 0x103   : > { %v877_v10 = vpack.c.bf16 %v550_v1, %v550_v1  ;;  %v859_v11 = vpack.c.bf16 %v532_v2, %v532_v2  ;;  %v551_v12 = vmax.f32 %v517_v3, 0.0  ;;  %v533_v13 = vmax.f32 %v445_v4, 0.0 }
 0x104   : > { %695 = vst.msk [vmem:[%s1062_s27 + $0x38] sm:$0xf] %vm680_vm1, %v861_v6  ;;  %v875_v14 = vpack.c.bf16 %v548_v7, %v548_v7  ;;  %v862_v15 = vpack.c.bf16 %v535_v8, %v535_v8  ;;  %v549_v16 = vmax.f32 %v509_v9, 0.0 }
 0x105   : > { %711 = vst.msk [vmem:[%s1062_s27 + $0x78] sm:$0xf] %vm680_vm1, %v877_v10  ;;  %693 = vst.msk [vmem:[%s1062_s27 + $0x30] sm:$0xf] %vm680_vm1, %v859_v11  ;;  %v878_v17 = vpack.c.bf16 %v551_v12, %v551_v12  ;;  %v860_v19 = vpack.c.bf16 %v533_v13, %v533_v13 }
 0x106   : > { %709 = vst.msk [vmem:[%s1062_s27 + $0x70] sm:$0xf] %vm680_vm1, %v875_v14  ;;  %696 = vst.msk [vmem:[%s1062_s27 + $0x3c] sm:$0xf] %vm680_vm1, %v862_v15  ;;  %v876_v18 = vpack.c.bf16 %v549_v16, %v549_v16 }
 0x107   : > { %712 = vst.msk [vmem:[%s1062_s27 + $0x7c] sm:$0xf] %vm680_vm1, %v878_v17  ;;  %694 = vst.msk [vmem:[%s1062_s27 + $0x34] sm:$0xf] %vm680_vm1, %v860_v19 }
 0x108   : > { %710 = vst.msk [vmem:[%s1062_s27 + $0x74] sm:$0xf] %vm680_vm1, %v876_v18 }
 0x109 PF: > { %s13_s12 = sadd.s32 1, %s969_s12  }
 0x10a   : > { %p10_p4 = scmp.ge.s32.totalorder %s13_s12, 4  }
 0x10c   :  { %12 = sbr.rel (!%p10_p4) target bundleno = 1 (0x1), region = 62 }

// kernel: small_encoder_forward.31
= control target key start
LH: loop header
LB: loop body
LE: loop exit
PB: predicated region body
PF: predicated region fallthrough
CT: control target
= control target key end

     0   :  { %s1248_s15 = smov 0   ;;  %s1557_s0 = inlined_call_operand.vmem [shape: bf16[512,8], index: 0, kind: input, shape index: {}]   ;;  %s1558_s1 = inlined_call_operand.vmem [shape: bf16[8,32], index: 1, kind: input, shape index: {}]   ;;  %s1559_s2 = inlined_call_operand.vmem [shape: f32[1,32], index: 2, kind: input, shape index: {}]   ;;  %s1560_s3 = inlined_call_operand.vmem [shape: bf16[512,32], index: 3, kind: input, shape index: {}]   ;;  %s1561_s4 = inlined_call_operand.vmem [shape: bf16[512,32], index: 4, kind: output, shape index: {}]  }
   0x1 LB: > { %s947_s16 = sadd.s32 4294967295, %s1221_s15   ;;  %p951_p0 = scmp.ge.s32.totalorder %s1221_s15, 1  ;;  %s1221_s15 = sphi %s1248_s15, %s14_s15  }
   0x2   : > { %p174_p1 = scmp.lt.s32.totalorder %s1221_s15, 3 }
   0x4   : > { %p175_p2 = pnand %p951_p0, %p174_p1 }
   0x5   : > { %v256_v0 = vld [vmem:[%s1558_s1] sm:$0xf] (!%p175_p2)  ;;  %vm393_vm0 = vcmask (!%p175_p2), 1043456   ;;  %s952_s19 = sshll.u32 (!%p175_p2), %s947_s16, 5  ;;  %vm344_vm1 = vcmask (!%p175_p2), 64512   ;;  %vm846_vm2 = vcmask (!%p175_p2), 257024  }
   0x6   : > { %178 = sbr.rel (%p175_p2) target bundleno = 278 (0x116), region = 36  ;;  %1189 = vmatprep.subr.msk.bf16.mxu0 (!%p175_p2), %vm393_vm0, %v256_v0  ;;  %1190 = vmatprep.subr.msk.bf16.mxu1 (!%p175_p2), %vm393_vm0, %v256_v0  ;;  %v395_v1 = vsel (!%p175_p2), %vm393_vm0, %v256_v0, 0  ;;  %p206_p3 = scmp.lt.s32.totalorder (!%p175_p2), %s952_s19, 63  ;;  %v1364_v46 = vld [vmem:[%s1559_s2] ss:$0 sm:$0xff] (!%p175_p2) }
   0x7   : > { %1154 = vmatpush3.bf16.msra.mxu0 (!%p175_p2), %v395_v1  ;;  %1188 = vmatpush3.bf16.msra.mxu1 (!%p175_p2), %v395_v1 }
   0xd   : > { %s1567_s19 = smov (!%p206_p3, %s952_s19), 63 }
   0xe   : > { %s1259_s20 = sshll.u32 %s1567_s19, 2 }
   0xf   : > { %s1265_s23 = scalar_lea.vmem %s1557_s0, %s1259_s20  ;;  %s1303_s26 = scalar_lea.vmem %s1560_s3, %s1259_s20 }
  0x10   : > { %v1199_v2 = vld [vmem:[%s1265_s23] sm:$0xff]   ;;  %v1201_v4 = vld [vmem:[%s1265_s23 + $0x8] sm:$0xff]   ;;  %v1203_v6 = vld [vmem:[%s1265_s23 + $0x10] sm:$0xff]   ;;  %s1410_s5 = scalar_lea.vmem %s1561_s4, %s1259_s20 }
  0x11   : > { %v1200_v3 = vld [vmem:[%s1265_s23 + $0x40] sm:$0xff]   ;;  %1155 = vmatprep.mubr.msk.bf16.mxu0 %vm344_vm1, %v1199_v2  ;;  %v1202_v5 = vld [vmem:[%s1265_s23 + $0x48] sm:$0xff]   ;;  %v1204_v7 = vld [vmem:[%s1265_s23 + $0x50] sm:$0xff]  }
  0x12   : > { %1171 = vmatprep.mubr.msk.bf16.mxu1 %vm344_vm1, %v1200_v3  ;;  %1156 = vmatmul.mubr.msk.bf16.vlgmr.msra.gmra.mrb[0].mxu0 %vm344_vm1, %v1201_v4  ;;  %v1205_v8 = vld [vmem:[%s1265_s23 + $0x18] sm:$0xff]   ;;  %v1207_v10 = vld [vmem:[%s1265_s23 + $0x20] sm:$0xff]   ;;  %v1209_v12 = vld [vmem:[%s1265_s23 + $0x28] sm:$0xff]  }
  0x13   : > { %1172 = vmatmul.mubr.msk.bf16.vlgmr.msra.gmra.mrb[0].mxu1 %vm344_vm1, %v1202_v5  ;;  %1159 = vmatprep.mubr.msk.bf16.mxu0 %vm344_vm1, %v1203_v6  ;;  %v1206_v9 = vld [vmem:[%s1265_s23 + $0x58] sm:$0xff]   ;;  %v1208_v11 = vld [vmem:[%s1265_s23 + $0x60] sm:$0xff]   ;;  %v1210_v13 = vld [vmem:[%s1265_s23 + $0x68] sm:$0xff]  }
  0x14   : > { %1175 = vmatprep.mubr.msk.bf16.mxu1 %vm344_vm1, %v1204_v7  ;;  %v1211_v14 = vld [vmem:[%s1265_s23 + $0x30] sm:$0xff]   ;;  %v1213_v16 = vld [vmem:[%s1265_s23 + $0x38] sm:$0xff]   ;;  %v1306_v18 = vld [vmem:[%s1303_s26 + $0x8] sm:$0xff]  }
  0x15   : > { %v1212_v15 = vld [vmem:[%s1265_s23 + $0x70] sm:$0xff]   ;;  %v1214_v17 = vld [vmem:[%s1265_s23 + $0x78] sm:$0xff]   ;;  %v1309_v19 = vld [vmem:[%s1303_s26 + $0x48] sm:$0xff]   ;;  %v1063_v24 = vunpack.c.l.bf16 %v1306_v18  ;;  %v1064_v30 = vunpack.c.h.bf16 %v1306_v18 }
  0x16   : > { %v1312_v20 = vld [vmem:[%s1303_s26] sm:$0xff]   ;;  %v1318_v22 = vld [vmem:[%s1303_s26 + $0x18] sm:$0xff]   ;;  %v1095_v25 = vunpack.c.l.bf16 %v1309_v19  ;;  %v1326_v26 = vld [vmem:[%s1303_s26 + $0x10] sm:$0xff]   ;;  %v1096_v31 = vunpack.c.h.bf16 %v1309_v19 }
  0x17   : > { %v1315_v21 = vld [vmem:[%s1303_s26 + $0x40] sm:$0xff]   ;;  %v1321_v23 = vld [vmem:[%s1303_s26 + $0x58] sm:$0xff]   ;;  %v1329_v27 = vld [vmem:[%s1303_s26 + $0x50] sm:$0xff]   ;;  %v1059_v28 = vunpack.c.l.bf16 %v1312_v20  ;;  %v1060_v34 = vunpack.c.h.bf16 %v1312_v20  ;;  %v1071_v36 = vunpack.c.l.bf16 %v1318_v22  ;;  %v1067_v40 = vunpack.c.l.bf16 %v1326_v26 }
  0x18   : > { %v1091_v29 = vunpack.c.l.bf16 %v1315_v21  ;;  %v1336_v32 = vld [vmem:[%s1303_s26 + $0x28] sm:$0xff]   ;;  %v1092_v35 = vunpack.c.h.bf16 %v1315_v21  ;;  %v1103_v37 = vunpack.c.l.bf16 %v1321_v23  ;;  %v1346_v38 = vld [vmem:[%s1303_s26 + $0x20] sm:$0xff]   ;;  %v1099_v41 = vunpack.c.l.bf16 %v1329_v27  ;;  %v1356_v44 = vld [vmem:[%s1303_s26 + $0x38] sm:$0xff]  }
  0x19   : > { %v1339_v33 = vld [vmem:[%s1303_s26 + $0x68] sm:$0xff]   ;;  %v1349_v39 = vld [vmem:[%s1303_s26 + $0x60] sm:$0xff]   ;;  %v1072_v42 = vunpack.c.h.bf16 %v1318_v22  ;;  %v1104_v43 = vunpack.c.h.bf16 %v1321_v23  ;;  %v1359_v45 = vld [vmem:[%s1303_s26 + $0x78] sm:$0xff]   ;;  %v1068_v47 = vunpack.c.h.bf16 %v1326_v26  ;;  %v1100_v48 = vunpack.c.h.bf16 %v1329_v27 }
  0x1a   : > { %1160 = vmatmul.mubr.msk.bf16.gmra.mrb[4].mxu0 %vm344_vm1, %v1205_v8  ;;  %v1079_v49 = vunpack.c.l.bf16 %v1336_v32  ;;  %v1111_v50 = vunpack.c.l.bf16 %v1339_v33  ;;  %v1371_v51 = vld [vmem:[%s1303_s26 + $0x30] sm:$0xff]   ;;  %v1075_v53 = vunpack.c.l.bf16 %v1346_v38  ;;  %v1107_v54 = vunpack.c.l.bf16 %v1349_v39 }
  0x1b   : > { %1176 = vmatmul.mubr.msk.bf16.gmra.mrb[4].mxu1 %vm344_vm1, %v1206_v9  ;;  %1163 = vmatprep.mubr.msk.bf16.mxu0 %vm344_vm1, %v1207_v10  ;;  %v1374_v52 = vld [vmem:[%s1303_s26 + $0x70] sm:$0xff]   ;;  %v1080_v55 = vunpack.c.h.bf16 %v1336_v32  ;;  %v1112_v56 = vunpack.c.h.bf16 %v1339_v33  ;;  %v1076_v58 = vunpack.c.h.bf16 %v1346_v38  ;;  %v1108_v59 = vunpack.c.h.bf16 %v1349_v39 }
  0x1c   : > { %1179 = vmatprep.mubr.msk.bf16.mxu1 %vm344_vm1, %v1208_v11  ;;  %v1087_v60 = vunpack.c.l.bf16 %v1356_v44  ;;  %v1119_v61 = vunpack.c.l.bf16 %v1359_v45  ;;  %v1083_v1 = vunpack.c.l.bf16 %v1371_v51  ;;  %v1115_v2 = vunpack.c.l.bf16 %v1374_v52 }
  0x22   : > { %1164 = vmatmul.mubr.msk.bf16.gmra.mrb[8].mxu0 %vm344_vm1, %v1209_v12 }
  0x23   : > { %1180 = vmatmul.mubr.msk.bf16.gmra.mrb[8].mxu1 %vm344_vm1, %v1210_v13  ;;  %1167 = vmatprep.mubr.msk.bf16.mxu0 %vm344_vm1, %v1211_v14 }
  0x24   : > { %1183 = vmatprep.mubr.msk.bf16.mxu1 %vm344_vm1, %v1212_v15 }
  0x2a   : > { %1168 = vmatmul.mubr.msk.bf16.gmra.mrb[12].mxu0 %vm344_vm1, %v1213_v16 }
  0x2b   : > { %1184 = vmatmul.mubr.msk.bf16.gmra.mrb[12].mxu1 %vm344_vm1, %v1214_v17 }
  0xe5   : > { %v1157_v57 = vpop.f32.mrb[0].mxu0 }
  0xe6   : > { %v440_v62 = vadd.f32 %v1157_v57, %v1364_v46  ;;  %v1173_v63 = vpop.f32.mrb[0].mxu1  ;;  %v431_v0 = vpop.f32.mrb[1].mxu0 }
  0xe7   : > { %v504_v4 = vadd.f32 %v1173_v63, %v1364_v46  ;;  %v432_v5 = vadd.f32 %v1364_v46, %v431_v0  ;;  %v495_v6 = vpop.f32.mrb[1].mxu1  ;;  %v1158_v7 = vpop.f32.mrb[2].mxu0 }
  0xe8   : > { %v560_v10 = vmax.f32 %v440_v62, 0.0  ;;  %v496_v11 = vadd.f32 %v1364_v46, %v495_v6  ;;  %v443_v12 = vadd.f32 %v1158_v7, %v1364_v46  ;;  %v1174_v13 = vpop.f32.mrb[2].mxu1  ;;  %v434_v14 = vpop.f32.mrb[3].mxu0 }
  0xe9   : > { %v576_v16 = vmax.f32 %v504_v4, 0.0  ;;  %v558_v17 = vmax.f32 %v432_v5, 0.0  ;;  %v507_v57 = vadd.f32 %v1174_v13, %v1364_v46  ;;  %v435_v63 = vadd.f32 %v1364_v46, %v434_v14  ;;  %v498_v0 = vpop.f32.mrb[3].mxu1 }
  0xea   : > { %v656_v8 = vadd.f32 %v1063_v24, %v560_v10  ;;  %v574_v3 = vmax.f32 %v496_v11, 0.0  ;;  %v561_v9 = vmax.f32 %v443_v12, 0.0  ;;  %v499_v62 = vadd.f32 %v1364_v46, %v498_v0 }
  0xeb   : > { %v672_v6 = vadd.f32 %v1095_v25, %v576_v16  ;;  %v654_v7 = vadd.f32 %v1059_v28, %v558_v17  ;;  %v577_v15 = vmax.f32 %v507_v57, 0.0  ;;  %v559_v4 = vmax.f32 %v435_v63, 0.0 }
  0xec   : > { %v688_v5 = vmax.f32 %v656_v8, 0.0  ;;  %v670_v13 = vadd.f32 %v1091_v29, %v574_v3  ;;  %v657_v14 = vadd.f32 %v1064_v30, %v561_v9  ;;  %v575_v24 = vmax.f32 %v499_v62, 0.0 }
  0xed   : > { %v704_v10 = vmax.f32 %v672_v6, 0.0  ;;  %v686_v25 = vmax.f32 %v654_v7, 0.0  ;;  %v673_v28 = vadd.f32 %v1096_v31, %v577_v15  ;;  %v655_v8 = vadd.f32 %v1060_v34, %v559_v4  ;;  %v1161_v11 = vpop.f32.mrb[4].mxu0 }
  0xee   : > { %v1027_v29 = vpack.c.bf16 %v688_v5, %v688_v5  ;;  %v702_v3 = vmax.f32 %v670_v13, 0.0  ;;  %v689_v18 = vmax.f32 %v657_v14, 0.0  ;;  %v671_v30 = vadd.f32 %v1092_v35, %v575_v24  ;;  %v1177_v9 = vpop.f32.mrb[4].mxu1  ;;  %v447_v12 = vpop.f32.mrb[5].mxu0 }
  0xef   : > { %v1043_v16 = vpack.c.bf16 %v704_v10, %v704_v10  ;;  %v1025_v17 = vpack.c.bf16 %v686_v25, %v686_v25  ;;  %v705_v57 = vmax.f32 %v673_v28, 0.0  ;;  %v687_v19 = vmax.f32 %v655_v8, 0.0  ;;  %v511_v63 = vpop.f32.mrb[5].mxu1  ;;  %v1162_v31 = vpop.f32.mrb[6].mxu0 }
  0xf0   : > { %849 = vst.msk [vmem:[%s1410_s5 + $0x8] sm:$0xf] %vm846_vm2, %v1027_v29  ;;  %v1041_v20 = vpack.c.bf16 %v702_v3, %v702_v3  ;;  %v1028_v34 = vpack.c.bf16 %v689_v18, %v689_v18  ;;  %v703_v15 = vmax.f32 %v671_v30, 0.0  ;;  %v456_v21 = vadd.f32 %v1161_v11, %v1364_v46  ;;  %v1178_v35 = vpop.f32.mrb[6].mxu1  ;;  %v450_v0 = vpop.f32.mrb[7].mxu0 }
  0xf1   : > { %865 = vst.msk [vmem:[%s1410_s5 + $0x48] sm:$0xf] %vm846_vm2, %v1043_v16  ;;  %847 = vst.msk [vmem:[%s1410_s5] sm:$0xf] %vm846_vm2, %v1025_v17  ;;  %v1044_v62 = vpack.c.bf16 %v705_v57, %v705_v57  ;;  %v1026_v6 = vpack.c.bf16 %v687_v19, %v687_v19  ;;  %v520_v7 = vadd.f32 %v1177_v9, %v1364_v46  ;;  %v514_v5 = vpop.f32.mrb[7].mxu1 }
  0xf2   : > { %v448_v4 = vadd.f32 %v1364_v46, %v447_v12  ;;  %863 = vst.msk [vmem:[%s1410_s5 + $0x40] sm:$0xf] %vm846_vm2, %v1041_v20  ;;  %850 = vst.msk [vmem:[%s1410_s5 + $0xc] sm:$0xf] %vm846_vm2, %v1028_v34  ;;  %v1042_v13 = vpack.c.bf16 %v703_v15, %v703_v15  ;;  %v564_v14 = vmax.f32 %v456_v21, 0.0  ;;  %v512_v24 = vadd.f32 %v1364_v46, %v511_v63 }
  0xf3   : > { %v459_v10 = vadd.f32 %v1162_v31, %v1364_v46  ;;  %866 = vst.msk [vmem:[%s1410_s5 + $0x4c] sm:$0xf] %vm846_vm2, %v1044_v62  ;;  %848 = vst.msk [vmem:[%s1410_s5 + $0x4] sm:$0xf] %vm846_vm2, %v1026_v6  ;;  %v580_v25 = vmax.f32 %v520_v7, 0.0  ;;  %v523_v8 = vadd.f32 %v1178_v35, %v1364_v46  ;;  %v451_v11 = vadd.f32 %v1364_v46, %v450_v0 }
  0xf4   : > { %v562_v28 = vmax.f32 %v448_v4, 0.0  ;;  %864 = vst.msk [vmem:[%s1410_s5 + $0x44] sm:$0xf] %vm846_vm2, %v1042_v13  ;;  %v660_v29 = vadd.f32 %v1071_v36, %v564_v14  ;;  %v578_v3 = vmax.f32 %v512_v24, 0.0  ;;  %v515_v30 = vadd.f32 %v1364_v46, %v514_v5 }
  0xf5   : > { %v565_v18 = vmax.f32 %v459_v10, 0.0  ;;  %v676_v9 = vadd.f32 %v1103_v37, %v580_v25  ;;  %v581_v16 = vmax.f32 %v523_v8, 0.0  ;;  %v563_v17 = vmax.f32 %v451_v11, 0.0  ;;  %v1165_v57 = vpop.f32.mrb[8].mxu0 }
  0xf6   : > { %v658_v12 = vadd.f32 %v1067_v40, %v562_v28  ;;  %v692_v19 = vmax.f32 %v660_v29, 0.0  ;;  %v674_v63 = vadd.f32 %v1099_v41, %v578_v3  ;;  %v579_v31 = vmax.f32 %v515_v30, 0.0  ;;  %v1181_v20 = vpop.f32.mrb[8].mxu1  ;;  %v463_v34 = vpop.f32.mrb[9].mxu0 }
  0xf7   : > { %v661_v36 = vadd.f32 %v1072_v42, %v565_v18  ;;  %v708_v15 = vmax.f32 %v676_v9, 0.0  ;;  %v677_v37 = vadd.f32 %v1104_v43, %v581_v16  ;;  %v659_v40 = vadd.f32 %v1068_v47, %v563_v17  ;;  %v527_v35 = vpop.f32.mrb[9].mxu1  ;;  %v1166_v0 = vpop.f32.mrb[10].mxu0 }
  0xf8   : > { %v690_v21 = vmax.f32 %v658_v12, 0.0  ;;  %v1031_v62 = vpack.c.bf16 %v692_v19, %v692_v19  ;;  %v706_v41 = vmax.f32 %v674_v63, 0.0  ;;  %v675_v42 = vadd.f32 %v1100_v48, %v579_v31  ;;  %v1182_v6 = vpop.f32.mrb[10].mxu1  ;;  %v466_v7 = vpop.f32.mrb[11].mxu0 }
  0xf9   : > { %v693_v22 = vmax.f32 %v661_v36, 0.0  ;;  %v1047_v4 = vpack.c.bf16 %v708_v15, %v708_v15  ;;  %v709_v43 = vmax.f32 %v677_v37, 0.0  ;;  %v691_v5 = vmax.f32 %v659_v40, 0.0  ;;  %v530_v26 = vpop.f32.mrb[11].mxu1 }
  0xfa   : > { %v1029_v23 = vpack.c.bf16 %v690_v21, %v690_v21  ;;  %853 = vst.msk [vmem:[%s1410_s5 + $0x18] sm:$0xf] %vm846_vm2, %v1031_v62  ;;  %v1045_v47 = vpack.c.bf16 %v706_v41, %v706_v41  ;;  %v707_v14 = vmax.f32 %v675_v42, 0.0  ;;  %v472_v24 = vadd.f32 %v1165_v57, %v1364_v46 }
  0xfb   : > { %v1032_v13 = vpack.c.bf16 %v693_v22, %v693_v22  ;;  %869 = vst.msk [vmem:[%s1410_s5 + $0x58] sm:$0xf] %vm846_vm2, %v1047_v4  ;;  %v1048_v27 = vpack.c.bf16 %v709_v43, %v709_v43  ;;  %v1030_v48 = vpack.c.bf16 %v691_v5, %v691_v5  ;;  %v536_v10 = vadd.f32 %v1181_v20, %v1364_v46 }
  0xfc   : > { %851 = vst.msk [vmem:[%s1410_s5 + $0x10] sm:$0xf] %vm846_vm2, %v1029_v23  ;;  %v464_v25 = vadd.f32 %v1364_v46, %v463_v34  ;;  %867 = vst.msk [vmem:[%s1410_s5 + $0x50] sm:$0xf] %vm846_vm2, %v1045_v47  ;;  %v1046_v28 = vpack.c.bf16 %v707_v14, %v707_v14  ;;  %v568_v8 = vmax.f32 %v472_v24, 0.0  ;;  %v528_v11 = vadd.f32 %v1364_v46, %v527_v35 }
  0xfd   : > { %854 = vst.msk [vmem:[%s1410_s5 + $0x1c] sm:$0xf] %vm846_vm2, %v1032_v13  ;;  %v475_v29 = vadd.f32 %v1166_v0, %v1364_v46  ;;  %870 = vst.msk [vmem:[%s1410_s5 + $0x5c] sm:$0xf] %vm846_vm2, %v1048_v27  ;;  %v584_v3 = vmax.f32 %v536_v10, 0.0  ;;  %v539_v30 = vadd.f32 %v1182_v6, %v1364_v46  ;;  %v467_v9 = vadd.f32 %v1364_v46, %v466_v7  ;;  %v1169_v12 = vpop.f32.mrb[12].mxu0 }
  0xfe   : > { %852 = vst.msk [vmem:[%s1410_s5 + $0x14] sm:$0xf] %vm846_vm2, %v1030_v48  ;;  %v566_v18 = vmax.f32 %v464_v25, 0.0  ;;  %868 = vst.msk [vmem:[%s1410_s5 + $0x54] sm:$0xf] %vm846_vm2, %v1046_v28  ;;  %v664_v16 = vadd.f32 %v1079_v49, %v568_v8  ;;  %v582_v17 = vmax.f32 %v528_v11, 0.0  ;;  %v531_v19 = vadd.f32 %v1364_v46, %v530_v26 }
  0xff   : > { %v569_v57 = vmax.f32 %v475_v29, 0.0  ;;  %v1185_v63 = vpop.f32.mrb[12].mxu1  ;;  %v479_v36 = vpop.f32.mrb[13].mxu0  ;;  %v680_v31 = vadd.f32 %v1111_v50, %v584_v3  ;;  %v585_v34 = vmax.f32 %v539_v30, 0.0  ;;  %v567_v15 = vmax.f32 %v467_v9, 0.0 }
 0x100   : > { %v662_v20 = vadd.f32 %v1075_v53, %v566_v18  ;;  %v543_v21 = vpop.f32.mrb[13].mxu1  ;;  %v1170_v37 = vpop.f32.mrb[14].mxu0  ;;  %v696_v40 = vmax.f32 %v664_v16, 0.0  ;;  %v678_v49 = vadd.f32 %v1107_v54, %v582_v17  ;;  %v583_v0 = vmax.f32 %v531_v19, 0.0 }
 0x101   : > { %v665_v35 = vadd.f32 %v1080_v55, %v569_v57  ;;  %v1186_v62 = vpop.f32.mrb[14].mxu1  ;;  %v482_v41 = vpop.f32.mrb[15].mxu0  ;;  %v712_v22 = vmax.f32 %v680_v31, 0.0  ;;  %v681_v53 = vadd.f32 %v1112_v56, %v585_v34  ;;  %v663_v42 = vadd.f32 %v1076_v58, %v567_v15 }
 0x102   : > { %v694_v50 = vmax.f32 %v662_v20, 0.0  ;;  %v546_v6 = vpop.f32.mrb[15].mxu1  ;;  %v1035_v7 = vpack.c.bf16 %v696_v40, %v696_v40  ;;  %v710_v54 = vmax.f32 %v678_v49, 0.0  ;;  %v679_v32 = vadd.f32 %v1108_v59, %v583_v0 }
 0x103   : > { %v697_v4 = vmax.f32 %v665_v35, 0.0  ;;  %v1051_v55 = vpack.c.bf16 %v712_v22, %v712_v22  ;;  %v713_v43 = vmax.f32 %v681_v53, 0.0  ;;  %v695_v5 = vmax.f32 %v663_v42, 0.0 }
 0x104   : > { %v1033_v23 = vpack.c.bf16 %v694_v50, %v694_v50  ;;  %857 = vst.msk [vmem:[%s1410_s5 + $0x28] sm:$0xf] %vm846_vm2, %v1035_v7  ;;  %v1049_v33 = vpack.c.bf16 %v710_v54, %v710_v54  ;;  %v711_v56 = vmax.f32 %v679_v32, 0.0  ;;  %v488_v58 = vadd.f32 %v1169_v12, %v1364_v46 }
 0x105   : > { %v1036_v38 = vpack.c.bf16 %v697_v4, %v697_v4  ;;  %873 = vst.msk [vmem:[%s1410_s5 + $0x68] sm:$0xf] %vm846_vm2, %v1051_v55  ;;  %v1052_v39 = vpack.c.bf16 %v713_v43, %v713_v43  ;;  %v1034_v59 = vpack.c.bf16 %v695_v5, %v695_v5  ;;  %v552_v26 = vadd.f32 %v1185_v63, %v1364_v46 }
 0x106   : > { %855 = vst.msk [vmem:[%s1410_s5 + $0x20] sm:$0xf] %vm846_vm2, %v1033_v23  ;;  %v480_v47 = vadd.f32 %v1364_v46, %v479_v36  ;;  %871 = vst.msk [vmem:[%s1410_s5 + $0x60] sm:$0xf] %vm846_vm2, %v1049_v33  ;;  %v1050_v13 = vpack.c.bf16 %v711_v56, %v711_v56  ;;  %v572_v14 = vmax.f32 %v488_v58, 0.0  ;;  %v544_v24 = vadd.f32 %v1364_v46, %v543_v21 }
 0x107   : > { %858 = vst.msk [vmem:[%s1410_s5 + $0x2c] sm:$0xf] %vm846_vm2, %v1036_v38  ;;  %v491_v27 = vadd.f32 %v1170_v37, %v1364_v46  ;;  %874 = vst.msk [vmem:[%s1410_s5 + $0x6c] sm:$0xf] %vm846_vm2, %v1052_v39  ;;  %v588_v48 = vmax.f32 %v552_v26, 0.0  ;;  %v555_v25 = vadd.f32 %v1186_v62, %v1364_v46  ;;  %v483_v28 = vadd.f32 %v1364_v46, %v482_v41 }
 0x108   : > { %856 = vst.msk [vmem:[%s1410_s5 + $0x24] sm:$0xf] %vm846_vm2, %v1034_v59  ;;  %v570_v10 = vmax.f32 %v480_v47, 0.0  ;;  %872 = vst.msk [vmem:[%s1410_s5 + $0x64] sm:$0xf] %vm846_vm2, %v1050_v13  ;;  %v668_v8 = vadd.f32 %v1087_v60, %v572_v14  ;;  %v586_v11 = vmax.f32 %v544_v24, 0.0  ;;  %v547_v3 = vadd.f32 %v1364_v46, %v546_v6 }
 0x109   : > { %v573_v29 = vmax.f32 %v491_v27, 0.0  ;;  %v684_v18 = vadd.f32 %v1119_v61, %v588_v48  ;;  %v589_v9 = vmax.f32 %v555_v25, 0.0  ;;  %v571_v12 = vmax.f32 %v483_v28, 0.0 }
 0x10a   : > { %v666_v30 = vadd.f32 %v1083_v1, %v570_v10  ;;  %v700_v16 = vmax.f32 %v668_v8, 0.0  ;;  %v682_v17 = vadd.f32 %v1115_v2, %v586_v11  ;;  %v1562_v57 = vunpack.c.h.bf16 %v1356_v44 }
 0x10b   : > { %v587_v19 = vmax.f32 %v547_v3, 0.0  ;;  %v716_v63 = vmax.f32 %v684_v18, 0.0  ;;  %v1563_v36 = vunpack.c.h.bf16 %v1359_v45  ;;  %v1564_v1 = vunpack.c.h.bf16 %v1371_v51 }
 0x10c   : > { %v669_v60 = vadd.f32 %v1562_v57, %v573_v29  ;;  %v698_v46 = vmax.f32 %v666_v30, 0.0  ;;  %v1039_v20 = vpack.c.bf16 %v700_v16, %v700_v16  ;;  %v714_v34 = vmax.f32 %v682_v17, 0.0 }
 0x10d   : > { %v685_v61 = vadd.f32 %v1563_v36, %v589_v9  ;;  %v667_v31 = vadd.f32 %v1564_v1, %v571_v12  ;;  %v1565_v2 = vunpack.c.h.bf16 %v1374_v52  ;;  %v1055_v21 = vpack.c.bf16 %v716_v63, %v716_v63 }
 0x10e   : > { %v701_v15 = vmax.f32 %v669_v60, 0.0  ;;  %v1037_v37 = vpack.c.bf16 %v698_v46, %v698_v46  ;;  %861 = vst.msk [vmem:[%s1410_s5 + $0x38] sm:$0xf] %vm846_vm2, %v1039_v20  ;;  %v1053_v49 = vpack.c.bf16 %v714_v34, %v714_v34 }
 0x10f   : > { %v683_v44 = vadd.f32 %v1565_v2, %v587_v19  ;;  %v717_v40 = vmax.f32 %v685_v61, 0.0  ;;  %v699_v45 = vmax.f32 %v667_v31, 0.0  ;;  %877 = vst.msk [vmem:[%s1410_s5 + $0x78] sm:$0xf] %vm846_vm2, %v1055_v21 }
 0x110   : > { %v1040_v51 = vpack.c.bf16 %v701_v15, %v701_v15  ;;  %859 = vst.msk [vmem:[%s1410_s5 + $0x30] sm:$0xf] %vm846_vm2, %v1037_v37  ;;  %875 = vst.msk [vmem:[%s1410_s5 + $0x70] sm:$0xf] %vm846_vm2, %v1053_v49 }
 0x111   : > { %v715_v35 = vmax.f32 %v683_v44, 0.0  ;;  %v1056_v0 = vpack.c.bf16 %v717_v40, %v717_v40  ;;  %v1038_v62 = vpack.c.bf16 %v699_v45, %v699_v45 }
 0x112   : > { %862 = vst.msk [vmem:[%s1410_s5 + $0x3c] sm:$0xf] %vm846_vm2, %v1040_v51 }
 0x113   : > { %v1054_v52 = vpack.c.bf16 %v715_v35, %v715_v35  ;;  %878 = vst.msk [vmem:[%s1410_s5 + $0x7c] sm:$0xf] %vm846_vm2, %v1056_v0  ;;  %860 = vst.msk [vmem:[%s1410_s5 + $0x34] sm:$0xf] %vm846_vm2, %v1038_v62 }
 0x115   : > { %876 = vst.msk [vmem:[%s1410_s5 + $0x74] sm:$0xf] %vm846_vm2, %v1054_v52 }
 0x116 PF: > { %s14_s15 = sadd.s32 1, %s1221_s15  }
 0x117   : > { %p11_p4 = scmp.ge.s32.totalorder %s14_s15, 4  }
 0x119   :  { %13 = sbr.rel (!%p11_p4) target bundleno = 1 (0x1), region = 69 }

// kernel: small_encoder_forward.36
= control target key start
LH: loop header
LB: loop body
LE: loop exit
PB: predicated region body
PF: predicated region fallthrough
CT: control target
= control target key end

     0   :  { %v523_v0 = vmov 0   ;;  %vm182_vm0 = vcmask 130048   ;;  %vm384_vm1 = vcmask 125952   ;;  %s712_s1 = inlined_call_operand.vmem [shape: bf16[144,16], index: 1, kind: input, shape index: {}]   ;;  %s713_s0 = inlined_call_operand.vmem [shape: bf16[128,144], index: 0, kind: input, shape index: {}]   ;;  %s714_s2 = inlined_call_operand.vmem [shape: f32[1,16], index: 2, kind: input, shape index: {}]   ;;  %s715_s3 = inlined_call_operand.vmem [shape: bf16[128,16], index: 3, kind: output, shape index: {}]  }
   0x1   :  { %207 = vmatprep.subr.bf16.mxu0 %v523_v0  ;;  %471 = vmatprep.subr.bf16.mxu1 %v523_v0  ;;  %v490_v1 = vld [vmem:[%s712_s1] sm:$0xff]   ;;  %v491_v2 = vld [vmem:[%s712_s1 + $0x8] sm:$0xff]   ;;  %v492_v3 = vld [vmem:[%s712_s1 + $0x10] sm:$0xff]  }
   0x2   :  { %208 = vmatpush1.bf16.msra.mxu0 %v490_v1  ;;  %480 = vmatpush1.bf16.msra.mxu1 %v490_v1  ;;  %v493_v4 = vld [vmem:[%s712_s1 + $0x18] sm:$0xff]   ;;  %v501_v5 = vld [vmem:[%s713_s0 + $0x4] ss:$8 sps:$4 sm:$0xff]   ;;  %v496_v9 = vld [vmem:[%s712_s1 + $0x30] sm:$0xff]  }
   0x3   :  { %209 = vmatprep.subr.bf16.mxu0 %v523_v0  ;;  %472 = vmatprep.subr.bf16.mxu1 %v523_v0  ;;  %v504_v6 = vld [vmem:[%s713_s0 + $0x44] ss:$8 sps:$4 sm:$0xff]   ;;  %v497_v10 = vld [vmem:[%s712_s1 + $0x38] sm:$0xff]   ;;  %v499_v12 = vld [vmem:[%s713_s0] ss:$8 sps:$4 sm:$0xff]  }
   0x4   :  { %431 = vmatprep.mubr.msk.bf16.mxu0 %vm182_vm0, %v501_v5  ;;  %435 = vmatprep.mubr.msk.bf16.mxu1 %vm182_vm0, %v504_v6  ;;  %v494_v7 = vld [vmem:[%s712_s1 + $0x20] sm:$0xff]   ;;  %v495_v8 = vld [vmem:[%s712_s1 + $0x28] sm:$0xff]   ;;  %v505_v14 = vld [vmem:[%s713_s0 + $0x14] ss:$8 sps:$4 sm:$0xff]  }
   0x5   :  { %v498_v11 = vld [vmem:[%s712_s1 + $0x40] sm:$0xff]   ;;  %v507_v15 = vld [vmem:[%s713_s0 + $0x54] ss:$8 sps:$4 sm:$0xff]   ;;  %v509_v16 = vld [vmem:[%s713_s0 + $0x10] ss:$8 sps:$4 sm:$0xff]  }
   0x6   :  { %210 = vmatpush1.bf16.msra.mxu0 %v491_v2  ;;  %481 = vmatpush1.bf16.msra.mxu1 %v491_v2  ;;  %v502_v13 = vld [vmem:[%s713_s0 + $0x40] ss:$8 sps:$4 sm:$0xff]   ;;  %v510_v17 = vld [vmem:[%s713_s0 + $0x50] ss:$8 sps:$4 sm:$0xff]   ;;  %v511_v18 = vld [vmem:[%s713_s0 + $0x24] ss:$8 sps:$4 sm:$0xff]  }
   0x7   :  { %211 = vmatprep.subr.bf16.mxu0 %v523_v0  ;;  %473 = vmatprep.subr.bf16.mxu1 %v523_v0  ;;  %v513_v19 = vld [vmem:[%s713_s0 + $0x64] ss:$8 sps:$4 sm:$0xff]   ;;  %v515_v20 = vld [vmem:[%s713_s0 + $0x20] ss:$8 sps:$4 sm:$0xff]   ;;  %v517_v22 = vld [vmem:[%s713_s0 + $0x34] ss:$8 sps:$4 sm:$0xff]  }
   0x8   :  { %v516_v21 = vld [vmem:[%s713_s0 + $0x60] ss:$8 sps:$4 sm:$0xff]   ;;  %v519_v23 = vld [vmem:[%s713_s0 + $0x74] ss:$8 sps:$4 sm:$0xff]   ;;  %v521_v24 = vld [vmem:[%s713_s0 + $0x30] ss:$8 sps:$4 sm:$0xff]  }
   0x9   :  { %v522_v25 = vld [vmem:[%s713_s0 + $0x70] ss:$8 sps:$4 sm:$0xff]   ;;  %v630_v26 = vld [vmem:[%s714_s2] ss:$0 sm:$0xff] }
   0xa   :  { %212 = vmatpush1.bf16.msra.mxu0 %v492_v3  ;;  %482 = vmatpush1.bf16.msra.mxu1 %v492_v3 }
   0xb   :  { %213 = vmatprep.subr.bf16.mxu0 %v523_v0  ;;  %474 = vmatprep.subr.bf16.mxu1 %v523_v0 }
   0xe   :  { %214 = vmatpush1.bf16.msra.mxu0 %v493_v4  ;;  %483 = vmatpush1.bf16.msra.mxu1 %v493_v4 }
   0xf   :  { %215 = vmatprep.subr.bf16.mxu0 %v523_v0  ;;  %475 = vmatprep.subr.bf16.mxu1 %v523_v0 }
  0x12   :  { %216 = vmatpush1.bf16.msra.mxu0 %v494_v7  ;;  %484 = vmatpush1.bf16.msra.mxu1 %v494_v7 }
  0x13   :  { %217 = vmatprep.subr.bf16.mxu0 %v523_v0  ;;  %476 = vmatprep.subr.bf16.mxu1 %v523_v0 }
  0x16   :  { %218 = vmatpush1.bf16.msra.mxu0 %v495_v8  ;;  %485 = vmatpush1.bf16.msra.mxu1 %v495_v8 }
  0x17   :  { %219 = vmatprep.subr.bf16.mxu0 %v523_v0  ;;  %477 = vmatprep.subr.bf16.mxu1 %v523_v0 }
  0x1a   :  { %220 = vmatpush1.bf16.msra.mxu0 %v496_v9  ;;  %486 = vmatpush1.bf16.msra.mxu1 %v496_v9 }
  0x1b   :  { %221 = vmatprep.subr.bf16.mxu0 %v523_v0  ;;  %478 = vmatprep.subr.bf16.mxu1 %v523_v0 }
  0x1e   :  { %222 = vmatpush1.bf16.msra.mxu0 %v497_v10  ;;  %487 = vmatpush1.bf16.msra.mxu1 %v497_v10 }
  0x1f   :  { %223 = vmatprep.subr.bf16.mxu0 %v523_v0  ;;  %479 = vmatprep.subr.bf16.mxu1 %v523_v0 }
  0x22   :  { %224 = vmatpush1.bf16.msra.mxu0 %v498_v11  ;;  %488 = vmatpush1.bf16.msra.mxu1 %v498_v11 }
  0x25   :  { %240 = vmatmul.mubr.bf16.vlgmr.msra.gmra.mrb[0].mxu0 %v499_v12  ;;  %272 = vmatmul.mubr.bf16.vlgmr.msra.gmra.mrb[0].mxu1 %v502_v13 }
  0x26   :  { %432 = vmatprep.mubr.msk.bf16.mxu0 %vm182_vm0, %v505_v14  ;;  %436 = vmatprep.mubr.msk.bf16.mxu1 %vm182_vm0, %v507_v15 }
  0x2d   :  { %248 = vmatmul.mubr.bf16.gmra.mrb[4].mxu0 %v509_v16  ;;  %280 = vmatmul.mubr.bf16.gmra.mrb[4].mxu1 %v510_v17 }
  0x2e   :  { %433 = vmatprep.mubr.msk.bf16.mxu0 %vm182_vm0, %v511_v18  ;;  %437 = vmatprep.mubr.msk.bf16.mxu1 %vm182_vm0, %v513_v19 }
  0x35   :  { %256 = vmatmul.mubr.bf16.gmra.mrb[8].mxu0 %v515_v20  ;;  %288 = vmatmul.mubr.bf16.gmra.mrb[8].mxu1 %v516_v21 }
  0x36   :  { %434 = vmatprep.mubr.msk.bf16.mxu0 %vm182_vm0, %v517_v22  ;;  %438 = vmatprep.mubr.msk.bf16.mxu1 %vm182_vm0, %v519_v23 }
  0x3d   :  { %264 = vmatmul.mubr.bf16.gmra.mrb[12].mxu0 %v521_v24  ;;  %296 = vmatmul.mubr.bf16.gmra.mrb[12].mxu1 %v522_v25 }
  0xf8   :  { %v241_v27 = vpop.f32.mrb[0].mxu0  ;;  %v273_v28 = vpop.f32.mrb[0].mxu1 }
  0xf9   :  { %v242_v29 = vadd.f32 %v630_v26, %v241_v27  ;;  %v274_v30 = vadd.f32 %v630_v26, %v273_v28  ;;  %v243_v31 = vpop.f32.mrb[1].mxu0  ;;  %v275_v32 = vpop.f32.mrb[1].mxu1 }
  0xfa   :  { %v244_v33 = vpop.f32.mrb[2].mxu0  ;;  %v276_v34 = vpop.f32.mrb[2].mxu1 }
  0xfb   :  { %v304_v35 = vmax.f32 %v242_v29, 0.0  ;;  %v312_v36 = vmax.f32 %v274_v30, 0.0  ;;  %v245_v37 = vadd.f32 %v630_v26, %v244_v33  ;;  %v277_v38 = vadd.f32 %v630_v26, %v276_v34  ;;  %v246_v39 = vpop.f32.mrb[3].mxu0  ;;  %v278_v40 = vpop.f32.mrb[3].mxu1 }
  0xfd   :  { %v455_v41 = vpack.c.bf16 %v304_v35, %v304_v35  ;;  %v463_v42 = vpack.c.bf16 %v312_v36, %v312_v36  ;;  %v305_v43 = vmax.f32 %v245_v37, 0.0  ;;  %v313_v44 = vmax.f32 %v277_v38, 0.0 }
  0xff   :  { %385 = vst.msk [vmem:[%s715_s3] sm:$0xf] %vm384_vm1, %v455_v41  ;;  %393 = vst.msk [vmem:[%s715_s3 + $0x20] sm:$0xf] %vm384_vm1, %v463_v42  ;;  %v456_v45 = vpack.c.bf16 %v305_v43, %v305_v43  ;;  %v464_v46 = vpack.c.bf16 %v313_v44, %v313_v44 }
 0x100   :  { %v249_v47 = vpop.f32.mrb[4].mxu0  ;;  %v281_v48 = vpop.f32.mrb[4].mxu1 }
 0x101   :  { %386 = vst.msk [vmem:[%s715_s3 + $0x4] sm:$0xf] %vm384_vm1, %v456_v45  ;;  %394 = vst.msk [vmem:[%s715_s3 + $0x24] sm:$0xf] %vm384_vm1, %v464_v46  ;;  %v250_v49 = vadd.f32 %v630_v26, %v249_v47  ;;  %v282_v50 = vadd.f32 %v630_v26, %v281_v48  ;;  %v251_v51 = vpop.f32.mrb[5].mxu0  ;;  %v283_v52 = vpop.f32.mrb[5].mxu1 }
 0x102   :  { %v252_v53 = vpop.f32.mrb[6].mxu0  ;;  %v284_v54 = vpop.f32.mrb[6].mxu1 }
 0x103   :  { %v306_v55 = vmax.f32 %v250_v49, 0.0  ;;  %v314_v56 = vmax.f32 %v282_v50, 0.0  ;;  %v253_v57 = vadd.f32 %v630_v26, %v252_v53  ;;  %v285_v58 = vadd.f32 %v630_v26, %v284_v54  ;;  %v254_v59 = vpop.f32.mrb[7].mxu0  ;;  %v286_v60 = vpop.f32.mrb[7].mxu1 }
 0x105   :  { %v457_v61 = vpack.c.bf16 %v306_v55, %v306_v55  ;;  %v465_v62 = vpack.c.bf16 %v314_v56, %v314_v56  ;;  %v307_v63 = vmax.f32 %v253_v57, 0.0  ;;  %v315_v0 = vmax.f32 %v285_v58, 0.0 }
 0x107   :  { %387 = vst.msk [vmem:[%s715_s3 + $0x8] sm:$0xf] %vm384_vm1, %v457_v61  ;;  %395 = vst.msk [vmem:[%s715_s3 + $0x28] sm:$0xf] %vm384_vm1, %v465_v62  ;;  %v458_v1 = vpack.c.bf16 %v307_v63, %v307_v63  ;;  %v466_v2 = vpack.c.bf16 %v315_v0, %v315_v0 }
 0x108   :  { %v257_v3 = vpop.f32.mrb[8].mxu0  ;;  %v289_v4 = vpop.f32.mrb[8].mxu1 }
 0x109   :  { %388 = vst.msk [vmem:[%s715_s3 + $0xc] sm:$0xf] %vm384_vm1, %v458_v1  ;;  %396 = vst.msk [vmem:[%s715_s3 + $0x2c] sm:$0xf] %vm384_vm1, %v466_v2  ;;  %v258_v5 = vadd.f32 %v630_v26, %v257_v3  ;;  %v290_v6 = vadd.f32 %v630_v26, %v289_v4  ;;  %v259_v7 = vpop.f32.mrb[9].mxu0  ;;  %v291_v8 = vpop.f32.mrb[9].mxu1 }
 0x10a   :  { %v260_v9 = vpop.f32.mrb[10].mxu0  ;;  %v292_v10 = vpop.f32.mrb[10].mxu1 }
 0x10b   :  { %v308_v11 = vmax.f32 %v258_v5, 0.0  ;;  %v316_v12 = vmax.f32 %v290_v6, 0.0  ;;  %v261_v13 = vadd.f32 %v630_v26, %v260_v9  ;;  %v293_v14 = vadd.f32 %v630_v26, %v292_v10  ;;  %v262_v15 = vpop.f32.mrb[11].mxu0  ;;  %v294_v16 = vpop.f32.mrb[11].mxu1 }
 0x10d   :  { %v459_v17 = vpack.c.bf16 %v308_v11, %v308_v11  ;;  %v467_v18 = vpack.c.bf16 %v316_v12, %v316_v12  ;;  %v309_v19 = vmax.f32 %v261_v13, 0.0  ;;  %v317_v20 = vmax.f32 %v293_v14, 0.0 }
 0x10f   :  { %389 = vst.msk [vmem:[%s715_s3 + $0x10] sm:$0xf] %vm384_vm1, %v459_v17  ;;  %397 = vst.msk [vmem:[%s715_s3 + $0x30] sm:$0xf] %vm384_vm1, %v467_v18  ;;  %v460_v21 = vpack.c.bf16 %v309_v19, %v309_v19  ;;  %v468_v22 = vpack.c.bf16 %v317_v20, %v317_v20 }
 0x110   :  { %v265_v23 = vpop.f32.mrb[12].mxu0  ;;  %v297_v24 = vpop.f32.mrb[12].mxu1 }
 0x111   :  { %390 = vst.msk [vmem:[%s715_s3 + $0x14] sm:$0xf] %vm384_vm1, %v460_v21  ;;  %398 = vst.msk [vmem:[%s715_s3 + $0x34] sm:$0xf] %vm384_vm1, %v468_v22  ;;  %v266_v25 = vadd.f32 %v630_v26, %v265_v23  ;;  %v298_v27 = vadd.f32 %v630_v26, %v297_v24  ;;  %v267_v28 = vpop.f32.mrb[13].mxu0  ;;  %v299_v29 = vpop.f32.mrb[13].mxu1 }
 0x112   :  { %v268_v30 = vpop.f32.mrb[14].mxu0  ;;  %v300_v31 = vpop.f32.mrb[14].mxu1 }
 0x113   :  { %v310_v32 = vmax.f32 %v266_v25, 0.0  ;;  %v318_v33 = vmax.f32 %v298_v27, 0.0  ;;  %v269_v34 = vadd.f32 %v630_v26, %v268_v30  ;;  %v301_v35 = vadd.f32 %v630_v26, %v300_v31  ;;  %v270_v36 = vpop.f32.mrb[15].mxu0  ;;  %v302_v37 = vpop.f32.mrb[15].mxu1 }
 0x115   :  { %v461_v38 = vpack.c.bf16 %v310_v32, %v310_v32  ;;  %v469_v39 = vpack.c.bf16 %v318_v33, %v318_v33  ;;  %v311_v40 = vmax.f32 %v269_v34, 0.0  ;;  %v319_v41 = vmax.f32 %v301_v35, 0.0 }
 0x117   :  { %391 = vst.msk [vmem:[%s715_s3 + $0x18] sm:$0xf] %vm384_vm1, %v461_v38  ;;  %399 = vst.msk [vmem:[%s715_s3 + $0x38] sm:$0xf] %vm384_vm1, %v469_v39  ;;  %v462_v42 = vpack.c.bf16 %v311_v40, %v311_v40  ;;  %v470_v43 = vpack.c.bf16 %v319_v41, %v319_v41 }
 0x119   :  { %392 = vst.msk [vmem:[%s715_s3 + $0x1c] sm:$0xf] %vm384_vm1, %v462_v42  ;;  %400 = vst.msk [vmem:[%s715_s3 + $0x3c] sm:$0xf] %vm384_vm1, %v470_v43 }

// kernel: small_encoder_forward.37
= control target key start
LH: loop header
LB: loop body
LE: loop exit
PB: predicated region body
PF: predicated region fallthrough
CT: control target
= control target key end

     0   :  { %vm94_vm0 = vcmask 261120   ;;  %vm280_vm1 = vcmask 519168   ;;  %s521_s1 = inlined_call_operand.vmem [shape: bf16[32,64], index: 1, kind: input, shape index: {}]   ;;  %s522_s0 = inlined_call_operand.vmem [shape: bf16[128,32], index: 0, kind: input, shape index: {}]   ;;  %s523_s2 = inlined_call_operand.vmem [shape: f32[1,64], index: 2, kind: input, shape index: {}]   ;;  %s524_s3 = inlined_call_operand.vmem [shape: bf16[128,64], index: 3, kind: output, shape index: {}]  }
   0x1   :  { %v386_v0 = vld [vmem:[%s521_s1] sm:$0xff]   ;;  %v387_v1 = vld [vmem:[%s521_s1 + $0x8] sm:$0xff]   ;;  %v392_v6 = vld [vmem:[%s522_s0 + $0x10] sm:$0xff]  }
   0x2   :  { %362 = vmatprep.subr.bf16.mxu0 %v386_v0  ;;  %382 = vmatprep.subr.bf16.mxu1 %v386_v0  ;;  %v388_v2 = vld [vmem:[%s522_s0] sm:$0xff]   ;;  %v390_v4 = vld [vmem:[%s522_s0 + $0x8] sm:$0xff]   ;;  %v393_v7 = vld [vmem:[%s522_s0 + $0x30] sm:$0xff]  }
   0x3   :  { %363 = vmatpush3.bf16.msra.mxu0 %v386_v0  ;;  %384 = vmatpush3.bf16.msra.mxu1 %v386_v0  ;;  %v389_v3 = vld [vmem:[%s522_s0 + $0x20] sm:$0xff]   ;;  %v391_v5 = vld [vmem:[%s522_s0 + $0x28] sm:$0xff]   ;;  %v394_v8 = vld [vmem:[%s522_s0 + $0x18] sm:$0xff]  }
   0x4   :  { %364 = vmatprep.subr.bf16.mxu0 %v387_v1  ;;  %383 = vmatprep.subr.bf16.mxu1 %v387_v1  ;;  %v395_v9 = vld [vmem:[%s522_s0 + $0x38] sm:$0xff]   ;;  %v301_v10 = vld [vmem:[%s523_s2] ss:$0 sm:$0xff] }
   0x5   :  { %366 = vmatprep.mubr.msk.bf16.mxu0 %vm94_vm0, %v388_v2  ;;  %374 = vmatprep.mubr.msk.bf16.mxu1 %vm94_vm0, %v389_v3 }
   0x7   :  { %365 = vmatpush3.bf16.msra.mxu0 %v387_v1  ;;  %385 = vmatpush3.bf16.msra.mxu1 %v387_v1 }
   0xa   :  { %367 = vmatmul.mubr.msk.bf16.vlgmr.msra.gmra.mrb[0].mxu0 %vm94_vm0, %v390_v4  ;;  %375 = vmatmul.mubr.msk.bf16.vlgmr.msra.gmra.mrb[0].mxu1 %vm94_vm0, %v391_v5 }
   0xb   :  { %370 = vmatprep.mubr.msk.bf16.mxu0 %vm94_vm0, %v392_v6  ;;  %378 = vmatprep.mubr.msk.bf16.mxu1 %vm94_vm0, %v393_v7 }
  0x12   :  { %371 = vmatmul.mubr.msk.bf16.gmra.mrb[4].mxu0 %vm94_vm0, %v394_v8  ;;  %379 = vmatmul.mubr.msk.bf16.gmra.mrb[4].mxu1 %vm94_vm0, %v395_v9 }
  0xdd   :  { %v368_v11 = vpop.f32.mrb[0].mxu0  ;;  %v376_v12 = vpop.f32.mrb[0].mxu1 }
  0xde   :  { %v162_v13 = vadd.f32 %v368_v11, %v301_v10  ;;  %v194_v14 = vadd.f32 %v376_v12, %v301_v10  ;;  %v153_v15 = vpop.f32.mrb[1].mxu0  ;;  %v185_v16 = vpop.f32.mrb[1].mxu1 }
  0xdf   :  { %v154_v17 = vadd.f32 %v301_v10, %v153_v15  ;;  %v186_v18 = vadd.f32 %v301_v10, %v185_v16  ;;  %v369_v19 = vpop.f32.mrb[2].mxu0  ;;  %v377_v20 = vpop.f32.mrb[2].mxu1 }
  0xe0   :  { %v338_v21 = vpack.c.bf16 %v162_v13, %v162_v13  ;;  %v346_v22 = vpack.c.bf16 %v194_v14, %v194_v14  ;;  %v165_v23 = vadd.f32 %v369_v19, %v301_v10  ;;  %v197_v24 = vadd.f32 %v377_v20, %v301_v10  ;;  %v156_v25 = vpop.f32.mrb[3].mxu0  ;;  %v188_v26 = vpop.f32.mrb[3].mxu1 }
  0xe1   :  { %v336_v27 = vpack.c.bf16 %v154_v17, %v154_v17  ;;  %v344_v28 = vpack.c.bf16 %v186_v18, %v186_v18  ;;  %v157_v29 = vadd.f32 %v301_v10, %v156_v25  ;;  %v189_v30 = vadd.f32 %v301_v10, %v188_v26 }
  0xe2   :  { %283 = vst.msk [vmem:[%s524_s3 + $0x8] sm:$0xf] %vm280_vm1, %v338_v21  ;;  %291 = vst.msk [vmem:[%s524_s3 + $0x28] sm:$0xf] %vm280_vm1, %v346_v22  ;;  %v339_v31 = vpack.c.bf16 %v165_v23, %v165_v23  ;;  %v347_v32 = vpack.c.bf16 %v197_v24, %v197_v24 }
  0xe3   :  { %281 = vst.msk [vmem:[%s524_s3] sm:$0xf] %vm280_vm1, %v336_v27  ;;  %289 = vst.msk [vmem:[%s524_s3 + $0x20] sm:$0xf] %vm280_vm1, %v344_v28  ;;  %v337_v33 = vpack.c.bf16 %v157_v29, %v157_v29  ;;  %v345_v34 = vpack.c.bf16 %v189_v30, %v189_v30 }
  0xe4   :  { %284 = vst.msk [vmem:[%s524_s3 + $0xc] sm:$0xf] %vm280_vm1, %v339_v31  ;;  %292 = vst.msk [vmem:[%s524_s3 + $0x2c] sm:$0xf] %vm280_vm1, %v347_v32 }
  0xe5   :  { %282 = vst.msk [vmem:[%s524_s3 + $0x4] sm:$0xf] %vm280_vm1, %v337_v33  ;;  %290 = vst.msk [vmem:[%s524_s3 + $0x24] sm:$0xf] %vm280_vm1, %v345_v34  ;;  %v372_v35 = vpop.f32.mrb[4].mxu0  ;;  %v380_v36 = vpop.f32.mrb[4].mxu1 }
  0xe6   :  { %v178_v37 = vadd.f32 %v372_v35, %v301_v10  ;;  %v210_v38 = vadd.f32 %v380_v36, %v301_v10  ;;  %v169_v39 = vpop.f32.mrb[5].mxu0  ;;  %v201_v40 = vpop.f32.mrb[5].mxu1 }
  0xe7   :  { %v170_v41 = vadd.f32 %v301_v10, %v169_v39  ;;  %v202_v42 = vadd.f32 %v301_v10, %v201_v40  ;;  %v373_v43 = vpop.f32.mrb[6].mxu0  ;;  %v381_v44 = vpop.f32.mrb[6].mxu1 }
  0xe8   :  { %v342_v45 = vpack.c.bf16 %v178_v37, %v178_v37  ;;  %v350_v46 = vpack.c.bf16 %v210_v38, %v210_v38  ;;  %v181_v47 = vadd.f32 %v373_v43, %v301_v10  ;;  %v213_v48 = vadd.f32 %v381_v44, %v301_v10  ;;  %v172_v49 = vpop.f32.mrb[7].mxu0  ;;  %v204_v50 = vpop.f32.mrb[7].mxu1 }
  0xe9   :  { %v340_v51 = vpack.c.bf16 %v170_v41, %v170_v41  ;;  %v348_v52 = vpack.c.bf16 %v202_v42, %v202_v42  ;;  %v173_v53 = vadd.f32 %v301_v10, %v172_v49  ;;  %v205_v54 = vadd.f32 %v301_v10, %v204_v50 }
  0xea   :  { %287 = vst.msk [vmem:[%s524_s3 + $0x18] sm:$0xf] %vm280_vm1, %v342_v45  ;;  %295 = vst.msk [vmem:[%s524_s3 + $0x38] sm:$0xf] %vm280_vm1, %v350_v46  ;;  %v343_v55 = vpack.c.bf16 %v181_v47, %v181_v47  ;;  %v351_v56 = vpack.c.bf16 %v213_v48, %v213_v48 }
  0xeb   :  { %285 = vst.msk [vmem:[%s524_s3 + $0x10] sm:$0xf] %vm280_vm1, %v340_v51  ;;  %293 = vst.msk [vmem:[%s524_s3 + $0x30] sm:$0xf] %vm280_vm1, %v348_v52  ;;  %v341_v57 = vpack.c.bf16 %v173_v53, %v173_v53  ;;  %v349_v58 = vpack.c.bf16 %v205_v54, %v205_v54 }
  0xec   :  { %288 = vst.msk [vmem:[%s524_s3 + $0x1c] sm:$0xf] %vm280_vm1, %v343_v55  ;;  %296 = vst.msk [vmem:[%s524_s3 + $0x3c] sm:$0xf] %vm280_vm1, %v351_v56 }
  0xed   :  { %286 = vst.msk [vmem:[%s524_s3 + $0x14] sm:$0xf] %vm280_vm1, %v341_v57  ;;  %294 = vst.msk [vmem:[%s524_s3 + $0x34] sm:$0xf] %vm280_vm1, %v349_v58 }

// kernel: small_encoder_forward.38
= control target key start
LH: loop header
LB: loop body
LE: loop exit
PB: predicated region body
PF: predicated region fallthrough
CT: control target
= control target key end

     0   :  { %vm89_vm0 = vcmask 130048   ;;  %vm355_vm1 = vcmask 519168   ;;  %s704_s1 = inlined_call_operand.vmem [shape: bf16[16,64], index: 1, kind: input, shape index: {}]   ;;  %s705_s0 = inlined_call_operand.vmem [shape: bf16[128,16], index: 0, kind: input, shape index: {}]   ;;  %s706_s3 = inlined_call_operand.vmem [shape: bf16[128,64], index: 3, kind: input, shape index: {}]   ;;  %s707_s2 = inlined_call_operand.vmem [shape: f32[1,64], index: 2, kind: input, shape index: {}]   ;;  %s708_s4 = inlined_call_operand.vmem [shape: bf16[128,64], index: 4, kind: output, shape index: {}]  }
   0x1   :  { %v494_v0 = vld [vmem:[%s704_s1] sm:$0xff]   ;;  %v497_v3 = vld [vmem:[%s705_s0 + $0x8] sm:$0xff]   ;;  %v499_v5 = vld [vmem:[%s705_s0 + $0x10] sm:$0xff]  }
   0x2   :  { %v495_v1 = vld [vmem:[%s705_s0] sm:$0xff]   ;;  %474 = vmatprep.subr.bf16.mxu0 %v494_v0  ;;  %492 = vmatprep.subr.bf16.mxu1 %v494_v0  ;;  %v498_v4 = vld [vmem:[%s705_s0 + $0x28] sm:$0xff]   ;;  %v500_v6 = vld [vmem:[%s705_s0 + $0x30] sm:$0xff]  }
   0x3   :  { %v496_v2 = vld [vmem:[%s705_s0 + $0x20] sm:$0xff]   ;;  %475 = vmatpush3.bf16.msra.mxu0 %v494_v0  ;;  %493 = vmatpush3.bf16.msra.mxu1 %v494_v0  ;;  %v501_v7 = vld [vmem:[%s705_s0 + $0x18] sm:$0xff]   ;;  %v458_v9 = vld [vmem:[%s706_s3 + $0x8] sm:$0xff]  }
   0x4   :  { %476 = vmatprep.mubr.msk.bf16.mxu0 %vm89_vm0, %v495_v1  ;;  %484 = vmatprep.mubr.msk.bf16.mxu1 %vm89_vm0, %v496_v2  ;;  %v502_v8 = vld [vmem:[%s705_s0 + $0x38] sm:$0xff]   ;;  %v462_v10 = vld [vmem:[%s706_s3 + $0x28] sm:$0xff]   ;;  %v427_v11 = vld [vmem:[%s706_s3] sm:$0xff]   ;;  %v432_v18 = vunpack.c.l.bf16 %v458_v9  ;;  %v433_v22 = vunpack.c.h.bf16 %v458_v9 }
   0x5   :  { %v461_v12 = vld [vmem:[%s706_s3 + $0x20] sm:$0xff]   ;;  %v578_v13 = vld [vmem:[%s706_s3 + $0x18] sm:$0xff]   ;;  %v588_v15 = vld [vmem:[%s706_s3 + $0x10] sm:$0xff]   ;;  %v448_v19 = vunpack.c.l.bf16 %v462_v10  ;;  %v428_v20 = vunpack.c.l.bf16 %v427_v11  ;;  %v449_v23 = vunpack.c.h.bf16 %v462_v10  ;;  %v429_v24 = vunpack.c.h.bf16 %v427_v11 }
   0x6   :  { %477 = vmatmul.mubr.msk.bf16.vlgmr.msra.gmra.mrb[0].mxu0 %vm89_vm0, %v497_v3  ;;  %485 = vmatmul.mubr.msk.bf16.vlgmr.msra.gmra.mrb[0].mxu1 %vm89_vm0, %v498_v4  ;;  %v583_v14 = vld [vmem:[%s706_s3 + $0x38] sm:$0xff]   ;;  %v593_v16 = vld [vmem:[%s706_s3 + $0x30] sm:$0xff]   ;;  %v598_v17 = vld [vmem:[%s707_s2] ss:$0 sm:$0xff]  ;;  %v444_v21 = vunpack.c.l.bf16 %v461_v12  ;;  %v445_v25 = vunpack.c.h.bf16 %v461_v12  ;;  %v440_v28 = vunpack.c.l.bf16 %v578_v13  ;;  %v436_v30 = vunpack.c.l.bf16 %v588_v15 }
   0x7   :  { %480 = vmatprep.mubr.msk.bf16.mxu0 %vm89_vm0, %v499_v5  ;;  %488 = vmatprep.mubr.msk.bf16.mxu1 %vm89_vm0, %v500_v6  ;;  %v456_v29 = vunpack.c.l.bf16 %v583_v14  ;;  %v452_v31 = vunpack.c.l.bf16 %v593_v16  ;;  %v441_v36 = vunpack.c.h.bf16 %v578_v13  ;;  %v457_v37 = vunpack.c.h.bf16 %v583_v14 }
   0x8   :  { %v437_v42 = vunpack.c.h.bf16 %v588_v15  ;;  %v453_v43 = vunpack.c.h.bf16 %v593_v16 }
   0xe   :  { %481 = vmatmul.mubr.msk.bf16.gmra.mrb[4].mxu0 %vm89_vm0, %v501_v7  ;;  %489 = vmatmul.mubr.msk.bf16.gmra.mrb[4].mxu1 %vm89_vm0, %v502_v8 }
  0xd9   :  { %v478_v26 = vpop.f32.mrb[0].mxu0  ;;  %v486_v27 = vpop.f32.mrb[0].mxu1 }
  0xda   :  { %v157_v32 = vadd.f32 %v478_v26, %v598_v17  ;;  %v189_v33 = vadd.f32 %v486_v27, %v598_v17  ;;  %v148_v34 = vpop.f32.mrb[1].mxu0  ;;  %v180_v35 = vpop.f32.mrb[1].mxu1 }
  0xdb   :  { %v149_v38 = vadd.f32 %v598_v17, %v148_v34  ;;  %v181_v39 = vadd.f32 %v598_v17, %v180_v35  ;;  %v479_v40 = vpop.f32.mrb[2].mxu0  ;;  %v487_v41 = vpop.f32.mrb[2].mxu1 }
  0xdc   :  { %v213_v44 = vmax.f32 %v157_v32, 0.0  ;;  %v221_v45 = vmax.f32 %v189_v33, 0.0  ;;  %v160_v46 = vadd.f32 %v479_v40, %v598_v17  ;;  %v192_v47 = vadd.f32 %v487_v41, %v598_v17  ;;  %v151_v48 = vpop.f32.mrb[3].mxu0  ;;  %v183_v49 = vpop.f32.mrb[3].mxu1 }
  0xdd   :  { %v211_v50 = vmax.f32 %v149_v38, 0.0  ;;  %v219_v51 = vmax.f32 %v181_v39, 0.0  ;;  %v152_v52 = vadd.f32 %v598_v17, %v151_v48  ;;  %v184_v53 = vadd.f32 %v598_v17, %v183_v49 }
  0xde   :  { %v261_v54 = vadd.f32 %v432_v18, %v213_v44  ;;  %v269_v55 = vadd.f32 %v448_v19, %v221_v45  ;;  %v214_v56 = vmax.f32 %v160_v46, 0.0  ;;  %v222_v57 = vmax.f32 %v192_v47, 0.0 }
  0xdf   :  { %v259_v58 = vadd.f32 %v428_v20, %v211_v50  ;;  %v267_v59 = vadd.f32 %v444_v21, %v219_v51  ;;  %v212_v60 = vmax.f32 %v152_v52, 0.0  ;;  %v220_v61 = vmax.f32 %v184_v53, 0.0 }
  0xe0   :  { %v277_v62 = vmax.f32 %v261_v54, 0.0  ;;  %v285_v63 = vmax.f32 %v269_v55, 0.0  ;;  %v262_v0 = vadd.f32 %v433_v22, %v214_v56  ;;  %v270_v1 = vadd.f32 %v449_v23, %v222_v57 }
  0xe1   :  { %v275_v2 = vmax.f32 %v259_v58, 0.0  ;;  %v283_v3 = vmax.f32 %v267_v59, 0.0  ;;  %v260_v4 = vadd.f32 %v429_v24, %v212_v60  ;;  %v268_v5 = vadd.f32 %v445_v25, %v220_v61  ;;  %v482_v6 = vpop.f32.mrb[4].mxu0  ;;  %v490_v7 = vpop.f32.mrb[4].mxu1 }
  0xe2   :  { %v412_v8 = vpack.c.bf16 %v277_v62, %v277_v62  ;;  %v420_v9 = vpack.c.bf16 %v285_v63, %v285_v63  ;;  %v278_v10 = vmax.f32 %v262_v0, 0.0  ;;  %v286_v11 = vmax.f32 %v270_v1, 0.0  ;;  %v164_v12 = vpop.f32.mrb[5].mxu0  ;;  %v196_v18 = vpop.f32.mrb[5].mxu1 }
  0xe3   :  { %v410_v19 = vpack.c.bf16 %v275_v2, %v275_v2  ;;  %v418_v20 = vpack.c.bf16 %v283_v3, %v283_v3  ;;  %v276_v21 = vmax.f32 %v260_v4, 0.0  ;;  %v284_v26 = vmax.f32 %v268_v5, 0.0  ;;  %v483_v27 = vpop.f32.mrb[6].mxu0  ;;  %v491_v32 = vpop.f32.mrb[6].mxu1 }
  0xe4   :  { %358 = vst.msk [vmem:[%s708_s4 + $0x8] sm:$0xf] %vm355_vm1, %v412_v8  ;;  %366 = vst.msk [vmem:[%s708_s4 + $0x28] sm:$0xf] %vm355_vm1, %v420_v9  ;;  %v413_v22 = vpack.c.bf16 %v278_v10, %v278_v10  ;;  %v421_v23 = vpack.c.bf16 %v286_v11, %v286_v11  ;;  %v173_v24 = vadd.f32 %v482_v6, %v598_v17  ;;  %v167_v33 = vpop.f32.mrb[7].mxu0  ;;  %v199_v34 = vpop.f32.mrb[7].mxu1 }
  0xe5   :  { %v205_v25 = vadd.f32 %v490_v7, %v598_v17  ;;  %356 = vst.msk [vmem:[%s708_s4] sm:$0xf] %vm355_vm1, %v410_v19  ;;  %364 = vst.msk [vmem:[%s708_s4 + $0x20] sm:$0xf] %vm355_vm1, %v418_v20  ;;  %v411_v35 = vpack.c.bf16 %v276_v21, %v276_v21  ;;  %v419_v38 = vpack.c.bf16 %v284_v26, %v284_v26 }
  0xe6   :  { %v165_v39 = vadd.f32 %v598_v17, %v164_v12  ;;  %v197_v40 = vadd.f32 %v598_v17, %v196_v18  ;;  %359 = vst.msk [vmem:[%s708_s4 + $0xc] sm:$0xf] %vm355_vm1, %v413_v22  ;;  %367 = vst.msk [vmem:[%s708_s4 + $0x2c] sm:$0xf] %vm355_vm1, %v421_v23  ;;  %v217_v41 = vmax.f32 %v173_v24, 0.0  ;;  %v176_v45 = vadd.f32 %v483_v27, %v598_v17 }
  0xe7   :  { %v225_v44 = vmax.f32 %v205_v25, 0.0  ;;  %v208_v46 = vadd.f32 %v491_v32, %v598_v17  ;;  %357 = vst.msk [vmem:[%s708_s4 + $0x4] sm:$0xf] %vm355_vm1, %v411_v35  ;;  %365 = vst.msk [vmem:[%s708_s4 + $0x24] sm:$0xf] %vm355_vm1, %v419_v38  ;;  %v168_v49 = vadd.f32 %v598_v17, %v167_v33  ;;  %v200_v50 = vadd.f32 %v598_v17, %v199_v34 }
  0xe8   :  { %v215_v47 = vmax.f32 %v165_v39, 0.0  ;;  %v223_v48 = vmax.f32 %v197_v40, 0.0  ;;  %v265_v51 = vadd.f32 %v440_v28, %v217_v41  ;;  %v218_v53 = vmax.f32 %v176_v45, 0.0 }
  0xe9   :  { %v273_v52 = vadd.f32 %v456_v29, %v225_v44  ;;  %v226_v54 = vmax.f32 %v208_v46, 0.0  ;;  %v216_v57 = vmax.f32 %v168_v49, 0.0  ;;  %v224_v58 = vmax.f32 %v200_v50, 0.0 }
  0xea   :  { %v263_v55 = vadd.f32 %v436_v30, %v215_v47  ;;  %v271_v56 = vadd.f32 %v452_v31, %v223_v48  ;;  %v281_v59 = vmax.f32 %v265_v51, 0.0  ;;  %v266_v17 = vadd.f32 %v441_v36, %v218_v53 }
  0xeb   :  { %v289_v60 = vmax.f32 %v273_v52, 0.0  ;;  %v274_v28 = vadd.f32 %v457_v37, %v226_v54  ;;  %v264_v62 = vadd.f32 %v437_v42, %v216_v57  ;;  %v272_v30 = vadd.f32 %v453_v43, %v224_v58 }
  0xec   :  { %v279_v61 = vmax.f32 %v263_v55, 0.0  ;;  %v287_v29 = vmax.f32 %v271_v56, 0.0  ;;  %v416_v63 = vpack.c.bf16 %v281_v59, %v281_v59  ;;  %v282_v0 = vmax.f32 %v266_v17, 0.0 }
  0xed   :  { %v424_v31 = vpack.c.bf16 %v289_v60, %v289_v60  ;;  %v290_v1 = vmax.f32 %v274_v28, 0.0  ;;  %v280_v4 = vmax.f32 %v264_v62, 0.0  ;;  %v288_v13 = vmax.f32 %v272_v30, 0.0 }
  0xee   :  { %v414_v2 = vpack.c.bf16 %v279_v61, %v279_v61  ;;  %v422_v3 = vpack.c.bf16 %v287_v29, %v287_v29  ;;  %362 = vst.msk [vmem:[%s708_s4 + $0x18] sm:$0xf] %vm355_vm1, %v416_v63  ;;  %v417_v14 = vpack.c.bf16 %v282_v0, %v282_v0 }
  0xef   :  { %370 = vst.msk [vmem:[%s708_s4 + $0x38] sm:$0xf] %vm355_vm1, %v424_v31  ;;  %v425_v15 = vpack.c.bf16 %v290_v1, %v290_v1  ;;  %v415_v16 = vpack.c.bf16 %v280_v4, %v280_v4  ;;  %v423_v36 = vpack.c.bf16 %v288_v13, %v288_v13 }
  0xf0   :  { %360 = vst.msk [vmem:[%s708_s4 + $0x10] sm:$0xf] %vm355_vm1, %v414_v2  ;;  %368 = vst.msk [vmem:[%s708_s4 + $0x30] sm:$0xf] %vm355_vm1, %v422_v3 }
  0xf1   :  { %363 = vst.msk [vmem:[%s708_s4 + $0x1c] sm:$0xf] %vm355_vm1, %v417_v14  ;;  %371 = vst.msk [vmem:[%s708_s4 + $0x3c] sm:$0xf] %vm355_vm1, %v425_v15 }
  0xf2   :  { %361 = vst.msk [vmem:[%s708_s4 + $0x14] sm:$0xf] %vm355_vm1, %v415_v16  ;;  %369 = vst.msk [vmem:[%s708_s4 + $0x34] sm:$0xf] %vm355_vm1, %v423_v36 }

// kernel: small_encoder_forward.39
= control target key start
LH: loop header
LB: loop body
LE: loop exit
PB: predicated region body
PF: predicated region fallthrough
CT: control target
= control target key end

     0   :  { %vm110_vm0 = vcmask 523264   ;;  %vm312_vm1 = vcmask 125952   ;;  %s573_s1 = inlined_call_operand.vmem [shape: bf16[64,16], index: 1, kind: input, shape index: {}]   ;;  %s574_s0 = inlined_call_operand.vmem [shape: bf16[128,64], index: 0, kind: input, shape index: {}]   ;;  %s575_s2 = inlined_call_operand.vmem [shape: f32[1,16], index: 2, kind: input, shape index: {}]   ;;  %s576_s3 = inlined_call_operand.vmem [shape: bf16[128,16], index: 3, kind: output, shape index: {}]  }
   0x1   :  { %v430_v0 = vld [vmem:[%s573_s1] sm:$0xff]   ;;  %v431_v1 = vld [vmem:[%s573_s1 + $0x8] sm:$0xff]   ;;  %v432_v2 = vld [vmem:[%s573_s1 + $0x10] sm:$0xff]  }
   0x2   :  { %398 = vmatprep.subr.bf16.mxu0 %v430_v0  ;;  %422 = vmatprep.subr.bf16.mxu1 %v430_v0  ;;  %v434_v3 = vld [vmem:[%s574_s0] sm:$0xff]   ;;  %v433_v5 = vld [vmem:[%s573_s1 + $0x18] sm:$0xff]   ;;  %v436_v6 = vld [vmem:[%s574_s0 + $0x8] sm:$0xff]  }
   0x3   :  { %399 = vmatpush3.bf16.msra.mxu0 %v430_v0  ;;  %426 = vmatpush3.bf16.msra.mxu1 %v430_v0  ;;  %v435_v4 = vld [vmem:[%s574_s0 + $0x20] sm:$0xff]   ;;  %v437_v7 = vld [vmem:[%s574_s0 + $0x28] sm:$0xff]   ;;  %v438_v8 = vld [vmem:[%s574_s0 + $0x10] sm:$0xff]  }
   0x4   :  { %400 = vmatprep.subr.bf16.mxu0 %v431_v1  ;;  %423 = vmatprep.subr.bf16.mxu1 %v431_v1  ;;  %v439_v9 = vld [vmem:[%s574_s0 + $0x30] sm:$0xff]   ;;  %v440_v10 = vld [vmem:[%s574_s0 + $0x18] sm:$0xff]   ;;  %v333_v12 = vld [vmem:[%s575_s2] ss:$0 sm:$0xff] }
   0x5   :  { %406 = vmatprep.mubr.msk.bf16.mxu0 %vm110_vm0, %v434_v3  ;;  %414 = vmatprep.mubr.msk.bf16.mxu1 %vm110_vm0, %v435_v4  ;;  %v441_v11 = vld [vmem:[%s574_s0 + $0x38] sm:$0xff]  }
   0x7   :  { %401 = vmatpush3.bf16.msra.mxu0 %v431_v1  ;;  %427 = vmatpush3.bf16.msra.mxu1 %v431_v1 }
   0x8   :  { %402 = vmatprep.subr.bf16.mxu0 %v432_v2  ;;  %424 = vmatprep.subr.bf16.mxu1 %v432_v2 }
   0xb   :  { %403 = vmatpush3.bf16.msra.mxu0 %v432_v2  ;;  %428 = vmatpush3.bf16.msra.mxu1 %v432_v2 }
   0xc   :  { %404 = vmatprep.subr.bf16.mxu0 %v433_v5  ;;  %425 = vmatprep.subr.bf16.mxu1 %v433_v5 }
   0xf   :  { %405 = vmatpush3.bf16.msra.mxu0 %v433_v5  ;;  %429 = vmatpush3.bf16.msra.mxu1 %v433_v5 }
  0x12   :  { %407 = vmatmul.mubr.msk.bf16.vlgmr.msra.gmra.mrb[0].mxu0 %vm110_vm0, %v436_v6  ;;  %415 = vmatmul.mubr.msk.bf16.vlgmr.msra.gmra.mrb[0].mxu1 %vm110_vm0, %v437_v7 }
  0x13   :  { %410 = vmatprep.mubr.msk.bf16.mxu0 %vm110_vm0, %v438_v8  ;;  %418 = vmatprep.mubr.msk.bf16.mxu1 %vm110_vm0, %v439_v9 }
  0x1a   :  { %411 = vmatmul.mubr.msk.bf16.gmra.mrb[4].mxu0 %vm110_vm0, %v440_v10  ;;  %419 = vmatmul.mubr.msk.bf16.gmra.mrb[4].mxu1 %vm110_vm0, %v441_v11 }
  0xe5   :  { %v408_v13 = vpop.f32.mrb[0].mxu0  ;;  %v416_v14 = vpop.f32.mrb[0].mxu1 }
  0xe6   :  { %v178_v15 = vadd.f32 %v408_v13, %v333_v12  ;;  %v210_v16 = vadd.f32 %v416_v14, %v333_v12  ;;  %v169_v17 = vpop.f32.mrb[1].mxu0  ;;  %v201_v18 = vpop.f32.mrb[1].mxu1 }
  0xe7   :  { %v170_v19 = vadd.f32 %v333_v12, %v169_v17  ;;  %v202_v20 = vadd.f32 %v333_v12, %v201_v18  ;;  %v409_v21 = vpop.f32.mrb[2].mxu0  ;;  %v417_v22 = vpop.f32.mrb[2].mxu1 }
  0xe8   :  { %v234_v23 = vmax.f32 %v178_v15, 0.0  ;;  %v242_v24 = vmax.f32 %v210_v16, 0.0  ;;  %v181_v25 = vadd.f32 %v409_v21, %v333_v12  ;;  %v213_v26 = vadd.f32 %v417_v22, %v333_v12  ;;  %v172_v27 = vpop.f32.mrb[3].mxu0  ;;  %v204_v28 = vpop.f32.mrb[3].mxu1 }
  0xe9   :  { %v232_v29 = vmax.f32 %v170_v19, 0.0  ;;  %v240_v30 = vmax.f32 %v202_v20, 0.0  ;;  %v173_v31 = vadd.f32 %v333_v12, %v172_v27  ;;  %v205_v32 = vadd.f32 %v333_v12, %v204_v28 }
  0xea   :  { %v372_v33 = vpack.c.bf16 %v234_v23, %v234_v23  ;;  %v380_v34 = vpack.c.bf16 %v242_v24, %v242_v24  ;;  %v235_v35 = vmax.f32 %v181_v25, 0.0  ;;  %v243_v36 = vmax.f32 %v213_v26, 0.0 }
  0xeb   :  { %v370_v37 = vpack.c.bf16 %v232_v29, %v232_v29  ;;  %v378_v38 = vpack.c.bf16 %v240_v30, %v240_v30  ;;  %v233_v39 = vmax.f32 %v173_v31, 0.0  ;;  %v241_v40 = vmax.f32 %v205_v32, 0.0 }
  0xec   :  { %315 = vst.msk [vmem:[%s576_s3 + $0x8] sm:$0xf] %vm312_vm1, %v372_v33  ;;  %323 = vst.msk [vmem:[%s576_s3 + $0x28] sm:$0xf] %vm312_vm1, %v380_v34  ;;  %v373_v41 = vpack.c.bf16 %v235_v35, %v235_v35  ;;  %v381_v42 = vpack.c.bf16 %v243_v36, %v243_v36 }
  0xed   :  { %313 = vst.msk [vmem:[%s576_s3] sm:$0xf] %vm312_vm1, %v370_v37  ;;  %321 = vst.msk [vmem:[%s576_s3 + $0x20] sm:$0xf] %vm312_vm1, %v378_v38  ;;  %v371_v43 = vpack.c.bf16 %v233_v39, %v233_v39  ;;  %v379_v44 = vpack.c.bf16 %v241_v40, %v241_v40  ;;  %v412_v45 = vpop.f32.mrb[4].mxu0  ;;  %v420_v46 = vpop.f32.mrb[4].mxu1 }
  0xee   :  { %316 = vst.msk [vmem:[%s576_s3 + $0xc] sm:$0xf] %vm312_vm1, %v373_v41  ;;  %324 = vst.msk [vmem:[%s576_s3 + $0x2c] sm:$0xf] %vm312_vm1, %v381_v42  ;;  %v194_v47 = vadd.f32 %v412_v45, %v333_v12  ;;  %v226_v48 = vadd.f32 %v420_v46, %v333_v12  ;;  %v185_v49 = vpop.f32.mrb[5].mxu0  ;;  %v217_v50 = vpop.f32.mrb[5].mxu1 }
  0xef   :  { %314 = vst.msk [vmem:[%s576_s3 + $0x4] sm:$0xf] %vm312_vm1, %v371_v43  ;;  %322 = vst.msk [vmem:[%s576_s3 + $0x24] sm:$0xf] %vm312_vm1, %v379_v44  ;;  %v186_v51 = vadd.f32 %v333_v12, %v185_v49  ;;  %v218_v52 = vadd.f32 %v333_v12, %v217_v50  ;;  %v413_v53 = vpop.f32.mrb[6].mxu0  ;;  %v421_v54 = vpop.f32.mrb[6].mxu1 }
  0xf0   :  { %v238_v55 = vmax.f32 %v194_v47, 0.0  ;;  %v246_v56 = vmax.f32 %v226_v48, 0.0  ;;  %v197_v57 = vadd.f32 %v413_v53, %v333_v12  ;;  %v229_v58 = vadd.f32 %v421_v54, %v333_v12  ;;  %v188_v59 = vpop.f32.mrb[7].mxu0  ;;  %v220_v60 = vpop.f32.mrb[7].mxu1 }
  0xf1   :  { %v236_v61 = vmax.f32 %v186_v51, 0.0  ;;  %v244_v62 = vmax.f32 %v218_v52, 0.0  ;;  %v189_v63 = vadd.f32 %v333_v12, %v188_v59  ;;  %v221_v0 = vadd.f32 %v333_v12, %v220_v60 }
  0xf2   :  { %v376_v1 = vpack.c.bf16 %v238_v55, %v238_v55  ;;  %v384_v2 = vpack.c.bf16 %v246_v56, %v246_v56  ;;  %v239_v3 = vmax.f32 %v197_v57, 0.0  ;;  %v247_v4 = vmax.f32 %v229_v58, 0.0 }
  0xf3   :  { %v374_v5 = vpack.c.bf16 %v236_v61, %v236_v61  ;;  %v382_v6 = vpack.c.bf16 %v244_v62, %v244_v62  ;;  %v237_v7 = vmax.f32 %v189_v63, 0.0  ;;  %v245_v8 = vmax.f32 %v221_v0, 0.0 }
  0xf4   :  { %319 = vst.msk [vmem:[%s576_s3 + $0x18] sm:$0xf] %vm312_vm1, %v376_v1  ;;  %327 = vst.msk [vmem:[%s576_s3 + $0x38] sm:$0xf] %vm312_vm1, %v384_v2  ;;  %v377_v9 = vpack.c.bf16 %v239_v3, %v239_v3  ;;  %v385_v10 = vpack.c.bf16 %v247_v4, %v247_v4 }
  0xf5   :  { %317 = vst.msk [vmem:[%s576_s3 + $0x10] sm:$0xf] %vm312_vm1, %v374_v5  ;;  %325 = vst.msk [vmem:[%s576_s3 + $0x30] sm:$0xf] %vm312_vm1, %v382_v6  ;;  %v375_v11 = vpack.c.bf16 %v237_v7, %v237_v7  ;;  %v383_v12 = vpack.c.bf16 %v245_v8, %v245_v8 }
  0xf6   :  { %320 = vst.msk [vmem:[%s576_s3 + $0x1c] sm:$0xf] %vm312_vm1, %v377_v9  ;;  %328 = vst.msk [vmem:[%s576_s3 + $0x3c] sm:$0xf] %vm312_vm1, %v385_v10 }
  0xf7   :  { %318 = vst.msk [vmem:[%s576_s3 + $0x14] sm:$0xf] %vm312_vm1, %v375_v11  ;;  %326 = vst.msk [vmem:[%s576_s3 + $0x34] sm:$0xf] %vm312_vm1, %v383_v12 }

// kernel: small_encoder_forward.42
= control target key start
LH: loop header
LB: loop body
LE: loop exit
PB: predicated region body
PF: predicated region fallthrough
CT: control target
= control target key end

     0   :  { %vm110_vm0 = vcmask 523264   ;;  %vm312_vm1 = vcmask 191488   ;;  %s573_s1 = inlined_call_operand.vmem [shape: bf16[64,24], index: 1, kind: input, shape index: {}]   ;;  %s574_s0 = inlined_call_operand.vmem [shape: bf16[128,64], index: 0, kind: input, shape index: {}]   ;;  %s575_s2 = inlined_call_operand.vmem [shape: f32[1,24], index: 2, kind: input, shape index: {}]   ;;  %s576_s3 = inlined_call_operand.vmem [shape: bf16[128,24], index: 3, kind: output, shape index: {}]  }
   0x1   :  { %v430_v0 = vld [vmem:[%s573_s1] sm:$0xff]   ;;  %v431_v1 = vld [vmem:[%s573_s1 + $0x8] sm:$0xff]   ;;  %v432_v2 = vld [vmem:[%s573_s1 + $0x10] sm:$0xff]  }
   0x2   :  { %398 = vmatprep.subr.bf16.mxu0 %v430_v0  ;;  %422 = vmatprep.subr.bf16.mxu1 %v430_v0  ;;  %v434_v3 = vld [vmem:[%s574_s0] sm:$0xff]   ;;  %v433_v5 = vld [vmem:[%s573_s1 + $0x18] sm:$0xff]   ;;  %v436_v6 = vld [vmem:[%s574_s0 + $0x8] sm:$0xff]  }
   0x3   :  { %399 = vmatpush3.bf16.msra.mxu0 %v430_v0  ;;  %426 = vmatpush3.bf16.msra.mxu1 %v430_v0  ;;  %v435_v4 = vld [vmem:[%s574_s0 + $0x20] sm:$0xff]   ;;  %v437_v7 = vld [vmem:[%s574_s0 + $0x28] sm:$0xff]   ;;  %v438_v8 = vld [vmem:[%s574_s0 + $0x10] sm:$0xff]  }
   0x4   :  { %400 = vmatprep.subr.bf16.mxu0 %v431_v1  ;;  %423 = vmatprep.subr.bf16.mxu1 %v431_v1  ;;  %v439_v9 = vld [vmem:[%s574_s0 + $0x30] sm:$0xff]   ;;  %v440_v10 = vld [vmem:[%s574_s0 + $0x18] sm:$0xff]   ;;  %v333_v12 = vld [vmem:[%s575_s2] ss:$0 sm:$0xff] }
   0x5   :  { %406 = vmatprep.mubr.msk.bf16.mxu0 %vm110_vm0, %v434_v3  ;;  %414 = vmatprep.mubr.msk.bf16.mxu1 %vm110_vm0, %v435_v4  ;;  %v441_v11 = vld [vmem:[%s574_s0 + $0x38] sm:$0xff]  }
   0x7   :  { %401 = vmatpush3.bf16.msra.mxu0 %v431_v1  ;;  %427 = vmatpush3.bf16.msra.mxu1 %v431_v1 }
   0x8   :  { %402 = vmatprep.subr.bf16.mxu0 %v432_v2  ;;  %424 = vmatprep.subr.bf16.mxu1 %v432_v2 }
   0xb   :  { %403 = vmatpush3.bf16.msra.mxu0 %v432_v2  ;;  %428 = vmatpush3.bf16.msra.mxu1 %v432_v2 }
   0xc   :  { %404 = vmatprep.subr.bf16.mxu0 %v433_v5  ;;  %425 = vmatprep.subr.bf16.mxu1 %v433_v5 }
   0xf   :  { %405 = vmatpush3.bf16.msra.mxu0 %v433_v5  ;;  %429 = vmatpush3.bf16.msra.mxu1 %v433_v5 }
  0x12   :  { %407 = vmatmul.mubr.msk.bf16.vlgmr.msra.gmra.mrb[0].mxu0 %vm110_vm0, %v436_v6  ;;  %415 = vmatmul.mubr.msk.bf16.vlgmr.msra.gmra.mrb[0].mxu1 %vm110_vm0, %v437_v7 }
  0x13   :  { %410 = vmatprep.mubr.msk.bf16.mxu0 %vm110_vm0, %v438_v8  ;;  %418 = vmatprep.mubr.msk.bf16.mxu1 %vm110_vm0, %v439_v9 }
  0x1a   :  { %411 = vmatmul.mubr.msk.bf16.gmra.mrb[4].mxu0 %vm110_vm0, %v440_v10  ;;  %419 = vmatmul.mubr.msk.bf16.gmra.mrb[4].mxu1 %vm110_vm0, %v441_v11 }
  0xe5   :  { %v408_v13 = vpop.f32.mrb[0].mxu0  ;;  %v416_v14 = vpop.f32.mrb[0].mxu1 }
  0xe6   :  { %v178_v15 = vadd.f32 %v408_v13, %v333_v12  ;;  %v210_v16 = vadd.f32 %v416_v14, %v333_v12  ;;  %v169_v17 = vpop.f32.mrb[1].mxu0  ;;  %v201_v18 = vpop.f32.mrb[1].mxu1 }
  0xe7   :  { %v170_v19 = vadd.f32 %v333_v12, %v169_v17  ;;  %v202_v20 = vadd.f32 %v333_v12, %v201_v18  ;;  %v409_v21 = vpop.f32.mrb[2].mxu0  ;;  %v417_v22 = vpop.f32.mrb[2].mxu1 }
  0xe8   :  { %v234_v23 = vmax.f32 %v178_v15, 0.0  ;;  %v242_v24 = vmax.f32 %v210_v16, 0.0  ;;  %v181_v25 = vadd.f32 %v409_v21, %v333_v12  ;;  %v213_v26 = vadd.f32 %v417_v22, %v333_v12  ;;  %v172_v27 = vpop.f32.mrb[3].mxu0  ;;  %v204_v28 = vpop.f32.mrb[3].mxu1 }
  0xe9   :  { %v232_v29 = vmax.f32 %v170_v19, 0.0  ;;  %v240_v30 = vmax.f32 %v202_v20, 0.0  ;;  %v173_v31 = vadd.f32 %v333_v12, %v172_v27  ;;  %v205_v32 = vadd.f32 %v333_v12, %v204_v28 }
  0xea   :  { %v372_v33 = vpack.c.bf16 %v234_v23, %v234_v23  ;;  %v380_v34 = vpack.c.bf16 %v242_v24, %v242_v24  ;;  %v235_v35 = vmax.f32 %v181_v25, 0.0  ;;  %v243_v36 = vmax.f32 %v213_v26, 0.0 }
  0xeb   :  { %v370_v37 = vpack.c.bf16 %v232_v29, %v232_v29  ;;  %v378_v38 = vpack.c.bf16 %v240_v30, %v240_v30  ;;  %v233_v39 = vmax.f32 %v173_v31, 0.0  ;;  %v241_v40 = vmax.f32 %v205_v32, 0.0 }
  0xec   :  { %315 = vst.msk [vmem:[%s576_s3 + $0x8] sm:$0xf] %vm312_vm1, %v372_v33  ;;  %323 = vst.msk [vmem:[%s576_s3 + $0x28] sm:$0xf] %vm312_vm1, %v380_v34  ;;  %v373_v41 = vpack.c.bf16 %v235_v35, %v235_v35  ;;  %v381_v42 = vpack.c.bf16 %v243_v36, %v243_v36 }
  0xed   :  { %313 = vst.msk [vmem:[%s576_s3] sm:$0xf] %vm312_vm1, %v370_v37  ;;  %321 = vst.msk [vmem:[%s576_s3 + $0x20] sm:$0xf] %vm312_vm1, %v378_v38  ;;  %v371_v43 = vpack.c.bf16 %v233_v39, %v233_v39  ;;  %v379_v44 = vpack.c.bf16 %v241_v40, %v241_v40  ;;  %v412_v45 = vpop.f32.mrb[4].mxu0  ;;  %v420_v46 = vpop.f32.mrb[4].mxu1 }
  0xee   :  { %316 = vst.msk [vmem:[%s576_s3 + $0xc] sm:$0xf] %vm312_vm1, %v373_v41  ;;  %324 = vst.msk [vmem:[%s576_s3 + $0x2c] sm:$0xf] %vm312_vm1, %v381_v42  ;;  %v194_v47 = vadd.f32 %v412_v45, %v333_v12  ;;  %v226_v48 = vadd.f32 %v420_v46, %v333_v12  ;;  %v185_v49 = vpop.f32.mrb[5].mxu0  ;;  %v217_v50 = vpop.f32.mrb[5].mxu1 }
  0xef   :  { %314 = vst.msk [vmem:[%s576_s3 + $0x4] sm:$0xf] %vm312_vm1, %v371_v43  ;;  %322 = vst.msk [vmem:[%s576_s3 + $0x24] sm:$0xf] %vm312_vm1, %v379_v44  ;;  %v186_v51 = vadd.f32 %v333_v12, %v185_v49  ;;  %v218_v52 = vadd.f32 %v333_v12, %v217_v50  ;;  %v413_v53 = vpop.f32.mrb[6].mxu0  ;;  %v421_v54 = vpop.f32.mrb[6].mxu1 }
  0xf0   :  { %v238_v55 = vmax.f32 %v194_v47, 0.0  ;;  %v246_v56 = vmax.f32 %v226_v48, 0.0  ;;  %v197_v57 = vadd.f32 %v413_v53, %v333_v12  ;;  %v229_v58 = vadd.f32 %v421_v54, %v333_v12  ;;  %v188_v59 = vpop.f32.mrb[7].mxu0  ;;  %v220_v60 = vpop.f32.mrb[7].mxu1 }
  0xf1   :  { %v236_v61 = vmax.f32 %v186_v51, 0.0  ;;  %v244_v62 = vmax.f32 %v218_v52, 0.0  ;;  %v189_v63 = vadd.f32 %v333_v12, %v188_v59  ;;  %v221_v0 = vadd.f32 %v333_v12, %v220_v60 }
  0xf2   :  { %v376_v1 = vpack.c.bf16 %v238_v55, %v238_v55  ;;  %v384_v2 = vpack.c.bf16 %v246_v56, %v246_v56  ;;  %v239_v3 = vmax.f32 %v197_v57, 0.0  ;;  %v247_v4 = vmax.f32 %v229_v58, 0.0 }
  0xf3   :  { %v374_v5 = vpack.c.bf16 %v236_v61, %v236_v61  ;;  %v382_v6 = vpack.c.bf16 %v244_v62, %v244_v62  ;;  %v237_v7 = vmax.f32 %v189_v63, 0.0  ;;  %v245_v8 = vmax.f32 %v221_v0, 0.0 }
  0xf4   :  { %319 = vst.msk [vmem:[%s576_s3 + $0x18] sm:$0xf] %vm312_vm1, %v376_v1  ;;  %327 = vst.msk [vmem:[%s576_s3 + $0x38] sm:$0xf] %vm312_vm1, %v384_v2  ;;  %v377_v9 = vpack.c.bf16 %v239_v3, %v239_v3  ;;  %v385_v10 = vpack.c.bf16 %v247_v4, %v247_v4 }
  0xf5   :  { %317 = vst.msk [vmem:[%s576_s3 + $0x10] sm:$0xf] %vm312_vm1, %v374_v5  ;;  %325 = vst.msk [vmem:[%s576_s3 + $0x30] sm:$0xf] %vm312_vm1, %v382_v6  ;;  %v375_v11 = vpack.c.bf16 %v237_v7, %v237_v7  ;;  %v383_v12 = vpack.c.bf16 %v245_v8, %v245_v8 }
  0xf6   :  { %320 = vst.msk [vmem:[%s576_s3 + $0x1c] sm:$0xf] %vm312_vm1, %v377_v9  ;;  %328 = vst.msk [vmem:[%s576_s3 + $0x3c] sm:$0xf] %vm312_vm1, %v385_v10 }
  0xf7   :  { %318 = vst.msk [vmem:[%s576_s3 + $0x14] sm:$0xf] %vm312_vm1, %v375_v11  ;;  %326 = vst.msk [vmem:[%s576_s3 + $0x34] sm:$0xf] %vm312_vm1, %v383_v12 }

// kernel: small_encoder_forward.44
= control target key start
LH: loop header
LB: loop body
LE: loop exit
PB: predicated region body
PF: predicated region fallthrough
CT: control target
= control target key end

     0   :  { %vm68_vm0 = vcmask 523264   ;;  %vm140_vm1 = vcmask 781312   ;;  %s243_s1 = inlined_call_operand.vmem [shape: bf16[64,96], index: 1, kind: input, shape index: {}]   ;;  %s244_s0 = inlined_call_operand.vmem [shape: bf16[32,64], index: 0, kind: input, shape index: {}]   ;;  %s245_s2 = inlined_call_operand.vmem [shape: f32[1,96], index: 2, kind: input, shape index: {}]   ;;  %s246_s3 = inlined_call_operand.vmem [shape: bf16[32,96], index: 3, kind: output, shape index: {}]  }
   0x1   :  { %v184_v0 = vld [vmem:[%s243_s1] sm:$0xff]   ;;  %v185_v1 = vld [vmem:[%s243_s1 + $0x8] sm:$0xff]   ;;  %v186_v2 = vld [vmem:[%s243_s1 + $0x10] sm:$0xff]  }
   0x2   :  { %172 = vmatprep.subr.bf16.mxu0 %v184_v0  ;;  %v188_v3 = vld [vmem:[%s244_s0] sm:$0xff]   ;;  %v187_v4 = vld [vmem:[%s243_s1 + $0x18] sm:$0xff]   ;;  %v189_v5 = vld [vmem:[%s244_s0 + $0x8] sm:$0xff]  }
   0x3   :  { %173 = vmatpush3.bf16.msra.mxu0 %v184_v0  ;;  %180 = vmatprep.mubr.msk.bf16.mxu0 %vm68_vm0, %v188_v3  ;;  %v149_v6 = vld [vmem:[%s245_s2] ss:$0 sm:$0xff] }
   0x4   :  { %174 = vmatprep.subr.bf16.mxu0 %v185_v1 }
   0x7   :  { %175 = vmatpush3.bf16.msra.mxu0 %v185_v1 }
   0x8   :  { %176 = vmatprep.subr.bf16.mxu0 %v186_v2 }
   0xb   :  { %177 = vmatpush3.bf16.msra.mxu0 %v186_v2 }
   0xc   :  { %178 = vmatprep.subr.bf16.mxu0 %v187_v4 }
   0xf   :  { %179 = vmatpush3.bf16.msra.mxu0 %v187_v4 }
  0x12   :  { %181 = vmatmul.mubr.msk.bf16.vlgmr.msra.gmra.mrb[0].mxu0 %vm68_vm0, %v189_v5 }
  0xe5   :  { %v182_v7 = vpop.f32.mrb[0].mxu0 }
  0xe6   :  { %v118_v8 = vadd.f32 %v182_v7, %v149_v6  ;;  %v109_v9 = vpop.f32.mrb[1].mxu0 }
  0xe7   :  { %v110_v10 = vadd.f32 %v149_v6, %v109_v9  ;;  %v183_v11 = vpop.f32.mrb[2].mxu0 }
  0xe8   :  { %v164_v12 = vpack.c.bf16 %v118_v8, %v118_v8  ;;  %v121_v13 = vadd.f32 %v183_v11, %v149_v6  ;;  %v112_v14 = vpop.f32.mrb[3].mxu0 }
  0xe9   :  { %v162_v15 = vpack.c.bf16 %v110_v10, %v110_v10  ;;  %v113_v16 = vadd.f32 %v149_v6, %v112_v14 }
  0xea   :  { %143 = vst.msk [vmem:[%s246_s3 + $0x8] sm:$0xf] %vm140_vm1, %v164_v12  ;;  %v165_v17 = vpack.c.bf16 %v121_v13, %v121_v13 }
  0xeb   :  { %141 = vst.msk [vmem:[%s246_s3] sm:$0xf] %vm140_vm1, %v162_v15  ;;  %v163_v18 = vpack.c.bf16 %v113_v16, %v113_v16 }
  0xec   :  { %144 = vst.msk [vmem:[%s246_s3 + $0xc] sm:$0xf] %vm140_vm1, %v165_v17 }
  0xed   :  { %142 = vst.msk [vmem:[%s246_s3 + $0x4] sm:$0xf] %vm140_vm1, %v163_v18 }

// kernel: small_encoder_forward.43
= control target key start
LH: loop header
LB: loop body
LE: loop exit
PB: predicated region body
PF: predicated region fallthrough
CT: control target
= control target key end

     0   :  { %v319_v0 = vmov 0   ;;  %vm152_vm0 = vcmask 719872   ;;  %vm159_vm1 = vcmask 1043456   ;;  %vm232_vm2 = vcmask 191488   ;;  %s437_s1 = inlined_call_operand.vmem [shape: bf16[216,24], index: 1, kind: input, shape index: {}]   ;;  %s438_s0 = inlined_call_operand.vmem [shape: bf16[32,216], index: 0, kind: input, shape index: {}]   ;;  %s439_s2 = inlined_call_operand.vmem [shape: f32[1,24], index: 2, kind: input, shape index: {}]   ;;  %s440_s3 = inlined_call_operand.vmem [shape: bf16[32,24], index: 3, kind: output, shape index: {}]  }
   0x1   :  { %163 = vmatprep.subr.bf16.mxu0 %v319_v0  ;;  %270 = vmatprep.subr.bf16.mxu1 %v319_v0  ;;  %v299_v1 = vld [vmem:[%s437_s1] sm:$0xff]   ;;  %v300_v2 = vld [vmem:[%s437_s1 + $0x8] sm:$0xff]   ;;  %v301_v3 = vld [vmem:[%s437_s1 + $0x10] sm:$0xff]  }
   0x2   :  { %164 = vmatpush1.bf16.msra.mxu0 %v299_v1  ;;  %284 = vmatpush1.bf16.msra.mxu1 %v299_v1  ;;  %v302_v4 = vld [vmem:[%s437_s1 + $0x18] sm:$0xff]   ;;  %v303_v5 = vld [vmem:[%s437_s1 + $0x20] sm:$0xff]   ;;  %v304_v8 = vld [vmem:[%s437_s1 + $0x28] sm:$0xff]  }
   0x3   :  { %165 = vmatprep.subr.bf16.mxu0 %v319_v0  ;;  %271 = vmatprep.subr.bf16.mxu1 %v319_v0  ;;  %v315_v6 = vld [vmem:[%s438_s0 + $0x4] ss:$8 sps:$4 sm:$0xff]   ;;  %v318_v7 = vld [vmem:[%s438_s0 + $0x14] ss:$8 sps:$4 sm:$0xff]   ;;  %v312_v16 = vld [vmem:[%s437_s1 + $0x68] ss:$0 sps:$4 sm:$0xff]  }
   0x4   :  { %260 = vmatprep.mubr.msk.bf16.mxu0 %vm152_vm0, %v315_v6  ;;  %261 = vmatprep.mubr.msk.bf16.mxu1 %vm152_vm0, %v318_v7  ;;  %v305_v9 = vld [vmem:[%s437_s1 + $0x30] sm:$0xff]   ;;  %v306_v10 = vld [vmem:[%s437_s1 + $0x38] sm:$0xff]   ;;  %v307_v11 = vld [vmem:[%s437_s1 + $0x40] sm:$0xff]   ;;  %v161_v17 = vsel %vm159_vm1, %v312_v16, 0 }
   0x5   :  { %v308_v12 = vld [vmem:[%s437_s1 + $0x48] sm:$0xff]   ;;  %v309_v13 = vld [vmem:[%s437_s1 + $0x50] sm:$0xff]   ;;  %v310_v14 = vld [vmem:[%s437_s1 + $0x58] sm:$0xff]  }
   0x6   :  { %166 = vmatpush1.bf16.msra.mxu0 %v300_v2  ;;  %285 = vmatpush1.bf16.msra.mxu1 %v300_v2  ;;  %v311_v15 = vld [vmem:[%s437_s1 + $0x60] sm:$0xff]   ;;  %v316_v19 = vld [vmem:[%s438_s0 + $0x10] ss:$8 sps:$4 sm:$0xff]  }
   0x7   :  { %167 = vmatprep.subr.bf16.mxu0 %v319_v0  ;;  %272 = vmatprep.subr.bf16.mxu1 %v319_v0  ;;  %v313_v18 = vld [vmem:[%s438_s0] ss:$8 sps:$4 sm:$0xff]  }
   0x8   :  { %v241_v20 = vld [vmem:[%s439_s2] ss:$0 sm:$0xff] }
   0xa   :  { %168 = vmatpush1.bf16.msra.mxu0 %v301_v3  ;;  %286 = vmatpush1.bf16.msra.mxu1 %v301_v3 }
   0xb   :  { %169 = vmatprep.subr.bf16.mxu0 %v319_v0  ;;  %273 = vmatprep.subr.bf16.mxu1 %v319_v0 }
   0xe   :  { %170 = vmatpush1.bf16.msra.mxu0 %v302_v4  ;;  %287 = vmatpush1.bf16.msra.mxu1 %v302_v4 }
   0xf   :  { %171 = vmatprep.subr.bf16.mxu0 %v319_v0  ;;  %274 = vmatprep.subr.bf16.mxu1 %v319_v0 }
  0x12   :  { %172 = vmatpush1.bf16.msra.mxu0 %v303_v5  ;;  %288 = vmatpush1.bf16.msra.mxu1 %v303_v5 }
  0x13   :  { %173 = vmatprep.subr.bf16.mxu0 %v319_v0  ;;  %275 = vmatprep.subr.bf16.mxu1 %v319_v0 }
  0x16   :  { %174 = vmatpush1.bf16.msra.mxu0 %v304_v8  ;;  %289 = vmatpush1.bf16.msra.mxu1 %v304_v8 }
  0x17   :  { %175 = vmatprep.subr.bf16.mxu0 %v319_v0  ;;  %276 = vmatprep.subr.bf16.mxu1 %v319_v0 }
  0x1a   :  { %176 = vmatpush1.bf16.msra.mxu0 %v305_v9  ;;  %290 = vmatpush1.bf16.msra.mxu1 %v305_v9 }
  0x1b   :  { %177 = vmatprep.subr.bf16.mxu0 %v319_v0  ;;  %277 = vmatprep.subr.bf16.mxu1 %v319_v0 }
  0x1e   :  { %178 = vmatpush1.bf16.msra.mxu0 %v306_v10  ;;  %291 = vmatpush1.bf16.msra.mxu1 %v306_v10 }
  0x1f   :  { %179 = vmatprep.subr.bf16.mxu0 %v319_v0  ;;  %278 = vmatprep.subr.bf16.mxu1 %v319_v0 }
  0x22   :  { %180 = vmatpush1.bf16.msra.mxu0 %v307_v11  ;;  %292 = vmatpush1.bf16.msra.mxu1 %v307_v11 }
  0x23   :  { %181 = vmatprep.subr.bf16.mxu0 %v319_v0  ;;  %279 = vmatprep.subr.bf16.mxu1 %v319_v0 }
  0x26   :  { %182 = vmatpush1.bf16.msra.mxu0 %v308_v12  ;;  %293 = vmatpush1.bf16.msra.mxu1 %v308_v12 }
  0x27   :  { %183 = vmatprep.subr.bf16.mxu0 %v319_v0  ;;  %280 = vmatprep.subr.bf16.mxu1 %v319_v0 }
  0x2a   :  { %184 = vmatpush1.bf16.msra.mxu0 %v309_v13  ;;  %294 = vmatpush1.bf16.msra.mxu1 %v309_v13 }
  0x2b   :  { %185 = vmatprep.subr.bf16.mxu0 %v319_v0  ;;  %281 = vmatprep.subr.bf16.mxu1 %v319_v0 }
  0x2e   :  { %186 = vmatpush1.bf16.msra.mxu0 %v310_v14  ;;  %295 = vmatpush1.bf16.msra.mxu1 %v310_v14 }
  0x2f   :  { %187 = vmatprep.subr.bf16.mxu0 %v319_v0  ;;  %282 = vmatprep.subr.bf16.mxu1 %v319_v0 }
  0x32   :  { %188 = vmatpush1.bf16.msra.mxu0 %v311_v15  ;;  %296 = vmatpush1.bf16.msra.mxu1 %v311_v15 }
  0x33   :  { %189 = vmatprep.subr.bf16.mxu0 %v319_v0  ;;  %283 = vmatprep.subr.bf16.mxu1 %v319_v0 }
  0x36   :  { %190 = vmatpush1.bf16.msra.mxu0 %v161_v17  ;;  %297 = vmatpush1.bf16.msra.mxu1 %v161_v17 }
  0x39   :  { %196 = vmatmul.mubr.bf16.vlgmr.msra.gmra.mrb[0].mxu0 %v313_v18  ;;  %204 = vmatmul.mubr.bf16.vlgmr.msra.gmra.mrb[0].mxu1 %v316_v19 }
 0x10c   :  { %v197_v21 = vpop.f32.mrb[0].mxu0  ;;  %v205_v22 = vpop.f32.mrb[0].mxu1 }
 0x10d   :  { %v198_v23 = vadd.f32 %v241_v20, %v197_v21  ;;  %v206_v24 = vadd.f32 %v241_v20, %v205_v22  ;;  %v199_v25 = vpop.f32.mrb[1].mxu0  ;;  %v207_v26 = vpop.f32.mrb[1].mxu1 }
 0x10e   :  { %v200_v27 = vpop.f32.mrb[2].mxu0  ;;  %v208_v28 = vpop.f32.mrb[2].mxu1 }
 0x10f   :  { %v212_v29 = vmax.f32 %v198_v23, 0.0  ;;  %v214_v30 = vmax.f32 %v206_v24, 0.0  ;;  %v201_v31 = vadd.f32 %v241_v20, %v200_v27  ;;  %v209_v32 = vadd.f32 %v241_v20, %v208_v28  ;;  %v202_v33 = vpop.f32.mrb[3].mxu0  ;;  %v210_v34 = vpop.f32.mrb[3].mxu1 }
 0x111   :  { %v266_v35 = vpack.c.bf16 %v212_v29, %v212_v29  ;;  %v268_v36 = vpack.c.bf16 %v214_v30, %v214_v30  ;;  %v213_v37 = vmax.f32 %v201_v31, 0.0  ;;  %v215_v38 = vmax.f32 %v209_v32, 0.0 }
 0x113   :  { %233 = vst.msk [vmem:[%s440_s3] sm:$0xf] %vm232_vm2, %v266_v35  ;;  %235 = vst.msk [vmem:[%s440_s3 + $0x8] sm:$0xf] %vm232_vm2, %v268_v36  ;;  %v267_v39 = vpack.c.bf16 %v213_v37, %v213_v37  ;;  %v269_v40 = vpack.c.bf16 %v215_v38, %v215_v38 }
 0x115   :  { %234 = vst.msk [vmem:[%s440_s3 + $0x4] sm:$0xf] %vm232_vm2, %v267_v39  ;;  %236 = vst.msk [vmem:[%s440_s3 + $0xc] sm:$0xf] %vm232_vm2, %v269_v40 }

// kernel: small_encoder_forward.45
= control target key start
LH: loop header
LB: loop body
LE: loop exit
PB: predicated region body
PF: predicated region fallthrough
CT: control target
= control target key end

     0   :  { %vm51_vm0 = vcmask 195584   ;;  %vm58_vm1 = vcmask 1043456   ;;  %vm147_vm2 = vcmask 781312   ;;  %s255_s1 = inlined_call_operand.vmem [shape: bf16[24,96], index: 1, kind: input, shape index: {}]   ;;  %s256_s0 = inlined_call_operand.vmem [shape: bf16[32,24], index: 0, kind: input, shape index: {}]   ;;  %s257_s2 = inlined_call_operand.vmem [shape: f32[1,96], index: 2, kind: input, shape index: {}]   ;;  %s258_s3 = inlined_call_operand.vmem [shape: bf16[32,96], index: 3, kind: input, shape index: {}]   ;;  %s259_s4 = inlined_call_operand.vmem [shape: bf16[32,96], index: 4, kind: output, shape index: {}]  }
   0x1   :  { %v193_v0 = vld [vmem:[%s255_s1] sm:$0xff]   ;;  %v194_v1 = vld [vmem:[%s255_s1 + $0x8] ss:$0 sps:$4 sm:$0xff]  }
   0x2   :  { %v195_v2 = vld [vmem:[%s256_s0] sm:$0xff]   ;;  %184 = vmatprep.subr.bf16.mxu0 %v193_v0  ;;  %v60_v3 = vsel %vm58_vm1, %v194_v1, 0  ;;  %v196_v4 = vld [vmem:[%s256_s0 + $0x8] sm:$0xff]  }
   0x3   :  { %185 = vmatpush3.bf16.msra.mxu0 %v193_v0  ;;  %188 = vmatprep.mubr.msk.bf16.mxu0 %vm51_vm0, %v195_v2  ;;  %v156_v5 = vld [vmem:[%s257_s2] ss:$0 sm:$0xff]  ;;  %v179_v6 = vld [vmem:[%s258_s3 + $0x8] sm:$0xff]  }
   0x4   :  { %192 = vmatprep.subr.msk.bf16.mxu0 %vm58_vm1, %v194_v1  ;;  %v172_v7 = vld [vmem:[%s258_s3] sm:$0xff]   ;;  %v177_v10 = vunpack.c.l.bf16 %v179_v6  ;;  %v178_v17 = vunpack.c.h.bf16 %v179_v6 }
   0x5   :  { %v173_v13 = vunpack.c.l.bf16 %v172_v7  ;;  %v174_v21 = vunpack.c.h.bf16 %v172_v7 }
   0x7   :  { %187 = vmatpush3.bf16.msra.mxu0 %v60_v3 }
   0xa   :  { %189 = vmatmul.mubr.msk.bf16.vlgmr.msra.gmra.mrb[0].mxu0 %vm51_vm0, %v196_v4 }
  0xdd   :  { %v190_v8 = vpop.f32.mrb[0].mxu0 }
  0xde   :  { %v105_v9 = vadd.f32 %v190_v8, %v156_v5  ;;  %v96_v11 = vpop.f32.mrb[1].mxu0 }
  0xdf   :  { %v97_v12 = vadd.f32 %v156_v5, %v96_v11  ;;  %v191_v14 = vpop.f32.mrb[2].mxu0 }
  0xe0   :  { %v113_v15 = vmax.f32 %v105_v9, 0.0  ;;  %v108_v16 = vadd.f32 %v191_v14, %v156_v5  ;;  %v99_v18 = vpop.f32.mrb[3].mxu0 }
  0xe1   :  { %v111_v19 = vmax.f32 %v97_v12, 0.0  ;;  %v100_v20 = vadd.f32 %v156_v5, %v99_v18 }
  0xe2   :  { %v125_v22 = vadd.f32 %v177_v10, %v113_v15  ;;  %v114_v23 = vmax.f32 %v108_v16, 0.0 }
  0xe3   :  { %v123_v24 = vadd.f32 %v173_v13, %v111_v19  ;;  %v112_v25 = vmax.f32 %v100_v20, 0.0 }
  0xe4   :  { %v129_v26 = vmax.f32 %v125_v22, 0.0  ;;  %v126_v27 = vadd.f32 %v178_v17, %v114_v23 }
  0xe5   :  { %v127_v28 = vmax.f32 %v123_v24, 0.0  ;;  %v124_v29 = vadd.f32 %v174_v21, %v112_v25 }
  0xe6   :  { %v169_v30 = vpack.c.bf16 %v129_v26, %v129_v26  ;;  %v130_v31 = vmax.f32 %v126_v27, 0.0 }
  0xe7   :  { %v167_v32 = vpack.c.bf16 %v127_v28, %v127_v28  ;;  %v128_v33 = vmax.f32 %v124_v29, 0.0 }
  0xe8   :  { %150 = vst.msk [vmem:[%s259_s4 + $0x8] sm:$0xf] %vm147_vm2, %v169_v30  ;;  %v170_v34 = vpack.c.bf16 %v130_v31, %v130_v31 }
  0xe9   :  { %148 = vst.msk [vmem:[%s259_s4] sm:$0xf] %vm147_vm2, %v167_v32  ;;  %v168_v35 = vpack.c.bf16 %v128_v33, %v128_v33 }
  0xea   :  { %151 = vst.msk [vmem:[%s259_s4 + $0xc] sm:$0xf] %vm147_vm2, %v170_v34 }
  0xeb   :  { %149 = vst.msk [vmem:[%s259_s4 + $0x4] sm:$0xf] %vm147_vm2, %v168_v35 }

// kernel: small_encoder_forward.46
= control target key start
LH: loop header
LB: loop body
LE: loop exit
PB: predicated region body
PF: predicated region fallthrough
CT: control target
= control target key end

     0   :  { %vm84_vm0 = vcmask 785408   ;;  %vm160_vm1 = vcmask 191488   ;;  %s281_s1 = inlined_call_operand.vmem [shape: bf16[96,24], index: 1, kind: input, shape index: {}]   ;;  %s282_s0 = inlined_call_operand.vmem [shape: bf16[32,96], index: 0, kind: input, shape index: {}]   ;;  %s283_s2 = inlined_call_operand.vmem [shape: f32[1,24], index: 2, kind: input, shape index: {}]   ;;  %s284_s3 = inlined_call_operand.vmem [shape: bf16[32,24], index: 3, kind: output, shape index: {}]  }
   0x1   :  { %v212_v0 = vld [vmem:[%s281_s1] sm:$0xff]   ;;  %v213_v1 = vld [vmem:[%s281_s1 + $0x8] sm:$0xff]   ;;  %v214_v2 = vld [vmem:[%s281_s1 + $0x10] sm:$0xff]  }
   0x2   :  { %196 = vmatprep.subr.bf16.mxu0 %v212_v0  ;;  %v218_v3 = vld [vmem:[%s282_s0] sm:$0xff]   ;;  %v215_v4 = vld [vmem:[%s281_s1 + $0x18] sm:$0xff]   ;;  %v217_v6 = vld [vmem:[%s281_s1 + $0x28] sm:$0xff]  }
   0x3   :  { %197 = vmatpush3.bf16.msra.mxu0 %v212_v0  ;;  %208 = vmatprep.mubr.msk.bf16.mxu0 %vm84_vm0, %v218_v3  ;;  %v216_v5 = vld [vmem:[%s281_s1 + $0x20] sm:$0xff]   ;;  %v219_v7 = vld [vmem:[%s282_s0 + $0x8] sm:$0xff]  }
   0x4   :  { %198 = vmatprep.subr.bf16.mxu0 %v213_v1  ;;  %v169_v8 = vld [vmem:[%s283_s2] ss:$0 sm:$0xff] }
   0x7   :  { %199 = vmatpush3.bf16.msra.mxu0 %v213_v1 }
   0x8   :  { %200 = vmatprep.subr.bf16.mxu0 %v214_v2 }
   0xb   :  { %201 = vmatpush3.bf16.msra.mxu0 %v214_v2 }
   0xc   :  { %202 = vmatprep.subr.bf16.mxu0 %v215_v4 }
   0xf   :  { %203 = vmatpush3.bf16.msra.mxu0 %v215_v4 }
  0x10   :  { %204 = vmatprep.subr.bf16.mxu0 %v216_v5 }
  0x13   :  { %205 = vmatpush3.bf16.msra.mxu0 %v216_v5 }
  0x14   :  { %206 = vmatprep.subr.bf16.mxu0 %v217_v6 }
  0x17   :  { %207 = vmatpush3.bf16.msra.mxu0 %v217_v6 }
  0x1a   :  { %209 = vmatmul.mubr.msk.bf16.vlgmr.msra.gmra.mrb[0].mxu0 %vm84_vm0, %v219_v7 }
  0xed   :  { %v210_v9 = vpop.f32.mrb[0].mxu0 }
  0xee   :  { %v134_v10 = vadd.f32 %v210_v9, %v169_v8  ;;  %v125_v11 = vpop.f32.mrb[1].mxu0 }
  0xef   :  { %v126_v12 = vadd.f32 %v169_v8, %v125_v11  ;;  %v211_v13 = vpop.f32.mrb[2].mxu0 }
  0xf0   :  { %v142_v14 = vmax.f32 %v134_v10, 0.0  ;;  %v137_v15 = vadd.f32 %v211_v13, %v169_v8  ;;  %v128_v16 = vpop.f32.mrb[3].mxu0 }
  0xf1   :  { %v140_v17 = vmax.f32 %v126_v12, 0.0  ;;  %v129_v18 = vadd.f32 %v169_v8, %v128_v16 }
  0xf2   :  { %v186_v19 = vpack.c.bf16 %v142_v14, %v142_v14  ;;  %v143_v20 = vmax.f32 %v137_v15, 0.0 }
  0xf3   :  { %v184_v21 = vpack.c.bf16 %v140_v17, %v140_v17  ;;  %v141_v22 = vmax.f32 %v129_v18, 0.0 }
  0xf4   :  { %163 = vst.msk [vmem:[%s284_s3 + $0x8] sm:$0xf] %vm160_vm1, %v186_v19  ;;  %v187_v23 = vpack.c.bf16 %v143_v20, %v143_v20 }
  0xf5   :  { %161 = vst.msk [vmem:[%s284_s3] sm:$0xf] %vm160_vm1, %v184_v21  ;;  %v185_v24 = vpack.c.bf16 %v141_v22, %v141_v22 }
  0xf6   :  { %164 = vst.msk [vmem:[%s284_s3 + $0xc] sm:$0xf] %vm160_vm1, %v187_v23 }
  0xf7   :  { %162 = vst.msk [vmem:[%s284_s3 + $0x4] sm:$0xf] %vm160_vm1, %v185_v24 }

// kernel: tile.18
= control target key start
LH: loop header
LB: loop body
LE: loop exit
PB: predicated region body
PF: predicated region fallthrough
CT: control target
= control target key end

     0   :  { %s22_s0 = inlined_call_operand.vmem [shape: f32[3], index: 0, kind: input, shape index: {}]   ;;  %s23_s1 = inlined_call_operand.vmem [shape: f32[3,3], index: 1, kind: output, shape index: {}]  }
   0x1   :  { %v4_v0 = vld [vmem:[%s22_s0] ss:$0 sm:$0xff] }
   0x2   :  { %5 = vst [vmem:[%s23_s1] sm:$0xf] %v4_v0 }

// kernel: small_encoder_forward.49
= control target key start
LH: loop header
LB: loop body
LE: loop exit
PB: predicated region body
PF: predicated region fallthrough
CT: control target
= control target key end

     0   :  { %vm540_vm0 = vcmask 785408   ;;  %vm771_vm2 = vcmask 142336   ;;  %s1284_s1 = inlined_call_operand.vmem [shape: bf16[864,18], index: 1, kind: input, shape index: {}]   ;;  %s1285_s0 = inlined_call_operand.vmem [shape: bf16[32,864], index: 0, kind: input, shape index: {}]   ;;  %s1286_s2 = inlined_call_operand.vmem [shape: f32[1,18], index: 2, kind: input, shape index: {}]   ;;  %s1287_s3 = inlined_call_operand.vmem [shape: bf16[32,18], index: 3, kind: output, shape index: {}]  }
   0x1   :  { %v967_v0 = vld [vmem:[%s1284_s1 + $0x40] sm:$0xff]   ;;  %v971_v4 = vld [vmem:[%s1284_s1 + $0x48] sm:$0xff]   ;;  %v975_v8 = vld [vmem:[%s1284_s1 + $0x50] sm:$0xff]  }
   0x2   :  { %v968_v1 = vld [vmem:[%s1284_s1] sm:$0xff]   ;;  %859 = vmatprep.subr.bf16.mxu0 %v967_v0  ;;  %v972_v5 = vld [vmem:[%s1284_s1 + $0x8] sm:$0xff]   ;;  %v976_v9 = vld [vmem:[%s1284_s1 + $0x10] sm:$0xff]  }
   0x3   :  { %v969_v2 = vld [vmem:[%s1284_s1 + $0xc0] sm:$0xff]   ;;  %860 = vmatpush3.bf16.msra.mxu0 %v968_v1  ;;  %v973_v6 = vld [vmem:[%s1284_s1 + $0xc8] sm:$0xff]   ;;  %v977_v10 = vld [vmem:[%s1284_s1 + $0xd0] sm:$0xff]  }
   0x4   :  { %v970_v3 = vld [vmem:[%s1284_s1 + $0x80] sm:$0xff]   ;;  %887 = vmatprep.subr.bf16.mxu1 %v969_v2  ;;  %861 = vmatprep.subr.bf16.mxu0 %v971_v4  ;;  %v974_v7 = vld [vmem:[%s1284_s1 + $0x88] sm:$0xff]   ;;  %v978_v11 = vld [vmem:[%s1284_s1 + $0x90] sm:$0xff]  }
   0x5   :  { %888 = vmatpush3.bf16.msra.mxu1 %v970_v3  ;;  %v979_v12 = vld [vmem:[%s1284_s1 + $0x58] sm:$0xff]   ;;  %v983_v16 = vld [vmem:[%s1284_s1 + $0x60] sm:$0xff]   ;;  %v987_v20 = vld [vmem:[%s1284_s1 + $0x68] sm:$0xff]  }
   0x6   :  { %889 = vmatprep.subr.bf16.mxu1 %v973_v6  ;;  %v980_v13 = vld [vmem:[%s1284_s1 + $0x18] sm:$0xff]   ;;  %v984_v17 = vld [vmem:[%s1284_s1 + $0x20] sm:$0xff]   ;;  %v988_v21 = vld [vmem:[%s1284_s1 + $0x28] sm:$0xff]  }
   0x7   :  { %862 = vmatpush3.bf16.msra.mxu0 %v972_v5  ;;  %v981_v14 = vld [vmem:[%s1284_s1 + $0xd8] sm:$0xff]   ;;  %v985_v18 = vld [vmem:[%s1284_s1 + $0xe0] sm:$0xff]   ;;  %v989_v22 = vld [vmem:[%s1284_s1 + $0xe8] sm:$0xff]  }
   0x8   :  { %863 = vmatprep.subr.bf16.mxu0 %v975_v8  ;;  %v982_v15 = vld [vmem:[%s1284_s1 + $0x98] sm:$0xff]   ;;  %v986_v19 = vld [vmem:[%s1284_s1 + $0xa0] sm:$0xff]   ;;  %v990_v23 = vld [vmem:[%s1284_s1 + $0xa8] sm:$0xff]  }
   0x9   :  { %890 = vmatpush3.bf16.msra.mxu1 %v974_v7  ;;  %v991_v24 = vld [vmem:[%s1284_s1 + $0x70] sm:$0xff]   ;;  %v995_v28 = vld [vmem:[%s1284_s1 + $0x78] sm:$0xff]   ;;  %v1000_v32 = vld [vmem:[%s1285_s0 + $0x4] ss:$28 sps:$4 sm:$0xff]  }
   0xa   :  { %891 = vmatprep.subr.bf16.mxu1 %v977_v10  ;;  %v992_v25 = vld [vmem:[%s1284_s1 + $0x30] sm:$0xff]   ;;  %v996_v29 = vld [vmem:[%s1284_s1 + $0x38] sm:$0xff]   ;;  %579 = vmatprep.mubr.bf16.mxu0 %v1000_v32  ;;  %v1002_v34 = vld [vmem:[%s1284_s1 + $0x140] sm:$0xff]  }
   0xb   :  { %864 = vmatpush3.bf16.msra.mxu0 %v976_v9  ;;  %v993_v26 = vld [vmem:[%s1284_s1 + $0xf0] sm:$0xff]   ;;  %v997_v30 = vld [vmem:[%s1284_s1 + $0xf8] sm:$0xff]   ;;  %v1003_v35 = vld [vmem:[%s1285_s0 + $0x8] ss:$28 sps:$4 sm:$0xff]  }
   0xc   :  { %865 = vmatprep.subr.bf16.mxu0 %v979_v12  ;;  %v994_v27 = vld [vmem:[%s1284_s1 + $0xb0] sm:$0xff]   ;;  %v998_v31 = vld [vmem:[%s1285_s0] ss:$28 sps:$4 sm:$0xff]   ;;  %v1005_v36 = vld [vmem:[%s1285_s0 + $0xc] ss:$28 sps:$4 sm:$0xff]  }
   0xd   :  { %892 = vmatpush3.bf16.msra.mxu1 %v978_v11  ;;  %v1001_v33 = vld [vmem:[%s1284_s1 + $0xb8] sm:$0xff]   ;;  %v1006_v37 = vld [vmem:[%s1284_s1 + $0x100] sm:$0xff]   ;;  %628 = vmatprep.mubr.bf16.mxu1 %v1005_v36  ;;  %v1007_v38 = vld [vmem:[%s1284_s1 + $0x148] sm:$0xff]  }
   0xe   :  { %893 = vmatprep.subr.bf16.mxu1 %v981_v14  ;;  %v1008_v39 = vld [vmem:[%s1284_s1 + $0x108] sm:$0xff]   ;;  %v1009_v40 = vld [vmem:[%s1284_s1 + $0x150] sm:$0xff]   ;;  %v1012_v42 = vld [vmem:[%s1284_s1 + $0x180] sm:$0xff]  }
   0xf   :  { %866 = vmatpush3.bf16.msra.mxu0 %v980_v13  ;;  %v1010_v41 = vld [vmem:[%s1284_s1 + $0x110] sm:$0xff]   ;;  %v1011_v43 = vld [vmem:[%s1284_s1 + $0x158] sm:$0xff]   ;;  %v1015_v45 = vld [vmem:[%s1284_s1 + $0x188] sm:$0xff]  }
  0x10   :  { %867 = vmatprep.subr.bf16.mxu0 %v983_v16  ;;  %v1013_v44 = vld [vmem:[%s1284_s1 + $0x118] sm:$0xff]   ;;  %v1014_v46 = vld [vmem:[%s1284_s1 + $0x160] sm:$0xff]   ;;  %v1020_v49 = vld [vmem:[%s1284_s1 + $0x190] sm:$0xff]  }
  0x11   :  { %894 = vmatpush3.bf16.msra.mxu1 %v982_v15  ;;  %v1017_v47 = vld [vmem:[%s1285_s0 + $0x3c] ss:$28 sps:$4 sm:$0xff]   ;;  %v1016_v48 = vld [vmem:[%s1284_s1 + $0x120] sm:$0xff]   ;;  %v1019_v51 = vld [vmem:[%s1284_s1 + $0x168] sm:$0xff]  }
  0x12   :  { %895 = vmatprep.subr.bf16.mxu1 %v985_v18  ;;  %v1021_v50 = vld [vmem:[%s1285_s0 + $0x38] ss:$28 sps:$4 sm:$0xff]   ;;  %v1023_v52 = vld [vmem:[%s1285_s0 + $0x44] ss:$28 sps:$4 sm:$0xff]   ;;  %v1022_v54 = vld [vmem:[%s1284_s1 + $0x128] sm:$0xff]  }
  0x13   :  { %868 = vmatpush3.bf16.msra.mxu0 %v984_v17  ;;  %v1025_v53 = vld [vmem:[%s1285_s0 + $0x40] ss:$28 sps:$4 sm:$0xff]   ;;  %v1026_v56 = vld [vmem:[%s1284_s1 + $0x170] sm:$0xff]   ;;  %v1035_v61 = vld [vmem:[%s1284_s1 + $0x1a8] sm:$0xff]  }
  0x14   :  { %869 = vmatprep.subr.bf16.mxu0 %v987_v20  ;;  %v1027_v55 = vld [vmem:[%s1284_s1 + $0x198] sm:$0xff]   ;;  %v1030_v57 = vld [vmem:[%s1284_s1 + $0x1a0] sm:$0xff]   ;;  %v1028_v58 = vld [vmem:[%s1284_s1 + $0x130] sm:$0xff]  }
  0x15   :  { %896 = vmatpush3.bf16.msra.mxu1 %v986_v19  ;;  %v1029_v59 = vld [vmem:[%s1284_s1 + $0x178] sm:$0xff]   ;;  %v1034_v60 = vld [vmem:[%s1285_s0 + $0x14] ss:$28 sps:$4 sm:$0xff]   ;;  %v1038_v2 = vld [vmem:[%s1285_s0 + $0x4c] ss:$28 sps:$4 sm:$0xff]  }
  0x16   :  { %897 = vmatprep.subr.bf16.mxu1 %v989_v22  ;;  %v1036_v62 = vld [vmem:[%s1285_s0 + $0x18] ss:$28 sps:$4 sm:$0xff]   ;;  %v1037_v0 = vld [vmem:[%s1285_s0 + $0x50] ss:$28 sps:$4 sm:$0xff]   ;;  %v1040_v3 = vld [vmem:[%s1285_s0 + $0x48] ss:$28 sps:$4 sm:$0xff]  }
  0x17   :  { %870 = vmatpush3.bf16.msra.mxu0 %v988_v21  ;;  %v1031_v63 = vld [vmem:[%s1284_s1 + $0x138] sm:$0xff]   ;;  %v1032_v1 = vld [vmem:[%s1285_s0 + $0x10] ss:$28 sps:$4 sm:$0xff]   ;;  %v780_v5 = vld [vmem:[%s1286_s2] ss:$0 sm:$0xff] }
  0x18   :  { %871 = vmatprep.subr.bf16.mxu0 %v991_v24 }
  0x19   :  { %898 = vmatpush3.bf16.msra.mxu1 %v990_v23 }
  0x1a   :  { %899 = vmatprep.subr.bf16.mxu1 %v993_v26 }
  0x1b   :  { %872 = vmatpush3.bf16.msra.mxu0 %v992_v25 }
  0x1c   :  { %873 = vmatprep.subr.bf16.mxu0 %v995_v28 }
  0x1d   :  { %900 = vmatpush3.bf16.msra.mxu1 %v994_v27 }
  0x1e   :  { %901 = vmatprep.subr.bf16.mxu1 %v997_v30 }
  0x1f   :  { %874 = vmatpush3.bf16.msra.mxu0 %v996_v29 }
  0x20   :  { %915 = vmatprep.subr.bf16.mxu0 %v1002_v34 }
  0x21   :  { %902 = vmatpush3.bf16.msra.mxu1 %v1001_v33 }
  0x22   :  { %580 = vmatmul.mubr.bf16.vlgmr.msra.gmra.mrb[0].mxu0 %v998_v31  ;;  %951 = vmatprep.subr.bf16.mxu1 %v1012_v42 }
  0x23   :  { %916 = vmatpush3.bf16.msra.mxu0 %v1006_v37  ;;  %587 = vmatprep.mubr.bf16.mxu0 %v1017_v47 }
  0x24   :  { %629 = vmatmul.mubr.bf16.vlgmr.msra.gmra.mrb[0].mxu1 %v1003_v35  ;;  %917 = vmatprep.subr.bf16.mxu0 %v1007_v38 }
  0x25   :  { %952 = vmatpush3.bf16.msra.mxu1 %v1012_v42  ;;  %636 = vmatprep.mubr.bf16.mxu1 %v1023_v52 }
  0x26   :  { %953 = vmatprep.subr.bf16.mxu1 %v1015_v45 }
  0x27   :  { %918 = vmatpush3.bf16.msra.mxu0 %v1008_v39 }
  0x28   :  { %919 = vmatprep.subr.bf16.mxu0 %v1009_v40 }
  0x29   :  { %954 = vmatpush3.bf16.msra.mxu1 %v1015_v45 }
  0x2a   :  { %955 = vmatprep.subr.bf16.mxu1 %v1020_v49  ;;  %588 = vmatmul.mubr.bf16.gmra.mrb[4].mxu0 %v1021_v50 }
  0x2b   :  { %920 = vmatpush3.bf16.msra.mxu0 %v1010_v41  ;;  %677 = vmatprep.mubr.bf16.mxu0 %v1034_v60 }
  0x2c   :  { %921 = vmatprep.subr.bf16.mxu0 %v1011_v43  ;;  %637 = vmatmul.mubr.bf16.gmra.mrb[4].mxu1 %v1025_v53 }
  0x2d   :  { %956 = vmatpush3.bf16.msra.mxu1 %v1020_v49  ;;  %963 = vmatprep.mubr.msk.bf16.mxu1 %vm540_vm0, %v1036_v62 }
  0x2e   :  { %957 = vmatprep.subr.bf16.mxu1 %v1027_v55 }
  0x2f   :  { %922 = vmatpush3.bf16.msra.mxu0 %v1013_v44 }
  0x30   :  { %923 = vmatprep.subr.bf16.mxu0 %v1014_v46 }
  0x31   :  { %958 = vmatpush3.bf16.msra.mxu1 %v1027_v55 }
  0x32   :  { %959 = vmatprep.subr.bf16.mxu1 %v1030_v57 }
  0x33   :  { %924 = vmatpush3.bf16.msra.mxu0 %v1016_v48 }
  0x34   :  { %925 = vmatprep.subr.bf16.mxu0 %v1019_v51 }
  0x35   :  { %960 = vmatpush3.bf16.msra.mxu1 %v1030_v57 }
  0x36   :  { %961 = vmatprep.subr.bf16.mxu1 %v1035_v61 }
  0x37   :  { %926 = vmatpush3.bf16.msra.mxu0 %v1022_v54 }
  0x38   :  { %927 = vmatprep.subr.bf16.mxu0 %v1026_v56 }
  0x39   :  { %962 = vmatpush3.bf16.msra.mxu1 %v1035_v61 }
  0x3b   :  { %928 = vmatpush3.bf16.msra.mxu0 %v1028_v58 }
  0x3c   :  { %929 = vmatprep.subr.bf16.mxu0 %v1029_v59  ;;  %964 = vmatmul.mubr.msk.bf16.vlgmr.msra.gmra.mrb[8].mxu1 %vm540_vm0, %v1037_v0 }
  0x3f   :  { %930 = vmatpush3.bf16.msra.mxu0 %v1031_v63 }
  0x42   :  { %678 = vmatmul.mubr.bf16.vlgmr.msra.gmra.mrb[8].mxu0 %v1032_v1 }
  0x43   :  { %685 = vmatprep.mubr.bf16.mxu0 %v1038_v2 }
  0x4a   :  { %686 = vmatmul.mubr.bf16.gmra.mrb[12].mxu0 %v1040_v3 }
  0xf5   :  { %v875_v4 = vpop.f32.mrb[0].mxu0 }
  0xf6   :  { %v876_v6 = vpop.f32.mrb[1].mxu0 }
  0xf7   :  { %v877_v7 = vadd.f32 %v876_v6, %v875_v4  ;;  %v878_v8 = vpop.f32.mrb[2].mxu0  ;;  %v903_v9 = vpop.f32.mrb[0].mxu1 }
  0xf8   :  { %v879_v10 = vpop.f32.mrb[3].mxu0  ;;  %v904_v13 = vpop.f32.mrb[1].mxu1 }
  0xf9   :  { %v582_v11 = vadd.f32 %v877_v7, %v780_v5  ;;  %v880_v12 = vadd.f32 %v879_v10, %v878_v8  ;;  %v905_v14 = vadd.f32 %v904_v13, %v903_v9  ;;  %v906_v15 = vpop.f32.mrb[2].mxu1 }
  0xfa   :  { %v907_v17 = vpop.f32.mrb[3].mxu1 }
  0xfb   :  { %v585_v16 = vadd.f32 %v880_v12, %v780_v5  ;;  %v631_v18 = vadd.f32 %v905_v14, %v582_v11  ;;  %v908_v19 = vadd.f32 %v907_v17, %v906_v15 }
  0xfd   :  { %v634_v20 = vadd.f32 %v908_v19, %v585_v16  ;;  %v881_v21 = vpop.f32.mrb[4].mxu0 }
  0xfe   :  { %v882_v22 = vpop.f32.mrb[5].mxu0 }
  0xff   :  { %v883_v23 = vadd.f32 %v882_v22, %v881_v21  ;;  %v884_v24 = vpop.f32.mrb[6].mxu0  ;;  %v909_v25 = vpop.f32.mrb[4].mxu1 }
 0x100   :  { %v885_v26 = vpop.f32.mrb[7].mxu0  ;;  %v910_v27 = vpop.f32.mrb[5].mxu1 }
 0x101   :  { %v590_v28 = vadd.f32 %v883_v23, %v780_v5  ;;  %v886_v29 = vadd.f32 %v885_v26, %v884_v24  ;;  %v911_v30 = vadd.f32 %v910_v27, %v909_v25  ;;  %v912_v31 = vpop.f32.mrb[6].mxu1 }
 0x102   :  { %v913_v32 = vpop.f32.mrb[7].mxu1 }
 0x103   :  { %v593_v33 = vadd.f32 %v886_v29, %v780_v5  ;;  %v639_v34 = vadd.f32 %v911_v30, %v590_v28  ;;  %v914_v35 = vadd.f32 %v913_v32, %v912_v31 }
 0x105   :  { %v642_v36 = vadd.f32 %v914_v35, %v593_v33 }
 0x10f   :  { %v965_v37 = vpop.f32.mrb[8].mxu1 }
 0x110   :  { %v728_v39 = vpop.f32.mrb[9].mxu1 }
 0x111   :  { %v966_v41 = vpop.f32.mrb[10].mxu1 }
 0x112   :  { %v731_v44 = vpop.f32.mrb[11].mxu1 }
 0x115   :  { %v931_v38 = vpop.f32.mrb[8].mxu0 }
 0x116   :  { %v932_v40 = vpop.f32.mrb[9].mxu0 }
 0x117   :  { %v933_v42 = vadd.f32 %v932_v40, %v931_v38  ;;  %v934_v43 = vpop.f32.mrb[10].mxu0 }
 0x118   :  { %v935_v45 = vpop.f32.mrb[11].mxu0 }
 0x119   :  { %v936_v46 = vadd.f32 %v935_v45, %v934_v43  ;;  %v680_v47 = vadd.f32 %v933_v42, %v631_v18 }
 0x11b   :  { %v729_v48 = vadd.f32 %v728_v39, %v680_v47  ;;  %v683_v49 = vadd.f32 %v936_v46, %v634_v20 }
 0x11d   :  { %vm743_vm1 = vcmp.gt.f32.partialorder %v729_v48, 0.0  ;;  %v747_v50 = vmul.f32 0.1, %v729_v48  ;;  %v732_v51 = vadd.f32 %v731_v44, %v683_v49  ;;  %v937_v52 = vpop.f32.mrb[12].mxu0 }
 0x11e   :  { %v938_v53 = vpop.f32.mrb[13].mxu0 }
 0x11f   :  { %v751_v54 = vsel %vm743_vm1, %v729_v48, %v747_v50  ;;  %vm744_vm3 = vcmp.gt.f32.partialorder %v732_v51, 0.0  ;;  %v748_v55 = vmul.f32 0.1, %v732_v51  ;;  %v939_v56 = vadd.f32 %v938_v53, %v937_v52  ;;  %v940_v57 = vpop.f32.mrb[14].mxu0 }
 0x120   :  { %v855_v58 = vpack.c.bf16 %v751_v54, %v751_v54  ;;  %v941_v59 = vpop.f32.mrb[15].mxu0 }
 0x121   :  { %v752_v60 = vsel %vm744_vm3, %v732_v51, %v748_v55  ;;  %v688_v61 = vadd.f32 %v939_v56, %v639_v34  ;;  %v942_v62 = vadd.f32 %v941_v59, %v940_v57 }
 0x122   :  { %772 = vst.msk [vmem:[%s1287_s3] sm:$0xf] %vm771_vm2, %v855_v58  ;;  %v856_v63 = vpack.c.bf16 %v752_v60, %v752_v60 }
 0x123   :  { %v737_v0 = vadd.f32 %v965_v37, %v688_v61  ;;  %v691_v1 = vadd.f32 %v942_v62, %v642_v36 }
 0x124   :  { %773 = vst.msk [vmem:[%s1287_s3 + $0x4] sm:$0xf] %vm771_vm2, %v856_v63 }
 0x125   :  { %vm745_vm4 = vcmp.gt.f32.partialorder %v737_v0, 0.0  ;;  %v749_v2 = vmul.f32 0.1, %v737_v0  ;;  %v740_v3 = vadd.f32 %v966_v41, %v691_v1 }
 0x127   :  { %v753_v4 = vsel %vm745_vm4, %v737_v0, %v749_v2  ;;  %vm746_vm5 = vcmp.gt.f32.partialorder %v740_v3, 0.0  ;;  %v750_v5 = vmul.f32 0.1, %v740_v3 }
 0x128   :  { %v857_v6 = vpack.c.bf16 %v753_v4, %v753_v4 }
 0x129   :  { %v754_v7 = vsel %vm746_vm5, %v740_v3, %v750_v5 }
 0x12a   :  { %774 = vst.msk [vmem:[%s1287_s3 + $0x8] sm:$0xf] %vm771_vm2, %v857_v6  ;;  %v858_v8 = vpack.c.bf16 %v754_v7, %v754_v7 }
 0x12c   :  { %775 = vst.msk [vmem:[%s1287_s3 + $0xc] sm:$0xf] %vm771_vm2, %v858_v8 }

// kernel: small_encoder_forward.55
= control target key start
LH: loop header
LB: loop body
LE: loop exit
PB: predicated region body
PF: predicated region fallthrough
CT: control target
= control target key end

     0   :  { %s649_s0 = inlined_call_operand.vmem [shape: bf16[32,384], index: 0, kind: input, shape index: {}]   ;;  %s650_s1 = inlined_call_operand.vmem [shape: bf16[384,128], index: 1, kind: input, shape index: {}]   ;;  %s651_s2 = inlined_call_operand.vmem [shape: f32[1,128], index: 2, kind: input, shape index: {}]   ;;  %s652_s3 = inlined_call_operand.hbm [shape: f32[32,128], index: 3, kind: output, shape index: {}]  }
   0x1   :  { %v465_v0 = vld [vmem:[%s650_s1 + $0x40] sm:$0xff]   ;;  %v467_v2 = vld [vmem:[%s650_s1 + $0x48] sm:$0xff]   ;;  %v470_v5 = vld [vmem:[%s650_s1 + $0x50] sm:$0xff]  }
   0x2   :  { %v466_v1 = vld [vmem:[%s650_s1] sm:$0xff]   ;;  %404 = vmatprep.subr.bf16.mxu0 %v465_v0  ;;  %v469_v4 = vld [vmem:[%s650_s1 + $0x8] sm:$0xff]   ;;  %v472_v7 = vld [vmem:[%s650_s1 + $0x10] sm:$0xff]  }
   0x3   :  { %405 = vmatpush3.bf16.msra.mxu0 %v466_v1  ;;  %v468_v3 = vld [vmem:[%s650_s1 + $0x80] sm:$0xff]   ;;  %v471_v6 = vld [vmem:[%s650_s1 + $0x88] sm:$0xff]   ;;  %v473_v8 = vld [vmem:[%s650_s1 + $0x58] sm:$0xff]  }
   0x4   :  { %406 = vmatprep.subr.bf16.mxu0 %v467_v2  ;;  %442 = vmatprep.subr.bf16.mxu1 %v468_v3  ;;  %v474_v9 = vld [vmem:[%s650_s1 + $0x90] sm:$0xff]   ;;  %v475_v10 = vld [vmem:[%s650_s1 + $0x18] sm:$0xff]   ;;  %v476_v11 = vld [vmem:[%s650_s1 + $0x60] sm:$0xff]  }
   0x5   :  { %443 = vmatpush3.bf16.msra.mxu1 %v468_v3  ;;  %v477_v12 = vld [vmem:[%s650_s1 + $0x98] sm:$0xff]   ;;  %v478_v13 = vld [vmem:[%s650_s1 + $0x20] sm:$0xff]   ;;  %v479_v15 = vld [vmem:[%s650_s1 + $0x68] sm:$0xff]  }
   0x6   :  { %444 = vmatprep.subr.bf16.mxu1 %v471_v6  ;;  %v480_v14 = vld [vmem:[%s650_s1 + $0xa0] sm:$0xff]   ;;  %v481_v16 = vld [vmem:[%s650_s1 + $0x28] sm:$0xff]   ;;  %v482_v18 = vld [vmem:[%s650_s1 + $0x70] sm:$0xff]  }
   0x7   :  { %407 = vmatpush3.bf16.msra.mxu0 %v469_v4  ;;  %v483_v17 = vld [vmem:[%s650_s1 + $0xa8] sm:$0xff]   ;;  %v484_v19 = vld [vmem:[%s650_s1 + $0x30] sm:$0xff]   ;;  %v485_v20 = vld [vmem:[%s650_s1 + $0x78] sm:$0xff]  }
   0x8   :  { %408 = vmatprep.subr.bf16.mxu0 %v470_v5  ;;  %v486_v21 = vld [vmem:[%s650_s1 + $0xb0] sm:$0xff]   ;;  %v487_v23 = vld [vmem:[%s650_s1 + $0x38] sm:$0xff]  }
   0x9   :  { %445 = vmatpush3.bf16.msra.mxu1 %v471_v6  ;;  %v490_v22 = vld [vmem:[%s649_s0 + $0x4] ss:$12 sps:$4 sm:$0xff]   ;;  %v492_v24 = vld [vmem:[%s649_s0 + $0x8] ss:$12 sps:$4 sm:$0xff]   ;;  %v491_v25 = vld [vmem:[%s650_s1 + $0xb8] sm:$0xff]  }
   0xa   :  { %446 = vmatprep.subr.bf16.mxu1 %v474_v9  ;;  %287 = vmatprep.mubr.bf16.mxu0 %v490_v22 }
   0xb   :  { %409 = vmatpush3.bf16.msra.mxu0 %v472_v7  ;;  %458 = vmatprep.mubr.bf16.mxu1 %v492_v24 }
   0xc   :  { %410 = vmatprep.subr.bf16.mxu0 %v473_v8 }
   0xd   :  { %447 = vmatpush3.bf16.msra.mxu1 %v474_v9 }
   0xe   :  { %448 = vmatprep.subr.bf16.mxu1 %v477_v12 }
   0xf   :  { %411 = vmatpush3.bf16.msra.mxu0 %v475_v10 }
  0x10   :  { %412 = vmatprep.subr.bf16.mxu0 %v476_v11 }
  0x11   :  { %449 = vmatpush3.bf16.msra.mxu1 %v477_v12 }
  0x12   :  { %450 = vmatprep.subr.bf16.mxu1 %v480_v14 }
  0x13   :  { %413 = vmatpush3.bf16.msra.mxu0 %v478_v13 }
  0x14   :  { %414 = vmatprep.subr.bf16.mxu0 %v479_v15 }
  0x15   :  { %451 = vmatpush3.bf16.msra.mxu1 %v480_v14 }
  0x16   :  { %452 = vmatprep.subr.bf16.mxu1 %v483_v17 }
  0x17   :  { %415 = vmatpush3.bf16.msra.mxu0 %v481_v16 }
  0x18   :  { %416 = vmatprep.subr.bf16.mxu0 %v482_v18 }
  0x19   :  { %453 = vmatpush3.bf16.msra.mxu1 %v483_v17 }
  0x1a   :  { %454 = vmatprep.subr.bf16.mxu1 %v486_v21 }
  0x1b   :  { %417 = vmatpush3.bf16.msra.mxu0 %v484_v19 }
  0x1c   :  { %418 = vmatprep.subr.bf16.mxu0 %v485_v20 }
  0x1d   :  { %8 = vsyncpa [#allocation3], 0  ;;  %455 = vmatpush3.bf16.msra.mxu1 %v486_v21  ;;  %v488_v26 = vld [vmem:[%s649_s0] ss:$12 sps:$4 sm:$0xff]   ;;  %v494_v27 = vld [vmem:[%s649_s0 + $0x1c] ss:$12 sps:$4 sm:$0xff]  }
  0x1e   :  { %456 = vmatprep.subr.bf16.mxu1 %v491_v25  ;;  %v493_v28 = vld [vmem:[%s649_s0 + $0x20] ss:$12 sps:$4 sm:$0xff]   ;;  %v496_v29 = vld [vmem:[%s649_s0 + $0x18] ss:$12 sps:$4 sm:$0xff]   ;;  %s521_s0 = smov [#allocation2]  }
  0x1f   :  { %419 = vmatpush3.bf16.msra.mxu0 %v487_v23  ;;  %v373_v32 = vld [vmem:[%s651_s2] ss:$0 sm:$0xff]  ;;  %s362_s2 = sshll.u32 %s521_s0, 4  ;;  %s363_s2 = int_to_ptr.vmem [resolvable:$true] %s362_s2 }
  0x20   :  { %s497_s19 = scalar_lea.vmem %s363_s2, 512  ;;  %p502_p1 = scmp.lt.s32.totalorder %s363_s2, %s363_s2 }
  0x21   :  { %457 = vmatpush3.bf16.msra.mxu1 %v491_v25  ;;  %p498_p0 = scmp.ne.s32.totalorder %s363_s2, %s497_s19  ;;  %p503_p2 = scmp.lt.s32.totalorder %s497_s19, %s497_s19 }
  0x22   :  { %288 = vmatmul.mubr.bf16.vlgmr.msra.gmra.mrb[0].mxu0 %v488_v26 }
  0x23   :  { %295 = vmatprep.mubr.bf16.mxu0 %v494_v27  ;;  %p504_p3 = por %p503_p2, %p502_p1 }
  0x24   :  { %459 = vmatmul.mubr.bf16.vlgmr.msra.gmra.mrb[0].mxu1 %v493_v28 }
  0x25   :  { %p505_p4 = pnand %p504_p3, %p498_p0 }
  0x2a   :  { %296 = vmatmul.mubr.bf16.gmra.mrb[4].mxu0 %v496_v29 }
  0xf5   :  { %v420_v30 = vpop.f32.mrb[0].mxu0 }
  0xf6   :  { %v421_v31 = vpop.f32.mrb[1].mxu0 }
  0xf7   :  { %v422_v33 = vadd.f32 %v421_v31, %v420_v30  ;;  %v423_v34 = vpop.f32.mrb[2].mxu0  ;;  %v460_v36 = vpop.f32.mrb[0].mxu1 }
  0xf8   :  { %v424_v35 = vpop.f32.mrb[3].mxu0  ;;  %v338_v39 = vpop.f32.mrb[1].mxu1 }
  0xf9   :  { %v425_v37 = vadd.f32 %v424_v35, %v423_v34  ;;  %v290_v38 = vadd.f32 %v422_v33, %v373_v32  ;;  %v461_v40 = vpop.f32.mrb[2].mxu1 }
  0xfa   :  { %v341_v43 = vpop.f32.mrb[3].mxu1 }
  0xfb   :  { %v339_v41 = vadd.f32 %v338_v39, %v290_v38  ;;  %v293_v42 = vadd.f32 %v425_v37, %v373_v32 }
  0xfd   :  { %353 = vst [vmem:[#allocation2] sm:$0xff] %v339_v41  ;;  %v342_v44 = vadd.f32 %v341_v43, %v293_v42  ;;  %v426_v45 = vpop.f32.mrb[4].mxu0 }
  0xfe   :  { %v427_v46 = vpop.f32.mrb[5].mxu0 }
  0xff   :  { %354 = vst [vmem:[#allocation2 + $0x8] sm:$0xff] %v342_v44  ;;  %v428_v47 = vadd.f32 %v427_v46, %v426_v45  ;;  %v429_v48 = vpop.f32.mrb[6].mxu0 }
 0x100   :  { %v430_v49 = vpop.f32.mrb[7].mxu0 }
 0x101   :  { %v298_v50 = vadd.f32 %v428_v47, %v373_v32  ;;  %v431_v51 = vadd.f32 %v430_v49, %v429_v48 }
 0x103   :  { %v347_v52 = vadd.f32 %v460_v36, %v298_v50  ;;  %v301_v53 = vadd.f32 %v431_v51, %v373_v32 }
 0x105   :  { %355 = vst [vmem:[#allocation2 + $0x10] sm:$0xff] %v347_v52  ;;  %v350_v54 = vadd.f32 %v461_v40, %v301_v53 }
 0x107   :  { %356 = vst [vmem:[#allocation2 + $0x18] sm:$0xff] %v350_v54 }
 0x108   :  { %508 = shalt.err (!%p505_p4)
}
 0x109   :  { %s509_s22 = scalar_lea.hbm %s652_s3, 512 }
 0x10a   :  { %p510_p5 = scmp.ne.s32.totalorder %s652_s3, %s509_s22  ;;  %p513_p6 = scmp.lt.u32.totalorder %s509_s22, %s652_s3 }
 0x10c   :  { %p515_p7 = pnand %p513_p6, %p510_p5 }
 0x10e   :  { %518 = shalt.err (!%p515_p7)
}
 0x10f   :  { %s522_s27 = smov 128   ;;  %s523_s28 = smov 8  }
 0x110   :  { %368 = dma.vmem_to_hbm [thread:$0]  %s363_s2, 512, %s652_s3, [#allocation3], %s522_s27, %s522_s27, %s523_s28  }
 0x111   :  { %519 = dma.done.wait [#allocation3], 512  }
 0x112   :  { %520 = vsyncadd [#allocation3], 4294966784 }
 0x113   :  { %372 = vsyncpa [#allocation3], 1 }

// kernel: small_encoder_forward.50
= control target key start
LH: loop header
LB: loop body
LE: loop exit
PB: predicated region body
PF: predicated region fallthrough
CT: control target
= control target key end

     0   :  { %vm540_vm0 = vcmask 785408   ;;  %s1272_s1 = inlined_call_operand.vmem [shape: bf16[864,128], index: 1, kind: input, shape index: {}]   ;;  %s1273_s0 = inlined_call_operand.vmem [shape: bf16[32,864], index: 0, kind: input, shape index: {}]   ;;  %s1274_s2 = inlined_call_operand.vmem [shape: f32[1,128], index: 2, kind: input, shape index: {}]   ;;  %s1275_s3 = inlined_call_operand.vmem [shape: bf16[32,128], index: 3, kind: output, shape index: {}]  }
   0x1   :  { %v965_v0 = vld [vmem:[%s1272_s1 + $0x40] sm:$0xff]   ;;  %v969_v4 = vld [vmem:[%s1272_s1 + $0x48] sm:$0xff]   ;;  %v973_v8 = vld [vmem:[%s1272_s1 + $0x50] sm:$0xff]  }
   0x2   :  { %v966_v1 = vld [vmem:[%s1272_s1] sm:$0xff]   ;;  %857 = vmatprep.subr.bf16.mxu0 %v965_v0  ;;  %v970_v5 = vld [vmem:[%s1272_s1 + $0x8] sm:$0xff]   ;;  %v974_v9 = vld [vmem:[%s1272_s1 + $0x10] sm:$0xff]  }
   0x3   :  { %v967_v2 = vld [vmem:[%s1272_s1 + $0xc0] sm:$0xff]   ;;  %858 = vmatpush3.bf16.msra.mxu0 %v966_v1  ;;  %v971_v6 = vld [vmem:[%s1272_s1 + $0xc8] sm:$0xff]   ;;  %v975_v10 = vld [vmem:[%s1272_s1 + $0xd0] sm:$0xff]  }
   0x4   :  { %v968_v3 = vld [vmem:[%s1272_s1 + $0x80] sm:$0xff]   ;;  %885 = vmatprep.subr.bf16.mxu1 %v967_v2  ;;  %859 = vmatprep.subr.bf16.mxu0 %v969_v4  ;;  %v972_v7 = vld [vmem:[%s1272_s1 + $0x88] sm:$0xff]   ;;  %v976_v11 = vld [vmem:[%s1272_s1 + $0x90] sm:$0xff]  }
   0x5   :  { %886 = vmatpush3.bf16.msra.mxu1 %v968_v3  ;;  %v977_v12 = vld [vmem:[%s1272_s1 + $0x58] sm:$0xff]   ;;  %v981_v16 = vld [vmem:[%s1272_s1 + $0x60] sm:$0xff]   ;;  %v985_v20 = vld [vmem:[%s1272_s1 + $0x68] sm:$0xff]  }
   0x6   :  { %887 = vmatprep.subr.bf16.mxu1 %v971_v6  ;;  %v978_v13 = vld [vmem:[%s1272_s1 + $0x18] sm:$0xff]   ;;  %v982_v17 = vld [vmem:[%s1272_s1 + $0x20] sm:$0xff]   ;;  %v986_v21 = vld [vmem:[%s1272_s1 + $0x28] sm:$0xff]  }
   0x7   :  { %860 = vmatpush3.bf16.msra.mxu0 %v970_v5  ;;  %v979_v14 = vld [vmem:[%s1272_s1 + $0xd8] sm:$0xff]   ;;  %v983_v18 = vld [vmem:[%s1272_s1 + $0xe0] sm:$0xff]   ;;  %v987_v22 = vld [vmem:[%s1272_s1 + $0xe8] sm:$0xff]  }
   0x8   :  { %861 = vmatprep.subr.bf16.mxu0 %v973_v8  ;;  %v980_v15 = vld [vmem:[%s1272_s1 + $0x98] sm:$0xff]   ;;  %v984_v19 = vld [vmem:[%s1272_s1 + $0xa0] sm:$0xff]   ;;  %v988_v23 = vld [vmem:[%s1272_s1 + $0xa8] sm:$0xff]  }
   0x9   :  { %888 = vmatpush3.bf16.msra.mxu1 %v972_v7  ;;  %v989_v24 = vld [vmem:[%s1272_s1 + $0x70] sm:$0xff]   ;;  %v993_v28 = vld [vmem:[%s1272_s1 + $0x78] sm:$0xff]   ;;  %v998_v32 = vld [vmem:[%s1273_s0 + $0x4] ss:$28 sps:$4 sm:$0xff]  }
   0xa   :  { %889 = vmatprep.subr.bf16.mxu1 %v975_v10  ;;  %v990_v25 = vld [vmem:[%s1272_s1 + $0x30] sm:$0xff]   ;;  %v994_v29 = vld [vmem:[%s1272_s1 + $0x38] sm:$0xff]   ;;  %579 = vmatprep.mubr.bf16.mxu0 %v998_v32  ;;  %v1000_v34 = vld [vmem:[%s1272_s1 + $0x140] sm:$0xff]  }
   0xb   :  { %862 = vmatpush3.bf16.msra.mxu0 %v974_v9  ;;  %v991_v26 = vld [vmem:[%s1272_s1 + $0xf0] sm:$0xff]   ;;  %v995_v30 = vld [vmem:[%s1272_s1 + $0xf8] sm:$0xff]   ;;  %v1001_v35 = vld [vmem:[%s1273_s0 + $0x8] ss:$28 sps:$4 sm:$0xff]  }
   0xc   :  { %863 = vmatprep.subr.bf16.mxu0 %v977_v12  ;;  %v992_v27 = vld [vmem:[%s1272_s1 + $0xb0] sm:$0xff]   ;;  %v996_v31 = vld [vmem:[%s1273_s0] ss:$28 sps:$4 sm:$0xff]   ;;  %v1003_v36 = vld [vmem:[%s1273_s0 + $0xc] ss:$28 sps:$4 sm:$0xff]  }
   0xd   :  { %890 = vmatpush3.bf16.msra.mxu1 %v976_v11  ;;  %v999_v33 = vld [vmem:[%s1272_s1 + $0xb8] sm:$0xff]   ;;  %v1004_v37 = vld [vmem:[%s1272_s1 + $0x100] sm:$0xff]   ;;  %628 = vmatprep.mubr.bf16.mxu1 %v1003_v36  ;;  %v1005_v38 = vld [vmem:[%s1272_s1 + $0x148] sm:$0xff]  }
   0xe   :  { %891 = vmatprep.subr.bf16.mxu1 %v979_v14  ;;  %v1006_v39 = vld [vmem:[%s1272_s1 + $0x108] sm:$0xff]   ;;  %v1007_v40 = vld [vmem:[%s1272_s1 + $0x150] sm:$0xff]   ;;  %v1010_v42 = vld [vmem:[%s1272_s1 + $0x180] sm:$0xff]  }
   0xf   :  { %864 = vmatpush3.bf16.msra.mxu0 %v978_v13  ;;  %v1008_v41 = vld [vmem:[%s1272_s1 + $0x110] sm:$0xff]   ;;  %v1009_v43 = vld [vmem:[%s1272_s1 + $0x158] sm:$0xff]   ;;  %v1013_v45 = vld [vmem:[%s1272_s1 + $0x188] sm:$0xff]  }
  0x10   :  { %865 = vmatprep.subr.bf16.mxu0 %v981_v16  ;;  %v1011_v44 = vld [vmem:[%s1272_s1 + $0x118] sm:$0xff]   ;;  %v1012_v46 = vld [vmem:[%s1272_s1 + $0x160] sm:$0xff]   ;;  %v1018_v49 = vld [vmem:[%s1272_s1 + $0x190] sm:$0xff]  }
  0x11   :  { %892 = vmatpush3.bf16.msra.mxu1 %v980_v15  ;;  %v1015_v47 = vld [vmem:[%s1273_s0 + $0x3c] ss:$28 sps:$4 sm:$0xff]   ;;  %v1014_v48 = vld [vmem:[%s1272_s1 + $0x120] sm:$0xff]   ;;  %v1017_v51 = vld [vmem:[%s1272_s1 + $0x168] sm:$0xff]  }
  0x12   :  { %893 = vmatprep.subr.bf16.mxu1 %v983_v18  ;;  %v1019_v50 = vld [vmem:[%s1273_s0 + $0x38] ss:$28 sps:$4 sm:$0xff]   ;;  %v1021_v52 = vld [vmem:[%s1273_s0 + $0x44] ss:$28 sps:$4 sm:$0xff]   ;;  %v1020_v54 = vld [vmem:[%s1272_s1 + $0x128] sm:$0xff]  }
  0x13   :  { %866 = vmatpush3.bf16.msra.mxu0 %v982_v17  ;;  %v1023_v53 = vld [vmem:[%s1273_s0 + $0x40] ss:$28 sps:$4 sm:$0xff]   ;;  %v1024_v56 = vld [vmem:[%s1272_s1 + $0x170] sm:$0xff]   ;;  %v1033_v61 = vld [vmem:[%s1272_s1 + $0x1a8] sm:$0xff]  }
  0x14   :  { %867 = vmatprep.subr.bf16.mxu0 %v985_v20  ;;  %v1025_v55 = vld [vmem:[%s1272_s1 + $0x198] sm:$0xff]   ;;  %v1028_v57 = vld [vmem:[%s1272_s1 + $0x1a0] sm:$0xff]   ;;  %v1026_v58 = vld [vmem:[%s1272_s1 + $0x130] sm:$0xff]  }
  0x15   :  { %894 = vmatpush3.bf16.msra.mxu1 %v984_v19  ;;  %v1027_v59 = vld [vmem:[%s1272_s1 + $0x178] sm:$0xff]   ;;  %v1032_v60 = vld [vmem:[%s1273_s0 + $0x14] ss:$28 sps:$4 sm:$0xff]   ;;  %v1036_v2 = vld [vmem:[%s1273_s0 + $0x4c] ss:$28 sps:$4 sm:$0xff]  }
  0x16   :  { %895 = vmatprep.subr.bf16.mxu1 %v987_v22  ;;  %v1034_v62 = vld [vmem:[%s1273_s0 + $0x18] ss:$28 sps:$4 sm:$0xff]   ;;  %v1035_v0 = vld [vmem:[%s1273_s0 + $0x50] ss:$28 sps:$4 sm:$0xff]   ;;  %v1038_v3 = vld [vmem:[%s1273_s0 + $0x48] ss:$28 sps:$4 sm:$0xff]  }
  0x17   :  { %868 = vmatpush3.bf16.msra.mxu0 %v986_v21  ;;  %v1029_v63 = vld [vmem:[%s1272_s1 + $0x138] sm:$0xff]   ;;  %v1030_v1 = vld [vmem:[%s1273_s0 + $0x10] ss:$28 sps:$4 sm:$0xff]   ;;  %v767_v5 = vld [vmem:[%s1274_s2] ss:$0 sm:$0xff] }
  0x18   :  { %869 = vmatprep.subr.bf16.mxu0 %v989_v24 }
  0x19   :  { %896 = vmatpush3.bf16.msra.mxu1 %v988_v23 }
  0x1a   :  { %897 = vmatprep.subr.bf16.mxu1 %v991_v26 }
  0x1b   :  { %870 = vmatpush3.bf16.msra.mxu0 %v990_v25 }
  0x1c   :  { %871 = vmatprep.subr.bf16.mxu0 %v993_v28 }
  0x1d   :  { %898 = vmatpush3.bf16.msra.mxu1 %v992_v27 }
  0x1e   :  { %899 = vmatprep.subr.bf16.mxu1 %v995_v30 }
  0x1f   :  { %872 = vmatpush3.bf16.msra.mxu0 %v994_v29 }
  0x20   :  { %913 = vmatprep.subr.bf16.mxu0 %v1000_v34 }
  0x21   :  { %900 = vmatpush3.bf16.msra.mxu1 %v999_v33 }
  0x22   :  { %580 = vmatmul.mubr.bf16.vlgmr.msra.gmra.mrb[0].mxu0 %v996_v31  ;;  %949 = vmatprep.subr.bf16.mxu1 %v1010_v42 }
  0x23   :  { %914 = vmatpush3.bf16.msra.mxu0 %v1004_v37  ;;  %587 = vmatprep.mubr.bf16.mxu0 %v1015_v47 }
  0x24   :  { %629 = vmatmul.mubr.bf16.vlgmr.msra.gmra.mrb[0].mxu1 %v1001_v35  ;;  %915 = vmatprep.subr.bf16.mxu0 %v1005_v38 }
  0x25   :  { %950 = vmatpush3.bf16.msra.mxu1 %v1010_v42  ;;  %636 = vmatprep.mubr.bf16.mxu1 %v1021_v52 }
  0x26   :  { %951 = vmatprep.subr.bf16.mxu1 %v1013_v45 }
  0x27   :  { %916 = vmatpush3.bf16.msra.mxu0 %v1006_v39 }
  0x28   :  { %917 = vmatprep.subr.bf16.mxu0 %v1007_v40 }
  0x29   :  { %952 = vmatpush3.bf16.msra.mxu1 %v1013_v45 }
  0x2a   :  { %953 = vmatprep.subr.bf16.mxu1 %v1018_v49  ;;  %588 = vmatmul.mubr.bf16.gmra.mrb[4].mxu0 %v1019_v50 }
  0x2b   :  { %918 = vmatpush3.bf16.msra.mxu0 %v1008_v41  ;;  %677 = vmatprep.mubr.bf16.mxu0 %v1032_v60 }
  0x2c   :  { %919 = vmatprep.subr.bf16.mxu0 %v1009_v43  ;;  %637 = vmatmul.mubr.bf16.gmra.mrb[4].mxu1 %v1023_v53 }
  0x2d   :  { %954 = vmatpush3.bf16.msra.mxu1 %v1018_v49  ;;  %961 = vmatprep.mubr.msk.bf16.mxu1 %vm540_vm0, %v1034_v62 }
  0x2e   :  { %955 = vmatprep.subr.bf16.mxu1 %v1025_v55 }
  0x2f   :  { %920 = vmatpush3.bf16.msra.mxu0 %v1011_v44 }
  0x30   :  { %921 = vmatprep.subr.bf16.mxu0 %v1012_v46 }
  0x31   :  { %956 = vmatpush3.bf16.msra.mxu1 %v1025_v55 }
  0x32   :  { %957 = vmatprep.subr.bf16.mxu1 %v1028_v57 }
  0x33   :  { %922 = vmatpush3.bf16.msra.mxu0 %v1014_v48 }
  0x34   :  { %923 = vmatprep.subr.bf16.mxu0 %v1017_v51 }
  0x35   :  { %958 = vmatpush3.bf16.msra.mxu1 %v1028_v57 }
  0x36   :  { %959 = vmatprep.subr.bf16.mxu1 %v1033_v61 }
  0x37   :  { %924 = vmatpush3.bf16.msra.mxu0 %v1020_v54 }
  0x38   :  { %925 = vmatprep.subr.bf16.mxu0 %v1024_v56 }
  0x39   :  { %960 = vmatpush3.bf16.msra.mxu1 %v1033_v61 }
  0x3b   :  { %926 = vmatpush3.bf16.msra.mxu0 %v1026_v58 }
  0x3c   :  { %927 = vmatprep.subr.bf16.mxu0 %v1027_v59  ;;  %962 = vmatmul.mubr.msk.bf16.vlgmr.msra.gmra.mrb[8].mxu1 %vm540_vm0, %v1035_v0 }
  0x3f   :  { %928 = vmatpush3.bf16.msra.mxu0 %v1029_v63 }
  0x42   :  { %678 = vmatmul.mubr.bf16.vlgmr.msra.gmra.mrb[8].mxu0 %v1030_v1 }
  0x43   :  { %685 = vmatprep.mubr.bf16.mxu0 %v1036_v2 }
  0x4a   :  { %686 = vmatmul.mubr.bf16.gmra.mrb[12].mxu0 %v1038_v3 }
  0xf5   :  { %v873_v4 = vpop.f32.mrb[0].mxu0 }
  0xf6   :  { %v874_v6 = vpop.f32.mrb[1].mxu0 }
  0xf7   :  { %v875_v7 = vadd.f32 %v874_v6, %v873_v4  ;;  %v876_v8 = vpop.f32.mrb[2].mxu0  ;;  %v901_v9 = vpop.f32.mrb[0].mxu1 }
  0xf8   :  { %v877_v10 = vpop.f32.mrb[3].mxu0  ;;  %v902_v13 = vpop.f32.mrb[1].mxu1 }
  0xf9   :  { %v582_v11 = vadd.f32 %v875_v7, %v767_v5  ;;  %v878_v12 = vadd.f32 %v877_v10, %v876_v8  ;;  %v903_v14 = vadd.f32 %v902_v13, %v901_v9  ;;  %v904_v15 = vpop.f32.mrb[2].mxu1 }
  0xfa   :  { %v905_v17 = vpop.f32.mrb[3].mxu1 }
  0xfb   :  { %v585_v16 = vadd.f32 %v878_v12, %v767_v5  ;;  %v631_v18 = vadd.f32 %v903_v14, %v582_v11  ;;  %v906_v19 = vadd.f32 %v905_v17, %v904_v15 }
  0xfd   :  { %v634_v20 = vadd.f32 %v906_v19, %v585_v16  ;;  %v879_v21 = vpop.f32.mrb[4].mxu0 }
  0xfe   :  { %v880_v22 = vpop.f32.mrb[5].mxu0 }
  0xff   :  { %v881_v23 = vadd.f32 %v880_v22, %v879_v21  ;;  %v882_v24 = vpop.f32.mrb[6].mxu0  ;;  %v907_v25 = vpop.f32.mrb[4].mxu1 }
 0x100   :  { %v883_v26 = vpop.f32.mrb[7].mxu0  ;;  %v908_v27 = vpop.f32.mrb[5].mxu1 }
 0x101   :  { %v590_v28 = vadd.f32 %v881_v23, %v767_v5  ;;  %v884_v29 = vadd.f32 %v883_v26, %v882_v24  ;;  %v909_v30 = vadd.f32 %v908_v27, %v907_v25  ;;  %v910_v31 = vpop.f32.mrb[6].mxu1 }
 0x102   :  { %v911_v32 = vpop.f32.mrb[7].mxu1 }
 0x103   :  { %v593_v33 = vadd.f32 %v884_v29, %v767_v5  ;;  %v639_v34 = vadd.f32 %v909_v30, %v590_v28  ;;  %v912_v35 = vadd.f32 %v911_v32, %v910_v31 }
 0x105   :  { %v642_v36 = vadd.f32 %v912_v35, %v593_v33 }
 0x10f   :  { %v963_v37 = vpop.f32.mrb[8].mxu1 }
 0x110   :  { %v728_v39 = vpop.f32.mrb[9].mxu1 }
 0x111   :  { %v964_v41 = vpop.f32.mrb[10].mxu1 }
 0x112   :  { %v731_v44 = vpop.f32.mrb[11].mxu1 }
 0x115   :  { %v929_v38 = vpop.f32.mrb[8].mxu0 }
 0x116   :  { %v930_v40 = vpop.f32.mrb[9].mxu0 }
 0x117   :  { %v931_v42 = vadd.f32 %v930_v40, %v929_v38  ;;  %v932_v43 = vpop.f32.mrb[10].mxu0 }
 0x118   :  { %v933_v45 = vpop.f32.mrb[11].mxu0 }
 0x119   :  { %v934_v46 = vadd.f32 %v933_v45, %v932_v43  ;;  %v680_v47 = vadd.f32 %v931_v42, %v631_v18 }
 0x11b   :  { %v729_v48 = vadd.f32 %v728_v39, %v680_v47  ;;  %v683_v49 = vadd.f32 %v934_v46, %v634_v20 }
 0x11d   :  { %v732_v50 = vadd.f32 %v731_v44, %v683_v49  ;;  %v935_v51 = vpop.f32.mrb[12].mxu0 }
 0x11e   :  { %v936_v52 = vpop.f32.mrb[13].mxu0 }
 0x11f   :  { %v849_v53 = vpack.c.bf16 %v732_v50, %v729_v48  ;;  %v937_v54 = vadd.f32 %v936_v52, %v935_v51  ;;  %v938_v55 = vpop.f32.mrb[14].mxu0 }
 0x120   :  { %v939_v56 = vpop.f32.mrb[15].mxu0 }
 0x121   :  { %850 = vst [vmem:[%s1275_s3] sm:$0xff] %v849_v53   ;;  %v688_v57 = vadd.f32 %v937_v54, %v639_v34  ;;  %v940_v58 = vadd.f32 %v939_v56, %v938_v55 }
 0x123   :  { %v737_v59 = vadd.f32 %v963_v37, %v688_v57  ;;  %v691_v60 = vadd.f32 %v940_v58, %v642_v36 }
 0x125   :  { %v740_v61 = vadd.f32 %v964_v41, %v691_v60 }
 0x127   :  { %v854_v62 = vpack.c.bf16 %v740_v61, %v737_v59 }
 0x129   :  { %856 = vst [vmem:[%s1275_s3 + $0x8] sm:$0xff] %v854_v62  }

</bundles_post_ra>
